<compile_context>
chip_gen: v6e
topology: v6e:2x2x1
jax: 0.10.0
libtpu: 0.0.40
codegen_flags: <defaults>
</compile_context>

<pallas_src>
import functools

import jax
import jax.numpy as jnp
from jax import lax
from jax.experimental import pallas as pl
from jax.experimental.pallas import tpu as pltpu

EPS = 1e-5

# Spatial Conv2d stack along the sensor axis: (c_in, c_out, k, stride, pad).
SPATIAL_CFG = [(1, 16, 16, 4, 6), (16, 32, 8, 2, 3), (32, 64, 4, 2, 1)]
# Temporal Conv1d stack: (k, stride, pad); channel counts come from the weights.
TEMPORAL_KSP = [(16, 8, 4), (8, 4, 2)]


def conv_out_size(length, k, stride, pad):
    return (length + 2 * pad - k) // stride + 1


# ----------------------------- Pallas kernels ------------------------------

def _conv_affine_relu_kernel(w_ref, x_ref, scale_ref, bias_ref, o_ref):
    # o = relu((W @ cols) * scale + bias); output (N, tile_M) is lane-dense on M.
    y = jnp.dot(w_ref[...], x_ref[...], preferred_element_type=jnp.float32)
    y = y * scale_ref[...] + bias_ref[...]
    o_ref[...] = jnp.maximum(y, 0.0)


def _pick_tile_m(m):
    # Biggest lane-aligned tile that divides M; tiny per-buffer tiles (<4 MiB)
    # keep us well under the v7x 64 MiB VMEM budget.
    for t in (1024, 512, 256, 128):
        if m % t == 0:
            return t
    return m


def conv_affine_relu(w, cols, scale, bias):
    """relu((w @ cols) * scale + bias).  w:(N,K), cols:(K,M), scale/bias:(N,)."""
    n, k = w.shape
    m = cols.shape[1]
    tile_m = _pick_tile_m(m)
    return pl.pallas_call(
        _conv_affine_relu_kernel,
        out_shape=jax.ShapeDtypeStruct((n, m), jnp.float32),
        grid=(m // tile_m,),
        in_specs=[pl.BlockSpec((n, k), lambda j: (0, 0)),
                  pl.BlockSpec((k, tile_m), lambda j: (0, j)),
                  pl.BlockSpec((n, 1), lambda j: (0, 0)),
                  pl.BlockSpec((n, 1), lambda j: (0, 0))],
        out_specs=pl.BlockSpec((n, tile_m), lambda j: (0, j)),
        compiler_params=pltpu.CompilerParams(
            dimension_semantics=("parallel",)),
    )(w.astype(jnp.bfloat16), cols.astype(jnp.bfloat16),
      scale.reshape(n, 1).astype(jnp.float32),
      bias.reshape(n, 1).astype(jnp.float32))


def _matmul_bias_kernel(x_ref, w_ref, b_ref, o_ref):
    o_ref[...] = (jnp.dot(x_ref[...], w_ref[...],
                          preferred_element_type=jnp.float32) + b_ref[...])


def _bilstm_kernel(xg_ref, whh_ref, o_ref, h_scr, c_scr):
    # xg_ref: (T, B, 4H) precomputed x @ W_ih + b for this direction.
    # whh_ref: (H, 4H) fused recurrent weights (gate order i,f,g,o on lanes).
    # o_ref:  (T, B, H) hidden states written in natural time order.
    t_len = xg_ref.shape[0]
    hid = whh_ref.shape[0]
    is_fwd = pl.program_id(0) == 0

    h_scr[...] = jnp.zeros_like(h_scr)
    c_scr[...] = jnp.zeros_like(c_scr)

    def step(s, carry):
        t = jnp.where(is_fwd, s, t_len - 1 - s)
        g = xg_ref[t] + jnp.dot(h_scr[...].astype(jnp.bfloat16), whh_ref[...],
                                preferred_element_type=jnp.float32)
        i_g = jax.nn.sigmoid(g[:, 0 * hid:1 * hid])
        f_g = jax.nn.sigmoid(g[:, 1 * hid:2 * hid])
        g_g = jnp.tanh(g[:, 2 * hid:3 * hid])
        o_g = jax.nn.sigmoid(g[:, 3 * hid:4 * hid])
        c = f_g * c_scr[...] + i_g * g_g
        h = o_g * jnp.tanh(c)
        c_scr[...] = c
        h_scr[...] = h
        o_ref[t] = h
        return carry

    lax.fori_loop(0, t_len, step, 0, unroll=True)


def _classifier_kernel(x_ref, w1_ref, b1_ref, w2_ref, b2_ref, o_ref):
    h = jnp.dot(x_ref[...], w1_ref[...], preferred_element_type=jnp.float32)
    h = jnp.maximum(h + b1_ref[...], 0.0)
    o_ref[...] = (jnp.dot(h.astype(jnp.bfloat16), w2_ref[...],
                          preferred_element_type=jnp.float32) + b2_ref[...])


# ------------------------------ wrappers ------------------------------------

def bilstm_layer(x_seq, pf, pb):
    """One bidirectional LSTM layer.  x_seq: (T, B, D) -> (2, T, B, H) f32."""
    t_len, batch, d_in = x_seq.shape
    hidden = pf["w_hh"].shape[1]
    g4 = 4 * hidden

    # Fused-gate weights: (D, 4H)/(H, 4H), PyTorch gate order i,f,g,o on columns.
    wih_cat = jnp.concatenate([pf["w_ih"].T, pb["w_ih"].T], axis=1)         # (D, 8H)
    b_cat = jnp.concatenate([pf["b_ih"] + pf["b_hh"],
                             pb["b_ih"] + pb["b_hh"]]).reshape(1, 2 * g4)   # (1, 8H)
    whh = jnp.stack([pf["w_hh"].T, pb["w_hh"].T])                           # (2, H, 4H)

    # Hoisted input projection: one lane-dense (T*B, D) @ (D, 8H) matmul covering
    # all timesteps and both directions (removes 4*T tiny matmuls from the loop).
    xg = pl.pallas_call(
        _matmul_bias_kernel,
        out_shape=jax.ShapeDtypeStruct((t_len * batch, 2 * g4), jnp.float32),
        in_specs=[pl.BlockSpec(memory_space=pltpu.MemorySpace.VMEM)] * 3,
        out_specs=pl.BlockSpec(memory_space=pltpu.MemorySpace.VMEM),
    )(x_seq.reshape(t_len * batch, d_in).astype(jnp.bfloat16),
      wih_cat.astype(jnp.bfloat16), b_cat.astype(jnp.float32))
    xg = xg.reshape(t_len, batch, 2, g4).transpose(2, 0, 1, 3)              # (2,T,B,4H)

    # Both directions on a parallel grid axis (sharded across TensorCores on v7x);
    # reversal handled by t = T-1-s index math inside the kernel (no [::-1] copies).
    return pl.pallas_call(
        _bilstm_kernel,
        out_shape=jax.ShapeDtypeStruct((2, t_len, batch, hidden), jnp.float32),
        grid=(2,),
        in_specs=[pl.BlockSpec((None, t_len, batch, g4), lambda d: (d, 0, 0, 0)),
                  pl.BlockSpec((None, hidden, g4), lambda d: (d, 0, 0))],
        out_specs=pl.BlockSpec((None, t_len, batch, hidden),
                               lambda d: (d, 0, 0, 0)),
        scratch_shapes=[pltpu.VMEM((batch, hidden), jnp.float32),
                        pltpu.VMEM((batch, hidden), jnp.float32)],
        compiler_params=pltpu.CompilerParams(
            dimension_semantics=("parallel",)),
    )(xg, whh.astype(jnp.bfloat16))


def classifier(feat, fc1_w, fc1_b, fc2_w, fc2_b):
    b = feat.shape[0]
    hid = fc1_w.shape[0]
    ncls = fc2_w.shape[0]
    return pl.pallas_call(
        _classifier_kernel,
        out_shape=jax.ShapeDtypeStruct((b, ncls), jnp.float32),
        in_specs=[pl.BlockSpec(memory_space=pltpu.MemorySpace.VMEM)] * 5,
        out_specs=pl.BlockSpec(memory_space=pltpu.MemorySpace.VMEM),
    )(feat.astype(jnp.bfloat16),
      fc1_w.T.astype(jnp.bfloat16), fc1_b.reshape(1, hid).astype(jnp.float32),
      fc2_w.T.astype(jnp.bfloat16), fc2_b.reshape(1, ncls).astype(jnp.float32))


# ------------------------------ JAX glue ------------------------------------

def im2col_spatial(x, k, stride, pad):
    """x: (C, B, S, T) channel-major -> cols (C*k, B*S_out*T) for a (k,1) conv."""
    c, b, s, t = x.shape
    xp = jnp.pad(x, ((0, 0), (0, 0), (pad, pad), (0, 0)))
    s_out = conv_out_size(s, k, stride, pad)
    idx = jnp.arange(s_out)[:, None] * stride + jnp.arange(k)[None, :]
    patches = xp[:, :, idx, :]                          # (C, B, S_out, k, T)
    patches = jnp.transpose(patches, (0, 3, 1, 2, 4))   # (C, k, B, S_out, T)
    return patches.reshape(c * k, b * s_out * t), s_out


def im2col_temporal(x, k, stride, pad):
    """x: (C, B, L) channel-major -> cols (C*k, B*L_out)."""
    c, b, l = x.shape
    xp = jnp.pad(x, ((0, 0), (0, 0), (pad, pad)))
    l_out = conv_out_size(l, k, stride, pad)
    idx = jnp.arange(l_out)[:, None] * stride + jnp.arange(k)[None, :]
    patches = xp[:, :, idx]                             # (C, B, L_out, k)
    patches = jnp.transpose(patches, (0, 3, 1, 2))      # (C, k, B, L_out)
    return patches.reshape(c * k, b * l_out), l_out


def fold_bn(conv_bias, gamma, beta, mean, var):
    scale = gamma / jnp.sqrt(var + EPS)
    bias = beta + scale * (conv_bias - mean)
    return scale, bias


def init_params(key, flat_dim, hidden, num_classes):
    keys = iter(jax.random.split(key, 64))

    def nrm(shape, scale=0.05):
        return scale * jax.random.normal(next(keys), shape, jnp.float32)

    def conv_block(c_in, c_out, k, is2d):
        w_shape = (c_out, c_in, k, 1) if is2d else (c_out, c_in, k)
        return dict(w=nrm(w_shape), b=nrm((c_out,)),
                    gamma=jnp.ones((c_out,), jnp.float32),
                    beta=jnp.zeros((c_out,), jnp.float32),
                    mean=jnp.zeros((c_out,), jnp.float32),
                    var=jnp.ones((c_out,), jnp.float32))

    params = dict(
        spatial=[conv_block(ci, co, k, True) for (ci, co, k, _, _) in SPATIAL_CFG],
        temporal=[conv_block(flat_dim, 128, TEMPORAL_KSP[0][0], False),
                  conv_block(128, 64, TEMPORAL_KSP[1][0], False)],
        lstm=[],
        fc1_w=nrm((hidden, 2 * hidden)), fc1_b=nrm((hidden,)),
        fc2_w=nrm((num_classes, hidden)), fc2_b=nrm((num_classes,)),
    )
    in_sizes = [64, 2 * hidden]
    for layer in range(2):
        for _direction in range(2):
            d = in_sizes[layer]
            params["lstm"].append(dict(
                w_ih=nrm((4 * hidden, d)), w_hh=nrm((4 * hidden, hidden)),
                b_ih=nrm((4 * hidden,)), b_hh=nrm((4 * hidden,))))
    return params


def forward(x, params):
    batch = x.shape[0]
    time_steps = x.shape[3]

    # Channel-major (C, B, S, T) layout between conv layers: the lane-dense
    # (c_out, M) matmul output is already in this layout (no per-layer relayout).
    h = jnp.transpose(x, (1, 0, 2, 3)).astype(jnp.float32)      # (1, B, S, T)

    # ---- spatial Conv2d + BN + ReLU stack (Dropout2d = eval no-op) ----
    for (_, _, k, stride, pad), p in zip(SPATIAL_CFG, params["spatial"]):
        c_out, c_in = p["w"].shape[0], p["w"].shape[1]
        cols, s_out = im2col_spatial(h, k, stride, pad)
        w2d = p["w"].reshape(c_out, c_in * k)
        scale, bias = fold_bn(p["b"], p["gamma"], p["beta"], p["mean"], p["var"])
        y = conv_affine_relu(w2d, cols, scale, bias)            # (c_out, B*S_out*T)
        h = y.reshape(c_out, batch, s_out, time_steps)

    # torch .view(B, C*S_out, T): 1-D channel index = c*S_out + s (channel-major).
    c_last, _, s_last, _ = h.shape
    h = jnp.transpose(h, (0, 2, 1, 3)).reshape(c_last * s_last, batch, time_steps)

    # ---- temporal Conv1d + BN + ReLU stack (Dropout = eval no-op) ----
    for (k, stride, pad), p in zip(TEMPORAL_KSP, params["temporal"]):
        c_out, c_in = p["w"].shape[0], p["w"].shape[1]
        cols, l_out = im2col_temporal(h, k, stride, pad)
        w2d = p["w"].reshape(c_out, c_in * k)
        scale, bias = fold_bn(p["b"], p["gamma"], p["beta"], p["mean"], p["var"])
        y = conv_affine_relu(w2d, cols, scale, bias)            # (c_out, B*L_out)
        h = y.reshape(c_out, batch, l_out)

    # ---- bidirectional 2-layer LSTM over (T, B, 64) ----
    # TODO(synk): inter-layer LSTM dropout is a no-op in eval mode (not applied).
    seq = jnp.transpose(h, (2, 1, 0)).astype(jnp.bfloat16)      # (T, B, 64)
    for layer in range(2):
        out = bilstm_layer(seq, params["lstm"][2 * layer],
                           params["lstm"][2 * layer + 1])       # (2, T, B, H)
        seq = jnp.concatenate([out[0], out[1]], axis=-1).astype(jnp.bfloat16)

    feat = seq[-1]                                              # lstm_out[:, -1, :]

    # ---- fused classifier (Dropouts = eval no-ops) ----
    return classifier(feat, params["fc1_w"], params["fc1_b"],
                      params["fc2_w"], params["fc2_b"])


if __name__ == "__main__":
    # Small shapes consistent with the module's structure.
    batch, sensors, time_steps = 2, 32, 128
    hidden, num_classes = 32, 4

    # Mirrors _calculate_spatial_output_size: 64 channels * reduced sensors.
    s_cur = sensors
    for (_, _, k, stride, pad) in SPATIAL_CFG:
        s_cur = conv_out_size(s_cur, k, stride, pad)
    flat_dim = 64 * s_cur                                       # 128 here

    key = jax.random.PRNGKey(0)
    k_x, k_p = jax.random.split(key)
    x = jax.random.normal(k_x, (batch, 1, sensors, time_steps), jnp.float32)
    params = init_params(k_p, flat_dim, hidden, num_classes)

    fwd = jax.jit(forward)
    logits = jax.block_until_ready(fwd(x, params))

    assert logits.shape == (batch, num_classes), logits.shape
    assert bool(jnp.all(jnp.isfinite(logits)))
    print("KERNEL_OK")
</pallas_src>

<mosaic_0001>
module attributes {stable_mosaic.version = 11 : i64} {
  func.func @_conv_affine_relu_kernel(%arg0: i32, %arg1: memref<16x16xbf16, #tpu.memory_space<vmem>>, %arg2: memref<16x1024xbf16, #tpu.memory_space<vmem>>, %arg3: memref<16x1xf32, #tpu.memory_space<vmem>>, %arg4: memref<16x1xf32, #tpu.memory_space<vmem>>, %arg5: memref<16x1024xf32, #tpu.memory_space<vmem>>) attributes {dimension_semantics = [#tpu.dimension_semantics<parallel>], iteration_bounds = array<i64: 2>, scalar_prefetch = 0 : i64, scratch_operands = 0 : i64, tpu.core_type = #tpu.core_type<tc>, window_params = [{pipeline_mode = #tpu.pipeline_mode<synchronous>, transform_indices = @transform_0, window_bounds = array<i64: 16, 16>}, {transform_indices = @transform_1, window_bounds = array<i64: 16, 1024>}, {pipeline_mode = #tpu.pipeline_mode<synchronous>, transform_indices = @transform_2, window_bounds = array<i64: 16, 1>}, {pipeline_mode = #tpu.pipeline_mode<synchronous>, transform_indices = @transform_3, window_bounds = array<i64: 16, 1>}, {transform_indices = @transform_4, window_bounds = array<i64: 16, 1024>}]} {
    %c0 = arith.constant 0 : index
    %c0_0 = arith.constant 0 : index
    %0 = vector.load %arg1[%c0, %c0_0] : memref<16x16xbf16, #tpu.memory_space<vmem>>, vector<16x16xbf16>
    %c0_1 = arith.constant 0 : index
    %c0_2 = arith.constant 0 : index
    %1 = vector.load %arg2[%c0_1, %c0_2] : memref<16x1024xbf16, #tpu.memory_space<vmem>>, vector<16x1024xbf16>
    %cst = arith.constant dense<0.000000e+00> : vector<16x1024xf32>
    %2 = tpu.matmul %0, %1, %cst {dimension_numbers = #tpu.dot_dimension_numbers<[1], [0], [0], [1], [0, 0, 1, 1], [], []>} : vector<16x16xbf16>, vector<16x1024xbf16>, vector<16x1024xf32> -> vector<16x1024xf32>
    %c0_3 = arith.constant 0 : index
    %c0_4 = arith.constant 0 : index
    %3 = vector.load %arg3[%c0_3, %c0_4] : memref<16x1xf32, #tpu.memory_space<vmem>>, vector<16x1xf32>
    %4 = vector.broadcast %3 : vector<16x1xf32> to vector<16x1024xf32>
    %5 = arith.mulf %2, %4 : vector<16x1024xf32>
    %c0_5 = arith.constant 0 : index
    %c0_6 = arith.constant 0 : index
    %6 = vector.load %arg4[%c0_5, %c0_6] : memref<16x1xf32, #tpu.memory_space<vmem>>, vector<16x1xf32>
    %7 = vector.broadcast %6 : vector<16x1xf32> to vector<16x1024xf32>
    %8 = arith.addf %5, %7 : vector<16x1024xf32>
    %cst_7 = arith.constant 0.000000e+00 : f32
    %9 = vector.broadcast %cst_7 : f32 to vector<16x1024xf32>
    %10 = arith.maximumf %8, %9 : vector<16x1024xf32>
    %c0_8 = arith.constant 0 : index
    %c0_9 = arith.constant 0 : index
    %11 = vector.load %arg5[%c0_8, %c0_9] : memref<16x1024xf32, #tpu.memory_space<vmem>>, vector<16x1024xf32>
    tpu.vector_store %arg5[%c0_8, %c0_9], %10 {strides = array<i32>} : memref<16x1024xf32, #tpu.memory_space<vmem>>, vector<16x1024xf32>,
    return
  }
  func.func @transform_0(%arg0: i32) -> (i32, i32) {
    %c0_i32 = arith.constant 0 : i32
    %c0_i32_0 = arith.constant 0 : i32
    %c0_i32_1 = arith.constant 0 : i32
    return %c0_i32, %c0_i32_0 : i32, i32
  }
  func.func @transform_1(%arg0: i32) -> (i32, i32) {
    %c0_i32 = arith.constant 0 : i32
    %c0_i32_0 = arith.constant 0 : i32
    return %c0_i32, %arg0 : i32, i32
  }
  func.func @transform_2(%arg0: i32) -> (i32, i32) {
    %c0_i32 = arith.constant 0 : i32
    %c0_i32_0 = arith.constant 0 : i32
    %c0_i32_1 = arith.constant 0 : i32
    return %c0_i32, %c0_i32_0 : i32, i32
  }
  func.func @transform_3(%arg0: i32) -> (i32, i32) {
    %c0_i32 = arith.constant 0 : i32
    %c0_i32_0 = arith.constant 0 : i32
    %c0_i32_1 = arith.constant 0 : i32
    return %c0_i32, %c0_i32_0 : i32, i32
  }
  func.func @transform_4(%arg0: i32) -> (i32, i32) {
    %c0_i32 = arith.constant 0 : i32
    %c0_i32_0 = arith.constant 0 : i32
    return %c0_i32, %arg0 : i32, i32
  }
}

module attributes {stable_mosaic.version = 11 : i64} {
  func.func @_conv_affine_relu_kernel(%arg0: i32, %arg1: memref<32x128xbf16, #tpu.memory_space<vmem>>, %arg2: memref<128x1024xbf16, #tpu.memory_space<vmem>>, %arg3: memref<32x1xf32, #tpu.memory_space<vmem>>, %arg4: memref<32x1xf32, #tpu.memory_space<vmem>>, %arg5: memref<32x1024xf32, #tpu.memory_space<vmem>>) attributes {dimension_semantics = [#tpu.dimension_semantics<parallel>], iteration_bounds = array<i64: 1>, scalar_prefetch = 0 : i64, scratch_operands = 0 : i64, tpu.core_type = #tpu.core_type<tc>, window_params = [{pipeline_mode = #tpu.pipeline_mode<synchronous>, transform_indices = @transform_0, window_bounds = array<i64: 32, 128>}, {transform_indices = @transform_1, window_bounds = array<i64: 128, 1024>}, {pipeline_mode = #tpu.pipeline_mode<synchronous>, transform_indices = @transform_2, window_bounds = array<i64: 32, 1>}, {pipeline_mode = #tpu.pipeline_mode<synchronous>, transform_indices = @transform_3, window_bounds = array<i64: 32, 1>}, {transform_indices = @transform_4, window_bounds = array<i64: 32, 1024>}]} {
    %c0 = arith.constant 0 : index
    %c0_0 = arith.constant 0 : index
    %0 = vector.load %arg1[%c0, %c0_0] : memref<32x128xbf16, #tpu.memory_space<vmem>>, vector<32x128xbf16>
    %c0_1 = arith.constant 0 : index
    %c0_2 = arith.constant 0 : index
    %1 = vector.load %arg2[%c0_1, %c0_2] : memref<128x1024xbf16, #tpu.memory_space<vmem>>, vector<128x1024xbf16>
    %cst = arith.constant dense<0.000000e+00> : vector<32x1024xf32>
    %2 = tpu.matmul %0, %1, %cst {dimension_numbers = #tpu.dot_dimension_numbers<[1], [0], [0], [1], [0, 0, 1, 1], [], []>} : vector<32x128xbf16>, vector<128x1024xbf16>, vector<32x1024xf32> -> vector<32x1024xf32>
    %c0_3 = arith.constant 0 : index
    %c0_4 = arith.constant 0 : index
    %3 = vector.load %arg3[%c0_3, %c0_4] : memref<32x1xf32, #tpu.memory_space<vmem>>, vector<32x1xf32>
    %4 = vector.broadcast %3 : vector<32x1xf32> to vector<32x1024xf32>
    %5 = arith.mulf %2, %4 : vector<32x1024xf32>
    %c0_5 = arith.constant 0 : index
    %c0_6 = arith.constant 0 : index
    %6 = vector.load %arg4[%c0_5, %c0_6] : memref<32x1xf32, #tpu.memory_space<vmem>>, vector<32x1xf32>
    %7 = vector.broadcast %6 : vector<32x1xf32> to vector<32x1024xf32>
    %8 = arith.addf %5, %7 : vector<32x1024xf32>
    %cst_7 = arith.constant 0.000000e+00 : f32
    %9 = vector.broadcast %cst_7 : f32 to vector<32x1024xf32>
    %10 = arith.maximumf %8, %9 : vector<32x1024xf32>
    %c0_8 = arith.constant 0 : index
    %c0_9 = arith.constant 0 : index
    %11 = vector.load %arg5[%c0_8, %c0_9] : memref<32x1024xf32, #tpu.memory_space<vmem>>, vector<32x1024xf32>
    tpu.vector_store %arg5[%c0_8, %c0_9], %10 {strides = array<i32>} : memref<32x1024xf32, #tpu.memory_space<vmem>>, vector<32x1024xf32>,
    return
  }
  func.func @transform_0(%arg0: i32) -> (i32, i32) {
    %c0_i32 = arith.constant 0 : i32
    %c0_i32_0 = arith.constant 0 : i32
    %c0_i32_1 = arith.constant 0 : i32
    return %c0_i32, %c0_i32_0 : i32, i32
  }
  func.func @transform_1(%arg0: i32) -> (i32, i32) {
    %c0_i32 = arith.constant 0 : i32
    %c0_i32_0 = arith.constant 0 : i32
    return %c0_i32, %arg0 : i32, i32
  }
  func.func @transform_2(%arg0: i32) -> (i32, i32) {
    %c0_i32 = arith.constant 0 : i32
    %c0_i32_0 = arith.constant 0 : i32
    %c0_i32_1 = arith.constant 0 : i32
    return %c0_i32, %c0_i32_0 : i32, i32
  }
  func.func @transform_3(%arg0: i32) -> (i32, i32) {
    %c0_i32 = arith.constant 0 : i32
    %c0_i32_0 = arith.constant 0 : i32
    %c0_i32_1 = arith.constant 0 : i32
    return %c0_i32, %c0_i32_0 : i32, i32
  }
  func.func @transform_4(%arg0: i32) -> (i32, i32) {
    %c0_i32 = arith.constant 0 : i32
    %c0_i32_0 = arith.constant 0 : i32
    return %c0_i32, %arg0 : i32, i32
  }
}

module attributes {stable_mosaic.version = 11 : i64} {
  func.func @_conv_affine_relu_kernel(%arg0: i32, %arg1: memref<64x128xbf16, #tpu.memory_space<vmem>>, %arg2: memref<128x512xbf16, #tpu.memory_space<vmem>>, %arg3: memref<64x1xf32, #tpu.memory_space<vmem>>, %arg4: memref<64x1xf32, #tpu.memory_space<vmem>>, %arg5: memref<64x512xf32, #tpu.memory_space<vmem>>) attributes {dimension_semantics = [#tpu.dimension_semantics<parallel>], iteration_bounds = array<i64: 1>, scalar_prefetch = 0 : i64, scratch_operands = 0 : i64, tpu.core_type = #tpu.core_type<tc>, window_params = [{pipeline_mode = #tpu.pipeline_mode<synchronous>, transform_indices = @transform_0, window_bounds = array<i64: 64, 128>}, {transform_indices = @transform_1, window_bounds = array<i64: 128, 512>}, {pipeline_mode = #tpu.pipeline_mode<synchronous>, transform_indices = @transform_2, window_bounds = array<i64: 64, 1>}, {pipeline_mode = #tpu.pipeline_mode<synchronous>, transform_indices = @transform_3, window_bounds = array<i64: 64, 1>}, {transform_indices = @transform_4, window_bounds = array<i64: 64, 512>}]} {
    %c0 = arith.constant 0 : index
    %c0_0 = arith.constant 0 : index
    %0 = vector.load %arg1[%c0, %c0_0] : memref<64x128xbf16, #tpu.memory_space<vmem>>, vector<64x128xbf16>
    %c0_1 = arith.constant 0 : index
    %c0_2 = arith.constant 0 : index
    %1 = vector.load %arg2[%c0_1, %c0_2] : memref<128x512xbf16, #tpu.memory_space<vmem>>, vector<128x512xbf16>
    %cst = arith.constant dense<0.000000e+00> : vector<64x512xf32>
    %2 = tpu.matmul %0, %1, %cst {dimension_numbers = #tpu.dot_dimension_numbers<[1], [0], [0], [1], [0, 0, 1, 1], [], []>} : vector<64x128xbf16>, vector<128x512xbf16>, vector<64x512xf32> -> vector<64x512xf32>
    %c0_3 = arith.constant 0 : index
    %c0_4 = arith.constant 0 : index
    %3 = vector.load %arg3[%c0_3, %c0_4] : memref<64x1xf32, #tpu.memory_space<vmem>>, vector<64x1xf32>
    %4 = vector.broadcast %3 : vector<64x1xf32> to vector<64x512xf32>
    %5 = arith.mulf %2, %4 : vector<64x512xf32>
    %c0_5 = arith.constant 0 : index
    %c0_6 = arith.constant 0 : index
    %6 = vector.load %arg4[%c0_5, %c0_6] : memref<64x1xf32, #tpu.memory_space<vmem>>, vector<64x1xf32>
    %7 = vector.broadcast %6 : vector<64x1xf32> to vector<64x512xf32>
    %8 = arith.addf %5, %7 : vector<64x512xf32>
    %cst_7 = arith.constant 0.000000e+00 : f32
    %9 = vector.broadcast %cst_7 : f32 to vector<64x512xf32>
    %10 = arith.maximumf %8, %9 : vector<64x512xf32>
    %c0_8 = arith.constant 0 : index
    %c0_9 = arith.constant 0 : index
    %11 = vector.load %arg5[%c0_8, %c0_9] : memref<64x512xf32, #tpu.memory_space<vmem>>, vector<64x512xf32>
    tpu.vector_store %arg5[%c0_8, %c0_9], %10 {strides = array<i32>} : memref<64x512xf32, #tpu.memory_space<vmem>>, vector<64x512xf32>,
    return
  }
  func.func @transform_0(%arg0: i32) -> (i32, i32) {
    %c0_i32 = arith.constant 0 : i32
    %c0_i32_0 = arith.constant 0 : i32
    %c0_i32_1 = arith.constant 0 : i32
    return %c0_i32, %c0_i32_0 : i32, i32
  }
  func.func @transform_1(%arg0: i32) -> (i32, i32) {
    %c0_i32 = arith.constant 0 : i32
    %c0_i32_0 = arith.constant 0 : i32
    return %c0_i32, %arg0 : i32, i32
  }
  func.func @transform_2(%arg0: i32) -> (i32, i32) {
    %c0_i32 = arith.constant 0 : i32
    %c0_i32_0 = arith.constant 0 : i32
    %c0_i32_1 = arith.constant 0 : i32
    return %c0_i32, %c0_i32_0 : i32, i32
  }
  func.func @transform_3(%arg0: i32) -> (i32, i32) {
    %c0_i32 = arith.constant 0 : i32
    %c0_i32_0 = arith.constant 0 : i32
    %c0_i32_1 = arith.constant 0 : i32
    return %c0_i32, %c0_i32_0 : i32, i32
  }
  func.func @transform_4(%arg0: i32) -> (i32, i32) {
    %c0_i32 = arith.constant 0 : i32
    %c0_i32_0 = arith.constant 0 : i32
    return %c0_i32, %arg0 : i32, i32
  }
}

module attributes {stable_mosaic.version = 11 : i64} {
  func.func @_conv_affine_relu_kernel(%arg0: i32, %arg1: memref<128x2048xbf16, #tpu.memory_space<vmem>>, %arg2: memref<2048x32xbf16, #tpu.memory_space<vmem>>, %arg3: memref<128x1xf32, #tpu.memory_space<vmem>>, %arg4: memref<128x1xf32, #tpu.memory_space<vmem>>, %arg5: memref<128x32xf32, #tpu.memory_space<vmem>>) attributes {dimension_semantics = [#tpu.dimension_semantics<parallel>], iteration_bounds = array<i64: 1>, scalar_prefetch = 0 : i64, scratch_operands = 0 : i64, tpu.core_type = #tpu.core_type<tc>, window_params = [{pipeline_mode = #tpu.pipeline_mode<synchronous>, transform_indices = @transform_0, window_bounds = array<i64: 128, 2048>}, {transform_indices = @transform_1, window_bounds = array<i64: 2048, 32>}, {pipeline_mode = #tpu.pipeline_mode<synchronous>, transform_indices = @transform_2, window_bounds = array<i64: 128, 1>}, {pipeline_mode = #tpu.pipeline_mode<synchronous>, transform_indices = @transform_3, window_bounds = array<i64: 128, 1>}, {transform_indices = @transform_4, window_bounds = array<i64: 128, 32>}]} {
    %c0 = arith.constant 0 : index
    %c0_0 = arith.constant 0 : index
    %0 = vector.load %arg1[%c0, %c0_0] : memref<128x2048xbf16, #tpu.memory_space<vmem>>, vector<128x2048xbf16>
    %c0_1 = arith.constant 0 : index
    %c0_2 = arith.constant 0 : index
    %1 = vector.load %arg2[%c0_1, %c0_2] : memref<2048x32xbf16, #tpu.memory_space<vmem>>, vector<2048x32xbf16>
    %cst = arith.constant dense<0.000000e+00> : vector<128x32xf32>
    %2 = tpu.matmul %0, %1, %cst {dimension_numbers = #tpu.dot_dimension_numbers<[1], [0], [0], [1], [0, 0, 1, 1], [], []>} : vector<128x2048xbf16>, vector<2048x32xbf16>, vector<128x32xf32> -> vector<128x32xf32>
    %c0_3 = arith.constant 0 : index
    %c0_4 = arith.constant 0 : index
    %3 = vector.load %arg3[%c0_3, %c0_4] : memref<128x1xf32, #tpu.memory_space<vmem>>, vector<128x1xf32>
    %4 = vector.broadcast %3 : vector<128x1xf32> to vector<128x32xf32>
    %5 = arith.mulf %2, %4 : vector<128x32xf32>
    %c0_5 = arith.constant 0 : index
    %c0_6 = arith.constant 0 : index
    %6 = vector.load %arg4[%c0_5, %c0_6] : memref<128x1xf32, #tpu.memory_space<vmem>>, vector<128x1xf32>
    %7 = vector.broadcast %6 : vector<128x1xf32> to vector<128x32xf32>
    %8 = arith.addf %5, %7 : vector<128x32xf32>
    %cst_7 = arith.constant 0.000000e+00 : f32
    %9 = vector.broadcast %cst_7 : f32 to vector<128x32xf32>
    %10 = arith.maximumf %8, %9 : vector<128x32xf32>
    %c0_8 = arith.constant 0 : index
    %c0_9 = arith.constant 0 : index
    %11 = vector.load %arg5[%c0_8, %c0_9] : memref<128x32xf32, #tpu.memory_space<vmem>>, vector<128x32xf32>
    tpu.vector_store %arg5[%c0_8, %c0_9], %10 {strides = array<i32>} : memref<128x32xf32, #tpu.memory_space<vmem>>, vector<128x32xf32>,
    return
  }
  func.func @transform_0(%arg0: i32) -> (i32, i32) {
    %c0_i32 = arith.constant 0 : i32
    %c0_i32_0 = arith.constant 0 : i32
    %c0_i32_1 = arith.constant 0 : i32
    return %c0_i32, %c0_i32_0 : i32, i32
  }
  func.func @transform_1(%arg0: i32) -> (i32, i32) {
    %c0_i32 = arith.constant 0 : i32
    %c0_i32_0 = arith.constant 0 : i32
    return %c0_i32, %arg0 : i32, i32
  }
  func.func @transform_2(%arg0: i32) -> (i32, i32) {
    %c0_i32 = arith.constant 0 : i32
    %c0_i32_0 = arith.constant 0 : i32
    %c0_i32_1 = arith.constant 0 : i32
    return %c0_i32, %c0_i32_0 : i32, i32
  }
  func.func @transform_3(%arg0: i32) -> (i32, i32) {
    %c0_i32 = arith.constant 0 : i32
    %c0_i32_0 = arith.constant 0 : i32
    %c0_i32_1 = arith.constant 0 : i32
    return %c0_i32, %c0_i32_0 : i32, i32
  }
  func.func @transform_4(%arg0: i32) -> (i32, i32) {
    %c0_i32 = arith.constant 0 : i32
    %c0_i32_0 = arith.constant 0 : i32
    return %c0_i32, %arg0 : i32, i32
  }
}

module attributes {stable_mosaic.version = 11 : i64} {
  func.func @_conv_affine_relu_kernel(%arg0: i32, %arg1: memref<64x1024xbf16, #tpu.memory_space<vmem>>, %arg2: memref<1024x8xbf16, #tpu.memory_space<vmem>>, %arg3: memref<64x1xf32, #tpu.memory_space<vmem>>, %arg4: memref<64x1xf32, #tpu.memory_space<vmem>>, %arg5: memref<64x8xf32, #tpu.memory_space<vmem>>) attributes {dimension_semantics = [#tpu.dimension_semantics<parallel>], iteration_bounds = array<i64: 1>, scalar_prefetch = 0 : i64, scratch_operands = 0 : i64, tpu.core_type = #tpu.core_type<tc>, window_params = [{pipeline_mode = #tpu.pipeline_mode<synchronous>, transform_indices = @transform_0, window_bounds = array<i64: 64, 1024>}, {transform_indices = @transform_1, window_bounds = array<i64: 1024, 8>}, {pipeline_mode = #tpu.pipeline_mode<synchronous>, transform_indices = @transform_2, window_bounds = array<i64: 64, 1>}, {pipeline_mode = #tpu.pipeline_mode<synchronous>, transform_indices = @transform_3, window_bounds = array<i64: 64, 1>}, {transform_indices = @transform_4, window_bounds = array<i64: 64, 8>}]} {
    %c0 = arith.constant 0 : index
    %c0_0 = arith.constant 0 : index
    %0 = vector.load %arg1[%c0, %c0_0] : memref<64x1024xbf16, #tpu.memory_space<vmem>>, vector<64x1024xbf16>
    %c0_1 = arith.constant 0 : index
    %c0_2 = arith.constant 0 : index
    %1 = vector.load %arg2[%c0_1, %c0_2] : memref<1024x8xbf16, #tpu.memory_space<vmem>>, vector<1024x8xbf16>
    %cst = arith.constant dense<0.000000e+00> : vector<64x8xf32>
    %2 = tpu.matmul %0, %1, %cst {dimension_numbers = #tpu.dot_dimension_numbers<[1], [0], [0], [1], [0, 0, 1, 1], [], []>} : vector<64x1024xbf16>, vector<1024x8xbf16>, vector<64x8xf32> -> vector<64x8xf32>
    %c0_3 = arith.constant 0 : index
    %c0_4 = arith.constant 0 : index
    %3 = vector.load %arg3[%c0_3, %c0_4] : memref<64x1xf32, #tpu.memory_space<vmem>>, vector<64x1xf32>
    %4 = vector.broadcast %3 : vector<64x1xf32> to vector<64x8xf32>
    %5 = arith.mulf %2, %4 : vector<64x8xf32>
    %c0_5 = arith.constant 0 : index
    %c0_6 = arith.constant 0 : index
    %6 = vector.load %arg4[%c0_5, %c0_6] : memref<64x1xf32, #tpu.memory_space<vmem>>, vector<64x1xf32>
    %7 = vector.broadcast %6 : vector<64x1xf32> to vector<64x8xf32>
    %8 = arith.addf %5, %7 : vector<64x8xf32>
    %cst_7 = arith.constant 0.000000e+00 : f32
    %9 = vector.broadcast %cst_7 : f32 to vector<64x8xf32>
    %10 = arith.maximumf %8, %9 : vector<64x8xf32>
    %c0_8 = arith.constant 0 : index
    %c0_9 = arith.constant 0 : index
    %11 = vector.load %arg5[%c0_8, %c0_9] : memref<64x8xf32, #tpu.memory_space<vmem>>, vector<64x8xf32>
    tpu.vector_store %arg5[%c0_8, %c0_9], %10 {strides = array<i32>} : memref<64x8xf32, #tpu.memory_space<vmem>>, vector<64x8xf32>,
    return
  }
  func.func @transform_0(%arg0: i32) -> (i32, i32) {
    %c0_i32 = arith.constant 0 : i32
    %c0_i32_0 = arith.constant 0 : i32
    %c0_i32_1 = arith.constant 0 : i32
    return %c0_i32, %c0_i32_0 : i32, i32
  }
  func.func @transform_1(%arg0: i32) -> (i32, i32) {
    %c0_i32 = arith.constant 0 : i32
    %c0_i32_0 = arith.constant 0 : i32
    return %c0_i32, %arg0 : i32, i32
  }
  func.func @transform_2(%arg0: i32) -> (i32, i32) {
    %c0_i32 = arith.constant 0 : i32
    %c0_i32_0 = arith.constant 0 : i32
    %c0_i32_1 = arith.constant 0 : i32
    return %c0_i32, %c0_i32_0 : i32, i32
  }
  func.func @transform_3(%arg0: i32) -> (i32, i32) {
    %c0_i32 = arith.constant 0 : i32
    %c0_i32_0 = arith.constant 0 : i32
    %c0_i32_1 = arith.constant 0 : i32
    return %c0_i32, %c0_i32_0 : i32, i32
  }
  func.func @transform_4(%arg0: i32) -> (i32, i32) {
    %c0_i32 = arith.constant 0 : i32
    %c0_i32_0 = arith.constant 0 : i32
    return %c0_i32, %arg0 : i32, i32
  }
}

module attributes {stable_mosaic.version = 11 : i64} {
  func.func @_matmul_bias_kernel(%arg0: memref<8x64xbf16, #tpu.memory_space<vmem>>, %arg1: memref<64x256xbf16, #tpu.memory_space<vmem>>, %arg2: memref<1x256xf32, #tpu.memory_space<vmem>>, %arg3: memref<8x256xf32, #tpu.memory_space<vmem>>) attributes {dimension_semantics = [], scalar_prefetch = 0 : i64, scratch_operands = 0 : i64, tpu.core_type = #tpu.core_type<tc>} {
    %c0 = arith.constant 0 : index
    %c0_0 = arith.constant 0 : index
    %0 = vector.load %arg0[%c0, %c0_0] : memref<8x64xbf16, #tpu.memory_space<vmem>>, vector<8x64xbf16>
    %c0_1 = arith.constant 0 : index
    %c0_2 = arith.constant 0 : index
    %1 = vector.load %arg1[%c0_1, %c0_2] : memref<64x256xbf16, #tpu.memory_space<vmem>>, vector<64x256xbf16>
    %cst = arith.constant dense<0.000000e+00> : vector<8x256xf32>
    %2 = tpu.matmul %0, %1, %cst {dimension_numbers = #tpu.dot_dimension_numbers<[1], [0], [0], [1], [0, 0, 1, 1], [], []>} : vector<8x64xbf16>, vector<64x256xbf16>, vector<8x256xf32> -> vector<8x256xf32>
    %c0_3 = arith.constant 0 : index
    %c0_4 = arith.constant 0 : index
    %3 = vector.load %arg2[%c0_3, %c0_4] : memref<1x256xf32, #tpu.memory_space<vmem>>, vector<1x256xf32>
    %4 = vector.broadcast %3 : vector<1x256xf32> to vector<8x256xf32>
    %5 = arith.addf %2, %4 : vector<8x256xf32>
    %c0_5 = arith.constant 0 : index
    %c0_6 = arith.constant 0 : index
    %6 = vector.load %arg3[%c0_5, %c0_6] : memref<8x256xf32, #tpu.memory_space<vmem>>, vector<8x256xf32>
    tpu.vector_store %arg3[%c0_5, %c0_6], %5 {strides = array<i32>} : memref<8x256xf32, #tpu.memory_space<vmem>>, vector<8x256xf32>,
    return
  }
}

module attributes {stable_mosaic.version = 11 : i64} {
  func.func @_bilstm_kernel(%arg0: i32, %arg1: memref<1x4x2x128xf32, #tpu.memory_space<vmem>>, %arg2: memref<1x32x128xbf16, #tpu.memory_space<vmem>>, %arg3: memref<1x4x2x32xf32, #tpu.memory_space<vmem>>, %arg4: memref<2x32xf32, #tpu.memory_space<vmem>>, %arg5: memref<2x32xf32, #tpu.memory_space<vmem>>) attributes {dimension_semantics = [#tpu.dimension_semantics<parallel>], iteration_bounds = array<i64: 2>, scalar_prefetch = 0 : i64, scratch_operands = 2 : i64, tpu.core_type = #tpu.core_type<tc>, window_params = [{transform_indices = @transform_0, window_bounds = array<i64: 1, 4, 2, 128>}, {transform_indices = @transform_1, window_bounds = array<i64: 1, 32, 128>}, {transform_indices = @transform_2, window_bounds = array<i64: 1, 4, 2, 32>}]} {
    %c0_i32 = arith.constant 0 : i32
    %0 = arith.cmpi eq, %arg0, %c0_i32 : i32
    %cst = arith.constant 0.000000e+00 : f32
    %1 = vector.broadcast %cst : f32 to vector<2x32xf32>
    %c0 = arith.constant 0 : index
    %c0_0 = arith.constant 0 : index
    %2 = vector.load %arg4[%c0, %c0_0] : memref<2x32xf32, #tpu.memory_space<vmem>>, vector<2x32xf32>
    tpu.vector_store %arg4[%c0, %c0_0], %1 {strides = array<i32>} : memref<2x32xf32, #tpu.memory_space<vmem>>, vector<2x32xf32>,
    %cst_1 = arith.constant 0.000000e+00 : f32
    %3 = vector.broadcast %cst_1 : f32 to vector<2x32xf32>
    %c0_2 = arith.constant 0 : index
    %c0_3 = arith.constant 0 : index
    %4 = vector.load %arg5[%c0_2, %c0_3] : memref<2x32xf32, #tpu.memory_space<vmem>>, vector<2x32xf32>
    tpu.vector_store %arg5[%c0_2, %c0_3], %3 {strides = array<i32>} : memref<2x32xf32, #tpu.memory_space<vmem>>, vector<2x32xf32>,
    %c0_i32_4 = arith.constant 0 : i32
    %c3_i32 = arith.constant 3 : i32
    %5 = arith.subi %c3_i32, %c0_i32_4 : i32
    %6 = arith.select %0, %c0_i32_4, %5 : i32
    %c0_5 = arith.constant 0 : index
    %7 = arith.index_cast %6 : i32 to index
    %c0_6 = arith.constant 0 : index
    %c0_7 = arith.constant 0 : index
    %8 = vector.load %arg1[%c0_5, %7, %c0_6, %c0_7] : memref<1x4x2x128xf32, #tpu.memory_space<vmem>>, vector<1x1x2x128xf32>
    %9 = vector.shape_cast %8 : vector<1x1x2x128xf32> to vector<2x128xf32>
    %c0_8 = arith.constant 0 : index
    %c0_9 = arith.constant 0 : index
    %10 = vector.load %arg4[%c0_8, %c0_9] : memref<2x32xf32, #tpu.memory_space<vmem>>, vector<2x32xf32>
    %11 = arith.truncf %10 : vector<2x32xf32> to vector<2x32xbf16>
    %c0_10 = arith.constant 0 : index
    %c0_11 = arith.constant 0 : index
    %c0_12 = arith.constant 0 : index
    %12 = vector.load %arg2[%c0_10, %c0_11, %c0_12] : memref<1x32x128xbf16, #tpu.memory_space<vmem>>, vector<1x32x128xbf16>
    %13 = vector.shape_cast %12 : vector<1x32x128xbf16> to vector<32x128xbf16>
    %cst_13 = arith.constant dense<0.000000e+00> : vector<2x128xf32>
    %14 = tpu.matmul %11, %13, %cst_13 {dimension_numbers = #tpu.dot_dimension_numbers<[1], [0], [0], [1], [0, 0, 1, 1], [], []>} : vector<2x32xbf16>, vector<32x128xbf16>, vector<2x128xf32> -> vector<2x128xf32>
    %15 = arith.addf %9, %14 : vector<2x128xf32>
    %16 = vector.extract_strided_slice %15 {offsets = [0, 0], sizes = [2, 32], strides = [1, 1]} : vector<2x128xf32> to vector<2x32xf32>
    %17 = arith.negf %16 : vector<2x32xf32>
    %18 = math.exp %17 : vector<2x32xf32>
    %cst_14 = arith.constant 1.000000e+00 : f32
    %19 = vector.broadcast %cst_14 : f32 to vector<2x32xf32>
    %20 = arith.addf %19, %18 : vector<2x32xf32>
    %21 = arith.divf %19, %20 : vector<2x32xf32>
    %22 = vector.extract_strided_slice %15 {offsets = [0, 32], sizes = [2, 32], strides = [1, 1]} : vector<2x128xf32> to vector<2x32xf32>
    %23 = arith.negf %22 : vector<2x32xf32>
    %24 = math.exp %23 : vector<2x32xf32>
    %cst_15 = arith.constant 1.000000e+00 : f32
    %25 = vector.broadcast %cst_15 : f32 to vector<2x32xf32>
    %26 = arith.addf %25, %24 : vector<2x32xf32>
    %27 = arith.divf %25, %26 : vector<2x32xf32>
    %28 = vector.extract_strided_slice %15 {offsets = [0, 64], sizes = [2, 32], strides = [1, 1]} : vector<2x128xf32> to vector<2x32xf32>
    %29 = math.tanh %28 : vector<2x32xf32>
    %30 = vector.extract_strided_slice %15 {offsets = [0, 96], sizes = [2, 32], strides = [1, 1]} : vector<2x128xf32> to vector<2x32xf32>
    %31 = arith.negf %30 : vector<2x32xf32>
    %32 = math.exp %31 : vector<2x32xf32>
    %cst_16 = arith.constant 1.000000e+00 : f32
    %33 = vector.broadcast %cst_16 : f32 to vector<2x32xf32>
    %34 = arith.addf %33, %32 : vector<2x32xf32>
    %35 = arith.divf %33, %34 : vector<2x32xf32>
    %c0_17 = arith.constant 0 : index
    %c0_18 = arith.constant 0 : index
    %36 = vector.load %arg5[%c0_17, %c0_18] : memref<2x32xf32, #tpu.memory_space<vmem>>, vector<2x32xf32>
    %37 = arith.mulf %27, %36 : vector<2x32xf32>
    %38 = arith.mulf %21, %29 : vector<2x32xf32>
    %39 = arith.addf %37, %38 : vector<2x32xf32>
    %40 = math.tanh %39 : vector<2x32xf32>
    %41 = arith.mulf %35, %40 : vector<2x32xf32>
    %c0_19 = arith.constant 0 : index
    %c0_20 = arith.constant 0 : index
    %42 = vector.load %arg5[%c0_19, %c0_20] : memref<2x32xf32, #tpu.memory_space<vmem>>, vector<2x32xf32>
    tpu.vector_store %arg5[%c0_19, %c0_20], %39 {strides = array<i32>} : memref<2x32xf32, #tpu.memory_space<vmem>>, vector<2x32xf32>,
    %c0_21 = arith.constant 0 : index
    %c0_22 = arith.constant 0 : index
    %43 = vector.load %arg4[%c0_21, %c0_22] : memref<2x32xf32, #tpu.memory_space<vmem>>, vector<2x32xf32>
    tpu.vector_store %arg4[%c0_21, %c0_22], %41 {strides = array<i32>} : memref<2x32xf32, #tpu.memory_space<vmem>>, vector<2x32xf32>,
    %c0_23 = arith.constant 0 : index
    %44 = arith.index_cast %6 : i32 to index
    %c0_24 = arith.constant 0 : index
    %c0_25 = arith.constant 0 : index
    %45 = vector.load %arg3[%c0_23, %44, %c0_24, %c0_25] : memref<1x4x2x32xf32, #tpu.memory_space<vmem>>, vector<1x1x2x32xf32>
    %46 = vector.shape_cast %45 : vector<1x1x2x32xf32> to vector<2x32xf32>
    %47 = vector.shape_cast %41 : vector<2x32xf32> to vector<1x1x2x32xf32>
    tpu.vector_store %arg3[%c0_23, %44, %c0_24, %c0_25], %47 {strides = array<i32>} : memref<1x4x2x32xf32, #tpu.memory_space<vmem>>, vector<1x1x2x32xf32>,
    %c1_i32 = arith.constant 1 : i32
    %c3_i32_26 = arith.constant 3 : i32
    %48 = arith.subi %c3_i32_26, %c1_i32 : i32
    %49 = arith.select %0, %c1_i32, %48 : i32
    %c0_27 = arith.constant 0 : index
    %50 = arith.index_cast %49 : i32 to index
    %c0_28 = arith.constant 0 : index
    %c0_29 = arith.constant 0 : index
    %51 = vector.load %arg1[%c0_27, %50, %c0_28, %c0_29] : memref<1x4x2x128xf32, #tpu.memory_space<vmem>>, vector<1x1x2x128xf32>
    %52 = vector.shape_cast %51 : vector<1x1x2x128xf32> to vector<2x128xf32>
    %c0_30 = arith.constant 0 : index
    %c0_31 = arith.constant 0 : index
    %53 = vector.load %arg4[%c0_30, %c0_31] : memref<2x32xf32, #tpu.memory_space<vmem>>, vector<2x32xf32>
    %54 = arith.truncf %53 : vector<2x32xf32> to vector<2x32xbf16>
    %c0_32 = arith.constant 0 : index
    %c0_33 = arith.constant 0 : index
    %c0_34 = arith.constant 0 : index
    %55 = vector.load %arg2[%c0_32, %c0_33, %c0_34] : memref<1x32x128xbf16, #tpu.memory_space<vmem>>, vector<1x32x128xbf16>
    %56 = vector.shape_cast %55 : vector<1x32x128xbf16> to vector<32x128xbf16>
    %cst_35 = arith.constant dense<0.000000e+00> : vector<2x128xf32>
    %57 = tpu.matmul %54, %56, %cst_35 {dimension_numbers = #tpu.dot_dimension_numbers<[1], [0], [0], [1], [0, 0, 1, 1], [], []>} : vector<2x32xbf16>, vector<32x128xbf16>, vector<2x128xf32> -> vector<2x128xf32>
    %58 = arith.addf %52, %57 : vector<2x128xf32>
    %59 = vector.extract_strided_slice %58 {offsets = [0, 0], sizes = [2, 32], strides = [1, 1]} : vector<2x128xf32> to vector<2x32xf32>
    %60 = arith.negf %59 : vector<2x32xf32>
    %61 = math.exp %60 : vector<2x32xf32>
    %cst_36 = arith.constant 1.000000e+00 : f32
    %62 = vector.broadcast %cst_36 : f32 to vector<2x32xf32>
    %63 = arith.addf %62, %61 : vector<2x32xf32>
    %64 = arith.divf %62, %63 : vector<2x32xf32>
    %65 = vector.extract_strided_slice %58 {offsets = [0, 32], sizes = [2, 32], strides = [1, 1]} : vector<2x128xf32> to vector<2x32xf32>
    %66 = arith.negf %65 : vector<2x32xf32>
    %67 = math.exp %66 : vector<2x32xf32>
    %cst_37 = arith.constant 1.000000e+00 : f32
    %68 = vector.broadcast %cst_37 : f32 to vector<2x32xf32>
    %69 = arith.addf %68, %67 : vector<2x32xf32>
    %70 = arith.divf %68, %69 : vector<2x32xf32>
    %71 = vector.extract_strided_slice %58 {offsets = [0, 64], sizes = [2, 32], strides = [1, 1]} : vector<2x128xf32> to vector<2x32xf32>
    %72 = math.tanh %71 : vector<2x32xf32>
    %73 = vector.extract_strided_slice %58 {offsets = [0, 96], sizes = [2, 32], strides = [1, 1]} : vector<2x128xf32> to vector<2x32xf32>
    %74 = arith.negf %73 : vector<2x32xf32>
    %75 = math.exp %74 : vector<2x32xf32>
    %cst_38 = arith.constant 1.000000e+00 : f32
    %76 = vector.broadcast %cst_38 : f32 to vector<2x32xf32>
    %77 = arith.addf %76, %75 : vector<2x32xf32>
    %78 = arith.divf %76, %77 : vector<2x32xf32>
    %c0_39 = arith.constant 0 : index
    %c0_40 = arith.constant 0 : index
    %79 = vector.load %arg5[%c0_39, %c0_40] : memref<2x32xf32, #tpu.memory_space<vmem>>, vector<2x32xf32>
    %80 = arith.mulf %70, %79 : vector<2x32xf32>
    %81 = arith.mulf %64, %72 : vector<2x32xf32>
    %82 = arith.addf %80, %81 : vector<2x32xf32>
    %83 = math.tanh %82 : vector<2x32xf32>
    %84 = arith.mulf %78, %83 : vector<2x32xf32>
    %c0_41 = arith.constant 0 : index
    %c0_42 = arith.constant 0 : index
    %85 = vector.load %arg5[%c0_41, %c0_42] : memref<2x32xf32, #tpu.memory_space<vmem>>, vector<2x32xf32>
    tpu.vector_store %arg5[%c0_41, %c0_42], %82 {strides = array<i32>} : memref<2x32xf32, #tpu.memory_space<vmem>>, vector<2x32xf32>,
    %c0_43 = arith.constant 0 : index
    %c0_44 = arith.constant 0 : index
    %86 = vector.load %arg4[%c0_43, %c0_44] : memref<2x32xf32, #tpu.memory_space<vmem>>, vector<2x32xf32>
    tpu.vector_store %arg4[%c0_43, %c0_44], %84 {strides = array<i32>} : memref<2x32xf32, #tpu.memory_space<vmem>>, vector<2x32xf32>,
    %c0_45 = arith.constant 0 : index
    %87 = arith.index_cast %49 : i32 to index
    %c0_46 = arith.constant 0 : index
    %c0_47 = arith.constant 0 : index
    %88 = vector.load %arg3[%c0_45, %87, %c0_46, %c0_47] : memref<1x4x2x32xf32, #tpu.memory_space<vmem>>, vector<1x1x2x32xf32>
    %89 = vector.shape_cast %88 : vector<1x1x2x32xf32> to vector<2x32xf32>
    %90 = vector.shape_cast %84 : vector<2x32xf32> to vector<1x1x2x32xf32>
    tpu.vector_store %arg3[%c0_45, %87, %c0_46, %c0_47], %90 {strides = array<i32>} : memref<1x4x2x32xf32, #tpu.memory_space<vmem>>, vector<1x1x2x32xf32>,
    %c2_i32 = arith.constant 2 : i32
    %c3_i32_48 = arith.constant 3 : i32
    %91 = arith.subi %c3_i32_48, %c2_i32 : i32
    %92 = arith.select %0, %c2_i32, %91 : i32
    %c0_49 = arith.constant 0 : index
    %93 = arith.index_cast %92 : i32 to index
    %c0_50 = arith.constant 0 : index
    %c0_51 = arith.constant 0 : index
    %94 = vector.load %arg1[%c0_49, %93, %c0_50, %c0_51] : memref<1x4x2x128xf32, #tpu.memory_space<vmem>>, vector<1x1x2x128xf32>
    %95 = vector.shape_cast %94 : vector<1x1x2x128xf32> to vector<2x128xf32>
    %c0_52 = arith.constant 0 : index
    %c0_53 = arith.constant 0 : index
    %96 = vector.load %arg4[%c0_52, %c0_53] : memref<2x32xf32, #tpu.memory_space<vmem>>, vector<2x32xf32>
    %97 = arith.truncf %96 : vector<2x32xf32> to vector<2x32xbf16>
    %c0_54 = arith.constant 0 : index
    %c0_55 = arith.constant 0 : index
    %c0_56 = arith.constant 0 : index
    %98 = vector.load %arg2[%c0_54, %c0_55, %c0_56] : memref<1x32x128xbf16, #tpu.memory_space<vmem>>, vector<1x32x128xbf16>
    %99 = vector.shape_cast %98 : vector<1x32x128xbf16> to vector<32x128xbf16>
    %cst_57 = arith.constant dense<0.000000e+00> : vector<2x128xf32>
    %100 = tpu.matmul %97, %99, %cst_57 {dimension_numbers = #tpu.dot_dimension_numbers<[1], [0], [0], [1], [0, 0, 1, 1], [], []>} : vector<2x32xbf16>, vector<32x128xbf16>, vector<2x128xf32> -> vector<2x128xf32>
    %101 = arith.addf %95, %100 : vector<2x128xf32>
    %102 = vector.extract_strided_slice %101 {offsets = [0, 0], sizes = [2, 32], strides = [1, 1]} : vector<2x128xf32> to vector<2x32xf32>
    %103 = arith.negf %102 : vector<2x32xf32>
    %104 = math.exp %103 : vector<2x32xf32>
    %cst_58 = arith.constant 1.000000e+00 : f32
    %105 = vector.broadcast %cst_58 : f32 to vector<2x32xf32>
    %106 = arith.addf %105, %104 : vector<2x32xf32>
    %107 = arith.divf %105, %106 : vector<2x32xf32>
    %108 = vector.extract_strided_slice %101 {offsets = [0, 32], sizes = [2, 32], strides = [1, 1]} : vector<2x128xf32> to vector<2x32xf32>
    %109 = arith.negf %108 : vector<2x32xf32>
    %110 = math.exp %109 : vector<2x32xf32>
    %cst_59 = arith.constant 1.000000e+00 : f32
    %111 = vector.broadcast %cst_59 : f32 to vector<2x32xf32>
    %112 = arith.addf %111, %110 : vector<2x32xf32>
    %113 = arith.divf %111, %112 : vector<2x32xf32>
    %114 = vector.extract_strided_slice %101 {offsets = [0, 64], sizes = [2, 32], strides = [1, 1]} : vector<2x128xf32> to vector<2x32xf32>
    %115 = math.tanh %114 : vector<2x32xf32>
    %116 = vector.extract_strided_slice %101 {offsets = [0, 96], sizes = [2, 32], strides = [1, 1]} : vector<2x128xf32> to vector<2x32xf32>
    %117 = arith.negf %116 : vector<2x32xf32>
    %118 = math.exp %117 : vector<2x32xf32>
    %cst_60 = arith.constant 1.000000e+00 : f32
    %119 = vector.broadcast %cst_60 : f32 to vector<2x32xf32>
    %120 = arith.addf %119, %118 : vector<2x32xf32>
    %121 = arith.divf %119, %120 : vector<2x32xf32>
    %c0_61 = arith.constant 0 : index
    %c0_62 = arith.constant 0 : index
    %122 = vector.load %arg5[%c0_61, %c0_62] : memref<2x32xf32, #tpu.memory_space<vmem>>, vector<2x32xf32>
    %123 = arith.mulf %113, %122 : vector<2x32xf32>
    %124 = arith.mulf %107, %115 : vector<2x32xf32>
    %125 = arith.addf %123, %124 : vector<2x32xf32>
    %126 = math.tanh %125 : vector<2x32xf32>
    %127 = arith.mulf %121, %126 : vector<2x32xf32>
    %c0_63 = arith.constant 0 : index
    %c0_64 = arith.constant 0 : index
    %128 = vector.load %arg5[%c0_63, %c0_64] : memref<2x32xf32, #tpu.memory_space<vmem>>, vector<2x32xf32>
    tpu.vector_store %arg5[%c0_63, %c0_64], %125 {strides = array<i32>} : memref<2x32xf32, #tpu.memory_space<vmem>>, vector<2x32xf32>,
    %c0_65 = arith.constant 0 : index
    %c0_66 = arith.constant 0 : index
    %129 = vector.load %arg4[%c0_65, %c0_66] : memref<2x32xf32, #tpu.memory_space<vmem>>, vector<2x32xf32>
    tpu.vector_store %arg4[%c0_65, %c0_66], %127 {strides = array<i32>} : memref<2x32xf32, #tpu.memory_space<vmem>>, vector<2x32xf32>,
    %c0_67 = arith.constant 0 : index
    %130 = arith.index_cast %92 : i32 to index
    %c0_68 = arith.constant 0 : index
    %c0_69 = arith.constant 0 : index
    %131 = vector.load %arg3[%c0_67, %130, %c0_68, %c0_69] : memref<1x4x2x32xf32, #tpu.memory_space<vmem>>, vector<1x1x2x32xf32>
    %132 = vector.shape_cast %131 : vector<1x1x2x32xf32> to vector<2x32xf32>
    %133 = vector.shape_cast %127 : vector<2x32xf32> to vector<1x1x2x32xf32>
    tpu.vector_store %arg3[%c0_67, %130, %c0_68, %c0_69], %133 {strides = array<i32>} : memref<1x4x2x32xf32, #tpu.memory_space<vmem>>, vector<1x1x2x32xf32>,
    %c3_i32_70 = arith.constant 3 : i32
    %c3_i32_71 = arith.constant 3 : i32
    %134 = arith.subi %c3_i32_71, %c3_i32_70 : i32
    %135 = arith.select %0, %c3_i32_70, %134 : i32
    %c0_72 = arith.constant 0 : index
    %136 = arith.index_cast %135 : i32 to index
    %c0_73 = arith.constant 0 : index
    %c0_74 = arith.constant 0 : index
    %137 = vector.load %arg1[%c0_72, %136, %c0_73, %c0_74] : memref<1x4x2x128xf32, #tpu.memory_space<vmem>>, vector<1x1x2x128xf32>
    %138 = vector.shape_cast %137 : vector<1x1x2x128xf32> to vector<2x128xf32>
    %c0_75 = arith.constant 0 : index
    %c0_76 = arith.constant 0 : index
    %139 = vector.load %arg4[%c0_75, %c0_76] : memref<2x32xf32, #tpu.memory_space<vmem>>, vector<2x32xf32>
    %140 = arith.truncf %139 : vector<2x32xf32> to vector<2x32xbf16>
    %c0_77 = arith.constant 0 : index
    %c0_78 = arith.constant 0 : index
    %c0_79 = arith.constant 0 : index
    %141 = vector.load %arg2[%c0_77, %c0_78, %c0_79] : memref<1x32x128xbf16, #tpu.memory_space<vmem>>, vector<1x32x128xbf16>
    %142 = vector.shape_cast %141 : vector<1x32x128xbf16> to vector<32x128xbf16>
    %cst_80 = arith.constant dense<0.000000e+00> : vector<2x128xf32>
    %143 = tpu.matmul %140, %142, %cst_80 {dimension_numbers = #tpu.dot_dimension_numbers<[1], [0], [0], [1], [0, 0, 1, 1], [], []>} : vector<2x32xbf16>, vector<32x128xbf16>, vector<2x128xf32> -> vector<2x128xf32>
    %144 = arith.addf %138, %143 : vector<2x128xf32>
    %145 = vector.extract_strided_slice %144 {offsets = [0, 0], sizes = [2, 32], strides = [1, 1]} : vector<2x128xf32> to vector<2x32xf32>
    %146 = arith.negf %145 : vector<2x32xf32>
    %147 = math.exp %146 : vector<2x32xf32>
    %cst_81 = arith.constant 1.000000e+00 : f32
    %148 = vector.broadcast %cst_81 : f32 to vector<2x32xf32>
    %149 = arith.addf %148, %147 : vector<2x32xf32>
    %150 = arith.divf %148, %149 : vector<2x32xf32>
    %151 = vector.extract_strided_slice %144 {offsets = [0, 32], sizes = [2, 32], strides = [1, 1]} : vector<2x128xf32> to vector<2x32xf32>
    %152 = arith.negf %151 : vector<2x32xf32>
    %153 = math.exp %152 : vector<2x32xf32>
    %cst_82 = arith.constant 1.000000e+00 : f32
    %154 = vector.broadcast %cst_82 : f32 to vector<2x32xf32>
    %155 = arith.addf %154, %153 : vector<2x32xf32>
    %156 = arith.divf %154, %155 : vector<2x32xf32>
    %157 = vector.extract_strided_slice %144 {offsets = [0, 64], sizes = [2, 32], strides = [1, 1]} : vector<2x128xf32> to vector<2x32xf32>
    %158 = math.tanh %157 : vector<2x32xf32>
    %159 = vector.extract_strided_slice %144 {offsets = [0, 96], sizes = [2, 32], strides = [1, 1]} : vector<2x128xf32> to vector<2x32xf32>
    %160 = arith.negf %159 : vector<2x32xf32>
    %161 = math.exp %160 : vector<2x32xf32>
    %cst_83 = arith.constant 1.000000e+00 : f32
    %162 = vector.broadcast %cst_83 : f32 to vector<2x32xf32>
    %163 = arith.addf %162, %161 : vector<2x32xf32>
    %164 = arith.divf %162, %163 : vector<2x32xf32>
    %c0_84 = arith.constant 0 : index
    %c0_85 = arith.constant 0 : index
    %165 = vector.load %arg5[%c0_84, %c0_85] : memref<2x32xf32, #tpu.memory_space<vmem>>, vector<2x32xf32>
    %166 = arith.mulf %156, %165 : vector<2x32xf32>
    %167 = arith.mulf %150, %158 : vector<2x32xf32>
    %168 = arith.addf %166, %167 : vector<2x32xf32>
    %169 = math.tanh %168 : vector<2x32xf32>
    %170 = arith.mulf %164, %169 : vector<2x32xf32>
    %c0_86 = arith.constant 0 : index
    %c0_87 = arith.constant 0 : index
    %171 = vector.load %arg5[%c0_86, %c0_87] : memref<2x32xf32, #tpu.memory_space<vmem>>, vector<2x32xf32>
    tpu.vector_store %arg5[%c0_86, %c0_87], %168 {strides = array<i32>} : memref<2x32xf32, #tpu.memory_space<vmem>>, vector<2x32xf32>,
    %c0_88 = arith.constant 0 : index
    %c0_89 = arith.constant 0 : index
    %172 = vector.load %arg4[%c0_88, %c0_89] : memref<2x32xf32, #tpu.memory_space<vmem>>, vector<2x32xf32>
    tpu.vector_store %arg4[%c0_88, %c0_89], %170 {strides = array<i32>} : memref<2x32xf32, #tpu.memory_space<vmem>>, vector<2x32xf32>,
    %c0_90 = arith.constant 0 : index
    %173 = arith.index_cast %135 : i32 to index
    %c0_91 = arith.constant 0 : index
    %c0_92 = arith.constant 0 : index
    %174 = vector.load %arg3[%c0_90, %173, %c0_91, %c0_92] : memref<1x4x2x32xf32, #tpu.memory_space<vmem>>, vector<1x1x2x32xf32>
    %175 = vector.shape_cast %174 : vector<1x1x2x32xf32> to vector<2x32xf32>
    %176 = vector.shape_cast %170 : vector<2x32xf32> to vector<1x1x2x32xf32>
    tpu.vector_store %arg3[%c0_90, %173, %c0_91, %c0_92], %176 {strides = array<i32>} : memref<1x4x2x32xf32, #tpu.memory_space<vmem>>, vector<1x1x2x32xf32>,
    %c4_i32 = arith.constant 4 : i32
    return
  }
  func.func @transform_0(%arg0: i32) -> (i32, i32, i32, i32) {
    %c0_i32 = arith.constant 0 : i32
    %c0_i32_0 = arith.constant 0 : i32
    %c0_i32_1 = arith.constant 0 : i32
    %c0_i32_2 = arith.constant 0 : i32
    return %arg0, %c0_i32, %c0_i32_0, %c0_i32_1 : i32, i32, i32, i32
  }
  func.func @transform_1(%arg0: i32) -> (i32, i32, i32) {
    %c0_i32 = arith.constant 0 : i32
    %c0_i32_0 = arith.constant 0 : i32
    %c0_i32_1 = arith.constant 0 : i32
    return %arg0, %c0_i32, %c0_i32_0 : i32, i32, i32
  }
  func.func @transform_2(%arg0: i32) -> (i32, i32, i32, i32) {
    %c0_i32 = arith.constant 0 : i32
    %c0_i32_0 = arith.constant 0 : i32
    %c0_i32_1 = arith.constant 0 : i32
    %c0_i32_2 = arith.constant 0 : i32
    return %arg0, %c0_i32, %c0_i32_0, %c0_i32_1 : i32, i32, i32, i32
  }
}

module attributes {stable_mosaic.version = 11 : i64} {
  func.func @_classifier_kernel(%arg0: memref<2x64xbf16, #tpu.memory_space<vmem>>, %arg1: memref<64x32xbf16, #tpu.memory_space<vmem>>, %arg2: memref<1x32xf32, #tpu.memory_space<vmem>>, %arg3: memref<32x4xbf16, #tpu.memory_space<vmem>>, %arg4: memref<1x4xf32, #tpu.memory_space<vmem>>, %arg5: memref<2x4xf32, #tpu.memory_space<vmem>>) attributes {dimension_semantics = [], scalar_prefetch = 0 : i64, scratch_operands = 0 : i64, tpu.core_type = #tpu.core_type<tc>} {
    %c0 = arith.constant 0 : index
    %c0_0 = arith.constant 0 : index
    %0 = vector.load %arg0[%c0, %c0_0] : memref<2x64xbf16, #tpu.memory_space<vmem>>, vector<2x64xbf16>
    %c0_1 = arith.constant 0 : index
    %c0_2 = arith.constant 0 : index
    %1 = vector.load %arg1[%c0_1, %c0_2] : memref<64x32xbf16, #tpu.memory_space<vmem>>, vector<64x32xbf16>
    %cst = arith.constant dense<0.000000e+00> : vector<2x32xf32>
    %2 = tpu.matmul %0, %1, %cst {dimension_numbers = #tpu.dot_dimension_numbers<[1], [0], [0], [1], [0, 0, 1, 1], [], []>} : vector<2x64xbf16>, vector<64x32xbf16>, vector<2x32xf32> -> vector<2x32xf32>
    %c0_3 = arith.constant 0 : index
    %c0_4 = arith.constant 0 : index
    %3 = vector.load %arg2[%c0_3, %c0_4] : memref<1x32xf32, #tpu.memory_space<vmem>>, vector<1x32xf32>
    %4 = vector.broadcast %3 : vector<1x32xf32> to vector<2x32xf32>
    %5 = arith.addf %2, %4 : vector<2x32xf32>
    %cst_5 = arith.constant 0.000000e+00 : f32
    %6 = vector.broadcast %cst_5 : f32 to vector<2x32xf32>
    %7 = arith.maximumf %5, %6 : vector<2x32xf32>
    %8 = arith.truncf %7 : vector<2x32xf32> to vector<2x32xbf16>
    %c0_6 = arith.constant 0 : index
    %c0_7 = arith.constant 0 : index
    %9 = vector.load %arg3[%c0_6, %c0_7] : memref<32x4xbf16, #tpu.memory_space<vmem>>, vector<32x4xbf16>
    %cst_8 = arith.constant dense<0.000000e+00> : vector<2x4xf32>
    %10 = tpu.matmul %8, %9, %cst_8 {dimension_numbers = #tpu.dot_dimension_numbers<[1], [0], [0], [1], [0, 0, 1, 1], [], []>} : vector<2x32xbf16>, vector<32x4xbf16>, vector<2x4xf32> -> vector<2x4xf32>
    %c0_9 = arith.constant 0 : index
    %c0_10 = arith.constant 0 : index
    %11 = vector.load %arg4[%c0_9, %c0_10] : memref<1x4xf32, #tpu.memory_space<vmem>>, vector<1x4xf32>
    %12 = vector.broadcast %11 : vector<1x4xf32> to vector<2x4xf32>
    %13 = arith.addf %10, %12 : vector<2x4xf32>
    %c0_11 = arith.constant 0 : index
    %c0_12 = arith.constant 0 : index
    %14 = vector.load %arg5[%c0_11, %c0_12] : memref<2x4xf32, #tpu.memory_space<vmem>>, vector<2x4xf32>
    tpu.vector_store %arg5[%c0_11, %c0_12], %13 {strides = array<i32>} : memref<2x4xf32, #tpu.memory_space<vmem>>, vector<2x4xf32>,
    return
  }
}

</mosaic_0001>

<bundles_post_ra>
// kernel: forward.10
= control target key start
LH: loop header
LB: loop body
LE: loop exit
PB: predicated region body
PF: predicated region fallthrough
CT: control target
= control target key end

     0   :  { %s769_s15 = smov 0   ;;  %s771_s16 = smov 0   ;;  %s906_s0 = inlined_call_operand.vmem [shape: bf16[16,16], index: 0, kind: input, shape index: {}]   ;;  %s907_s1 = inlined_call_operand.vmem [shape: bf16[16,2048], index: 1, kind: input, shape index: {}]   ;;  %s908_s2 = inlined_call_operand.vmem [shape: f32[16,1], index: 2, kind: input, shape index: {}]   ;;  %s909_s3 = inlined_call_operand.vmem [shape: f32[16,1], index: 3, kind: input, shape index: {}]   ;;  %s910_s4 = inlined_call_operand.vmem [shape: f32[16,2048], index: 4, kind: output, shape index: {}]  }
   0x1   :  { %s773_s17 = smov 0  }
   0x2 LB: > { %s661_s18 = sadd.s32 4294967295, %s741_s17   ;;  %s786_s19 = sadd.s32 1, %s741_s17   ;;  %s741_s17 = sphi %s773_s17, %s914_s17   ;;  %s737_s16 = sphi %s771_s16, %s913_s16   ;;  %s733_s15 = sphi %s769_s15, %s912_s15  }
   0x3   : > { %s39_s20 = ssub.s32 %s741_s17, %s786_s19  ;;  %s42_s21 = sadd.s32 1, %s737_s16 }
   0x4   : > { %p40_p0 = scmp.eq.s32.totalorder %s39_s20, 0  ;;  %p49_p1 = scmp.ne.s32.totalorder %s737_s16, %s733_s15 }
   0x5   : > { %p50_p2 = scmp.eq.s32.totalorder %s741_s17, 0  ;;  %p121_p3 = scmp.eq.s32.totalorder %s661_s18, 1 }
   0x6   : > { %s797_s22 = scalar_select %p40_p0, %s737_s16, %s42_s21  }
   0x7   : > { %p51_p4 = por %p50_p2, %p49_p1  ;;  %p799_p5 = por %p121_p3, %p49_p1 }
   0x8   : > { %p664_p6 = scmp.ge.s32.totalorder %s741_s17, 2 }
   0xa   : > { %152 = sbr.rel (%p664_p6) target bundleno = 23 (0x17), region = 28 }
   0xf   : > { %155 = sbr.rel (!%p51_p4) target bundleno = 23 (0x17), region = 32  ;;  %s157_s24 = sand.u32 (%p51_p4), 1, %s737_s16  }
  0x10   : > { %s689_s25 = sshll.u32 (%p51_p4), %s741_s17, 5  ;;  %s665_s26 = sshll.u32 (%p51_p4), %s157_s24, 6 }
  0x11   : > { %s162_s29 = scalar_lea.vmem (%p51_p4), %s907_s1, %s689_s25  ;;  %s159_s30 = scalar_lea.vmem (%p51_p4), [#allocation2], %s665_s26 }
  0x12   : > { %v175_v0 = vld [vmem:[%s162_s29] sm:$0xff] (%p51_p4)  ;;  %v177_v1 = vld [vmem:[%s162_s29 + $0x8] sm:$0xff] (%p51_p4)  ;;  %v179_v2 = vld [vmem:[%s162_s29 + $0x10] sm:$0xff] (%p51_p4) }
  0x13   : > { %176 = vst [vmem:[%s159_s30] sm:$0xff] (%p51_p4), %v175_v0  ;;  %178 = vst [vmem:[%s159_s30 + $0x8] sm:$0xff] (%p51_p4), %v177_v1  ;;  %v181_v3 = vld [vmem:[%s162_s29 + $0x18] sm:$0xff] (%p51_p4)  ;;  %v183_v4 = vld [vmem:[%s162_s29 + $0x40] sm:$0xff] (%p51_p4) }
  0x14   : > { %180 = vst [vmem:[%s159_s30 + $0x10] sm:$0xff] %v179_v2  ;;  %v185_v5 = vld [vmem:[%s162_s29 + $0x48] sm:$0xff]  ;;  %182 = vst [vmem:[%s159_s30 + $0x18] sm:$0xff] %v181_v3  ;;  %v187_v6 = vld [vmem:[%s162_s29 + $0x50] sm:$0xff] }
  0x15   : > { %184 = vst [vmem:[%s159_s30 + $0x20] sm:$0xff] %v183_v4  ;;  %186 = vst [vmem:[%s159_s30 + $0x28] sm:$0xff] %v185_v5  ;;  %v189_v7 = vld [vmem:[%s162_s29 + $0x58] sm:$0xff] }
  0x16   : > { %188 = vst [vmem:[%s159_s30 + $0x30] sm:$0xff] %v187_v6  ;;  %190 = vst [vmem:[%s159_s30 + $0x38] sm:$0xff] %v189_v7 }
  0x17 PF: > { %p668_p7 = scmp.ge.s32.totalorder %s741_s17, 1  ;;  %p195_p8 = scmp.lt.s32.totalorder %s741_s17, 3 }
  0x19   : > { %p196_p9 = pnand %p668_p7, %p195_p8 }
  0x1a   : > { %s202_s5 = sand.u32 (!%p196_p9), 1, %s733_s15  }
  0x1b   : > { %199 = sbr.rel (%p196_p9) target bundleno = 264 (0x108), region = 55  ;;  %s669_s6 = sshll.u32 (!%p196_p9), %s202_s5, 6 }
  0x1c   : > { %s204_s11 = scalar_lea.vmem (!%p196_p9), [#allocation2], %s669_s6  ;;  %s670_s25 = sshll.u32 (!%p196_p9), %s202_s5, 7 }
  0x1d   : > { %s841_s15 = scalar_lea.vmem (!%p196_p9), [#allocation3], %s670_s25 }
  0x20   : > { %v743_v8 = vmov 0   ;;  %v460_v9 = vld [vmem:[%s908_s2] sm:$0xff]  ;;  %v232_v13 = vld [vmem:[%s204_s11 + $0x8] sm:$0xff]  ;;  %v233_v17 = vld [vmem:[%s204_s11 + $0x10] sm:$0xff]  ;;  %vm284_vm0 = vcmask 130048   ;;  %s690_s26 = sshll.u32 (%p799_p5), %s661_s18, 6 }
  0x21   : > { %320 = vmatprep.mubr.bf16.mxu0 %v743_v8  ;;  %363 = vmatprep.mubr.bf16.mxu1 %v743_v8  ;;  %v488_v10 = vld [vmem:[%s909_s3] sm:$0xff]  ;;  %v236_v15 = vld [vmem:[%s204_s11 + $0x28] sm:$0xff]  ;;  %v237_v18 = vld [vmem:[%s204_s11 + $0x30] sm:$0xff]  ;;  %s557_s23 = scalar_lea.vmem (%p799_p5), %s910_s4, %s690_s26 }
  0x22   : > { %716 = vset.pattern.permute.xlu0 %v743_v8  ;;  %717 = vset.pattern.permute.xlu1 %v743_v8  ;;  %v231_v11 = vld [vmem:[%s204_s11] sm:$0xff]  ;;  %v675_v19 = vcombine.high %v232_v13, %v236_v15  ;;  %v674_v20 = vcombine.low %v232_v13, %v236_v15  ;;  %v677_v21 = vcombine.high %v233_v17, %v237_v18  ;;  %v234_v22 = vld [vmem:[%s204_s11 + $0x18] sm:$0xff]  ;;  %v461_v26 = vld [vmem:[%s908_s2 + $0x8] sm:$0xff] }
  0x23   : > { %v235_v12 = vld [vmem:[%s204_s11 + $0x20] sm:$0xff]  ;;  %464 = vperm.xlu0 %716, %v460_v9   ;;  %492 = vperm.xlu1 %717, %v488_v10   ;;  %v238_v23 = vld [vmem:[%s204_s11 + $0x38] sm:$0xff]  ;;  %v676_v27 = vcombine.low %v233_v17, %v237_v18  ;;  %v489_v28 = vld [vmem:[%s909_s3 + $0x8] sm:$0xff] }
  0x24   : > { %v673_v14 = vcombine.high %v231_v11, %v235_v12  ;;  %v672_v16 = vcombine.low %v231_v11, %v235_v12  ;;  %v718_v24 = vld [vmem:[%s906_s0] sm:$0xff]   ;;  %v679_v25 = vcombine.high %v234_v22, %v238_v23  ;;  %345 = vmatprep.subr.bf16.mxu1 %v675_v19  ;;  %v678_v29 = vcombine.low %v234_v22, %v238_v23 }
  0x25   : > { %346 = vmatpush1.bf16.msra.mxu1 %v674_v20 }
  0x26   : > { %302 = vmatprep.subr.bf16.mxu0 %v673_v14  ;;  %431 = vmatprep.subr.bf16.mxu1 %v679_v25 }
  0x27   : > { %303 = vmatpush1.bf16.msra.mxu0 %v672_v16  ;;  %469 = vperm.xlu0 %716, %v461_v26  }
  0x28   : > { %388 = vmatprep.subr.bf16.mxu0 %v677_v21  ;;  %497 = vperm.xlu1 %717, %v489_v28  }
  0x29   : > { %681 = vmatmul.mubr.msk.bf16.vlgmr.msra.gmra.mxu1 %vm284_vm0, %v718_v24 }
  0x2a   : > { %680 = vmatmul.mubr.msk.bf16.vlgmr.msra.gmra.mxu0 %vm284_vm0, %v718_v24  ;;  %432 = vmatpush1.bf16.msra.mxu1 %v678_v29 }
  0x2b   : > { %389 = vmatpush1.bf16.msra.mxu0 %v676_v27  ;;  %406 = vmatprep.mubr.bf16.mxu0 %v743_v8 }
  0x2c   : > { %449 = vmatprep.mubr.bf16.mxu1 %v743_v8 }
  0x31   : > { %683 = vmatmul.mubr.msk.bf16.vlgmr.msra.gmra.mxu1 %vm284_vm0, %v718_v24 }
  0x32   : > { %682 = vmatmul.mubr.msk.bf16.vlgmr.msra.gmra.mxu0 %vm284_vm0, %v718_v24 }
  0x9e   : > { %v465_v30 = vpop.permute.xlu0 %464  ;;  %v493_v31 = vpop.permute.xlu1 %492 }
  0xa2   : > { %v835_v37 = vpop.permute.xlu0 %469 }
  0xa3   : > { %v837_v44 = vpop.permute.xlu1 %497 }
  0xe9   : > { %v365_v34 = vpop.f32.mrf.mxu1 }
  0xea   : > { %v322_v32 = vpop.f32.mrf.mxu0  ;;  %v474_v35 = vmul.f32 %v465_v30, %v365_v34 }
  0xeb   : > { %v472_v33 = vmul.f32 %v465_v30, %v322_v32  ;;  %v367_v40 = vpop.f32.mrf.mxu1 }
  0xec   : > { %v324_v36 = vpop.f32.mrf.mxu0  ;;  %v502_v41 = vadd.f32 %v493_v31, %v474_v35  ;;  %v475_v42 = vmul.f32 %v465_v30, %v367_v40 }
  0xed   : > { %v500_v38 = vadd.f32 %v493_v31, %v472_v33  ;;  %v473_v39 = vmul.f32 %v465_v30, %v324_v36  ;;  %v369_v48 = vpop.f32.mrf.mxu1 }
  0xee   : > { %v326_v43 = vpop.f32.mrf.mxu0  ;;  %v518_v49 = vmax.f32 %v502_v41, 0.0  ;;  %v503_v50 = vadd.f32 %v493_v31, %v475_v42  ;;  %v482_v51 = vmul.f32 %v835_v37, %v369_v48 }
  0xef   : > { %v516_v45 = vmax.f32 %v500_v38, 0.0  ;;  %v501_v46 = vadd.f32 %v493_v31, %v473_v39  ;;  %v480_v47 = vmul.f32 %v835_v37, %v326_v43  ;;  %v371_v56 = vpop.f32.mrf.mxu1 }
  0xf0   : > { %v328_v52 = vpop.f32.mrf.mxu0  ;;  %534 = vst [vmem:[%s841_s15 + $0x10] sm:$0xff] %v518_v49  ;;  %v519_v57 = vmax.f32 %v503_v50, 0.0  ;;  %v510_v58 = vadd.f32 %v837_v44, %v482_v51  ;;  %v483_v59 = vmul.f32 %v835_v37, %v371_v56 }
  0xf1   : > { %532 = vst [vmem:[%s841_s15] sm:$0xff] %v516_v45  ;;  %v517_v53 = vmax.f32 %v501_v46, 0.0  ;;  %v508_v54 = vadd.f32 %v837_v44, %v480_v47  ;;  %v481_v55 = vmul.f32 %v835_v37, %v328_v52  ;;  %v451_v0 = vpop.f32.mrf.mxu1 }
  0xf2   : > { %v408_v60 = vpop.f32.mrf.mxu0  ;;  %535 = vst [vmem:[%s841_s15 + $0x18] sm:$0xff] %v519_v57  ;;  %v526_v1 = vmax.f32 %v510_v58, 0.0  ;;  %v511_v2 = vadd.f32 %v837_v44, %v483_v59  ;;  %v478_v3 = vmul.f32 %v465_v30, %v451_v0 }
  0xf3   : > { %533 = vst [vmem:[%s841_s15 + $0x8] sm:$0xff] %v517_v53  ;;  %v524_v61 = vmax.f32 %v508_v54, 0.0  ;;  %v509_v62 = vadd.f32 %v837_v44, %v481_v55  ;;  %v476_v63 = vmul.f32 %v465_v30, %v408_v60  ;;  %v453_v8 = vpop.f32.mrf.mxu1 }
  0xf4   : > { %v410_v4 = vpop.f32.mrf.mxu0  ;;  %542 = vst [vmem:[%s841_s15 + $0x50] sm:$0xff] %v526_v1  ;;  %v527_v9 = vmax.f32 %v511_v2, 0.0  ;;  %v506_v10 = vadd.f32 %v493_v31, %v478_v3  ;;  %v479_v11 = vmul.f32 %v465_v30, %v453_v8 }
  0xf5   : > { %540 = vst [vmem:[%s841_s15 + $0x40] sm:$0xff] %v524_v61  ;;  %v525_v5 = vmax.f32 %v509_v62, 0.0  ;;  %v504_v6 = vadd.f32 %v493_v31, %v476_v63  ;;  %v477_v7 = vmul.f32 %v465_v30, %v410_v4  ;;  %v455_v16 = vpop.f32.mrf.mxu1 }
  0xf6   : > { %v412_v12 = vpop.f32.mrf.mxu0  ;;  %543 = vst [vmem:[%s841_s15 + $0x58] sm:$0xff] %v527_v9  ;;  %v522_v17 = vmax.f32 %v506_v10, 0.0  ;;  %v507_v18 = vadd.f32 %v493_v31, %v479_v11  ;;  %v486_v19 = vmul.f32 %v835_v37, %v455_v16 }
  0xf7   : > { %541 = vst [vmem:[%s841_s15 + $0x48] sm:$0xff] %v525_v5  ;;  %v520_v13 = vmax.f32 %v504_v6, 0.0  ;;  %v505_v14 = vadd.f32 %v493_v31, %v477_v7  ;;  %v484_v15 = vmul.f32 %v835_v37, %v412_v12  ;;  %v457_v24 = vpop.f32.mrf.mxu1  ;;  %v574_v36 = vld [vmem:[%s841_s15 + $0x10] sm:$0xff] (%p799_p5) }
  0xf8   : > { %v414_v20 = vpop.f32.mrf.mxu0  ;;  %538 = vst [vmem:[%s841_s15 + $0x30] sm:$0xff] %v522_v17  ;;  %v523_v25 = vmax.f32 %v507_v18, 0.0  ;;  %v514_v26 = vadd.f32 %v837_v44, %v486_v19  ;;  %v487_v27 = vmul.f32 %v835_v37, %v457_v24  ;;  %v570_v34 = vld [vmem:[%s841_s15] sm:$0xff] (%p799_p5)  ;;  %575 = vst [vmem:[%s557_s23 + $0x10] sm:$0xff] (%p799_p5), %v574_v36 }
  0xf9   : > { %536 = vst [vmem:[%s841_s15 + $0x20] sm:$0xff] %v520_v13  ;;  %v521_v21 = vmax.f32 %v505_v14, 0.0  ;;  %v512_v22 = vadd.f32 %v837_v44, %v484_v15  ;;  %v485_v23 = vmul.f32 %v835_v37, %v414_v20  ;;  %v576_v37 = vld [vmem:[%s841_s15 + $0x18] sm:$0xff] (%p799_p5)  ;;  %571 = vst [vmem:[%s557_s23] sm:$0xff] (%p799_p5), %v570_v34 }
  0xfa   : > { %539 = vst [vmem:[%s841_s15 + $0x38] sm:$0xff] %v523_v25  ;;  %v530_v30 = vmax.f32 %v514_v26, 0.0  ;;  %v515_v31 = vadd.f32 %v837_v44, %v487_v27  ;;  %v572_v35 = vld [vmem:[%s841_s15 + $0x8] sm:$0xff] (%p799_p5)  ;;  %577 = vst [vmem:[%s557_s23 + $0x18] sm:$0xff] (%p799_p5), %v576_v37 }
  0xfb   : > { %537 = vst [vmem:[%s841_s15 + $0x28] sm:$0xff] %v521_v21  ;;  %v528_v28 = vmax.f32 %v512_v22, 0.0  ;;  %v513_v29 = vadd.f32 %v837_v44, %v485_v23  ;;  %554 = sbr.rel (!%p799_p5) target bundleno = 264 (0x108), region = 63  ;;  %573 = vst [vmem:[%s557_s23 + $0x8] sm:$0xff] (%p799_p5), %v572_v35  ;;  %v590_v44 = vld [vmem:[%s841_s15 + $0x50] sm:$0xff] (%p799_p5) }
  0xfc   : > { %546 = vst [vmem:[%s841_s15 + $0x70] sm:$0xff] %v530_v30  ;;  %v531_v33 = vmax.f32 %v515_v31, 0.0  ;;  %v586_v42 = vld [vmem:[%s841_s15 + $0x40] sm:$0xff] (%p799_p5)  ;;  %591 = vst [vmem:[%s557_s23 + $0x90] sm:$0xff] (%p799_p5), %v590_v44 }
  0xfd   : > { %544 = vst [vmem:[%s841_s15 + $0x60] sm:$0xff] %v528_v28  ;;  %v529_v32 = vmax.f32 %v513_v29, 0.0  ;;  %587 = vst [vmem:[%s557_s23 + $0x80] sm:$0xff] (%p799_p5), %v586_v42  ;;  %v592_v45 = vld [vmem:[%s841_s15 + $0x58] sm:$0xff] (%p799_p5) }
  0xfe   : > { %547 = vst [vmem:[%s841_s15 + $0x78] sm:$0xff] %v531_v33  ;;  %v588_v43 = vld [vmem:[%s841_s15 + $0x48] sm:$0xff] (%p799_p5)  ;;  %593 = vst [vmem:[%s557_s23 + $0x98] sm:$0xff] (%p799_p5), %v592_v45 }
  0xff   : > { %545 = vst [vmem:[%s841_s15 + $0x68] sm:$0xff] %v529_v32  ;;  %v582_v40 = vld [vmem:[%s841_s15 + $0x30] sm:$0xff] (%p799_p5)  ;;  %589 = vst [vmem:[%s557_s23 + $0x88] sm:$0xff] (%p799_p5), %v588_v43 }
 0x100   : > { %v578_v38 = vld [vmem:[%s841_s15 + $0x20] sm:$0xff]  ;;  %583 = vst [vmem:[%s557_s23 + $0x30] sm:$0xff] %v582_v40 }
 0x101   : > { %579 = vst [vmem:[%s557_s23 + $0x20] sm:$0xff] %v578_v38  ;;  %v584_v41 = vld [vmem:[%s841_s15 + $0x38] sm:$0xff] }
 0x102   : > { %v580_v39 = vld [vmem:[%s841_s15 + $0x28] sm:$0xff]  ;;  %585 = vst [vmem:[%s557_s23 + $0x38] sm:$0xff] %v584_v41 }
 0x103   : > { %581 = vst [vmem:[%s557_s23 + $0x28] sm:$0xff] %v580_v39  ;;  %v598_v48 = vld [vmem:[%s841_s15 + $0x70] sm:$0xff] }
 0x104   : > { %v594_v46 = vld [vmem:[%s841_s15 + $0x60] sm:$0xff]  ;;  %599 = vst [vmem:[%s557_s23 + $0xb0] sm:$0xff] %v598_v48 }
 0x105   : > { %595 = vst [vmem:[%s557_s23 + $0xa0] sm:$0xff] %v594_v46  ;;  %v600_v49 = vld [vmem:[%s841_s15 + $0x78] sm:$0xff] }
 0x106   : > { %v596_v47 = vld [vmem:[%s841_s15 + $0x68] sm:$0xff]  ;;  %601 = vst [vmem:[%s557_s23 + $0xb8] sm:$0xff] %v600_v49 }
 0x107   : > { %597 = vst [vmem:[%s557_s23 + $0xa8] sm:$0xff] %v596_v47 }
 0x108 PF: > { %p11_p10 = scmp.ge.s32.totalorder %s786_s19, 4   ;;  %s912_s15 = smov %s737_s16 }
 0x109   : > { %s913_s16 = smov %s797_s22  ;;  %s914_s17 = smov %s786_s19 }
 0x10a   :  { %13 = sbr.rel (!%p11_p10) target bundleno = 2 (0x2), region = 117 }

// kernel: forward.11
= control target key start
LH: loop header
LB: loop body
LE: loop exit
PB: predicated region body
PF: predicated region fallthrough
CT: control target
= control target key end

     0   :  { %v881_v3 = vmov 0   ;;  %s1327_s1 = inlined_call_operand.vmem [shape: bf16[128,1024], index: 1, kind: input, shape index: {}]   ;;  %s1328_s0 = inlined_call_operand.vmem [shape: bf16[32,128], index: 0, kind: input, shape index: {}]   ;;  %s1329_s2 = inlined_call_operand.vmem [shape: f32[32,1], index: 2, kind: input, shape index: {}]   ;;  %s1330_s3 = inlined_call_operand.vmem [shape: f32[32,1], index: 3, kind: input, shape index: {}]   ;;  %s1331_s4 = inlined_call_operand.vmem [shape: f32[32,1024], index: 4, kind: output, shape index: {}]  }
   0x1   :  { %v78_v0 = vld [vmem:[%s1327_s1 + $0x1c0] sm:$0xff]  ;;  %v79_v2 = vld [vmem:[%s1327_s1 + $0x1c8] sm:$0xff]  ;;  %450 = vmatprep.mubr.bf16.mxu0 %v881_v3  ;;  %503 = vmatprep.mubr.bf16.mxu1 %v881_v3  ;;  %v632_v60 = vld [vmem:[%s1329_s2 + $0x10] sm:$0xff] }
   0x2   :  { %v82_v1 = vld [vmem:[%s1327_s1 + $0x1e0] sm:$0xff]  ;;  %v83_v5 = vld [vmem:[%s1327_s1 + $0x1e8] sm:$0xff]  ;;  %877 = vset.pattern.permute.xlu0 %v881_v3  ;;  %878 = vset.pattern.permute.xlu1 %v881_v3 }
   0x3   :  { %v869_v4 = vcombine.high %v78_v0, %v82_v1  ;;  %v868_v6 = vcombine.low %v78_v0, %v82_v1  ;;  %v70_v7 = vld [vmem:[%s1327_s1 + $0x180] sm:$0xff]  ;;  %v871_v9 = vcombine.high %v79_v2, %v83_v5  ;;  %v870_v10 = vcombine.low %v79_v2, %v83_v5  ;;  %v71_v12 = vld [vmem:[%s1327_s1 + $0x188] sm:$0xff]  ;;  %v80_v2 = vld [vmem:[%s1327_s1 + $0x1d0] sm:$0xff]  ;;  %646 = vperm.xlu1 %878, %v632_v60  }
   0x4   :  { %v74_v8 = vld [vmem:[%s1327_s1 + $0x1a0] sm:$0xff]  ;;  %v75_v13 = vld [vmem:[%s1327_s1 + $0x1a8] sm:$0xff]  ;;  %v81_v5 = vld [vmem:[%s1327_s1 + $0x1d8] sm:$0xff] }
   0x5   :  { %v861_v11 = vcombine.high %v70_v7, %v74_v8  ;;  %v62_v14 = vld [vmem:[%s1327_s1 + $0x140] sm:$0xff]  ;;  %418 = vmatprep.subr.bf16.mxu0 %v869_v4  ;;  %v863_v15 = vcombine.high %v71_v12, %v75_v13  ;;  %v63_v17 = vld [vmem:[%s1327_s1 + $0x148] sm:$0xff]  ;;  %471 = vmatprep.subr.bf16.mxu1 %v871_v9  ;;  %v860_v19 = vcombine.low %v70_v7, %v74_v8  ;;  %v84_v4 = vld [vmem:[%s1327_s1 + $0x1f0] sm:$0xff] }
   0x6   :  { %v66_v16 = vld [vmem:[%s1327_s1 + $0x160] sm:$0xff]  ;;  %v67_v18 = vld [vmem:[%s1327_s1 + $0x168] sm:$0xff]  ;;  %419 = vmatpush1.bf16.msra.mxu0 %v868_v6  ;;  %472 = vmatpush1.bf16.msra.mxu1 %v870_v10  ;;  %v862_v20 = vcombine.low %v71_v12, %v75_v13  ;;  %v85_v6 = vld [vmem:[%s1327_s1 + $0x1f8] sm:$0xff]  ;;  %v873_v10 = vcombine.high %v80_v2, %v84_v4 }
   0x7   :  { %420 = vmatprep.subr.bf16.mxu0 %v861_v11  ;;  %v853_v21 = vcombine.high %v62_v14, %v66_v16  ;;  %473 = vmatprep.subr.bf16.mxu1 %v863_v15  ;;  %v855_v22 = vcombine.high %v63_v17, %v67_v18  ;;  %v54_v23 = vld [vmem:[%s1327_s1 + $0x100] sm:$0xff]  ;;  %v55_v25 = vld [vmem:[%s1327_s1 + $0x108] sm:$0xff]  ;;  %v852_v27 = vcombine.low %v62_v14, %v66_v16  ;;  %v633_v7 = vld [vmem:[%s1329_s2 + $0x18] sm:$0xff] }
   0x8   :  { %v58_v24 = vld [vmem:[%s1327_s1 + $0x120] sm:$0xff]  ;;  %v59_v26 = vld [vmem:[%s1327_s1 + $0x128] sm:$0xff]  ;;  %v854_v28 = vcombine.low %v63_v17, %v67_v18  ;;  %v875_v13 = vcombine.high %v81_v5, %v85_v6  ;;  %v72_v14 = vld [vmem:[%s1327_s1 + $0x190] sm:$0xff]  ;;  %651 = vperm.xlu1 %878, %v633_v7  }
   0x9   :  { %v845_v29 = vcombine.high %v54_v23, %v58_v24  ;;  %v847_v30 = vcombine.high %v55_v25, %v59_v26  ;;  %v46_v31 = vld [vmem:[%s1327_s1 + $0xc0] sm:$0xff]  ;;  %v47_v33 = vld [vmem:[%s1327_s1 + $0xc8] sm:$0xff]  ;;  %v844_v35 = vcombine.low %v54_v23, %v58_v24  ;;  %v846_v36 = vcombine.low %v55_v25, %v59_v26  ;;  %v76_v15 = vld [vmem:[%s1327_s1 + $0x1b0] sm:$0xff] }
   0xa   :  { %421 = vmatpush1.bf16.msra.mxu0 %v860_v19  ;;  %474 = vmatpush1.bf16.msra.mxu1 %v862_v20  ;;  %v50_v32 = vld [vmem:[%s1327_s1 + $0xe0] sm:$0xff]  ;;  %v51_v34 = vld [vmem:[%s1327_s1 + $0xe8] sm:$0xff]  ;;  %v73_v16 = vld [vmem:[%s1327_s1 + $0x198] sm:$0xff]  ;;  %v872_v19 = vcombine.low %v80_v2, %v84_v4  ;;  %v874_v20 = vcombine.low %v81_v5, %v85_v6 }
   0xb   :  { %422 = vmatprep.subr.bf16.mxu0 %v853_v21  ;;  %475 = vmatprep.subr.bf16.mxu1 %v855_v22  ;;  %v837_v37 = vcombine.high %v46_v31, %v50_v32  ;;  %v839_v38 = vcombine.high %v47_v33, %v51_v34  ;;  %v38_v39 = vld [vmem:[%s1327_s1 + $0x80] sm:$0xff]  ;;  %v39_v41 = vld [vmem:[%s1327_s1 + $0x88] sm:$0xff]  ;;  %v836_v43 = vcombine.low %v46_v31, %v50_v32  ;;  %v77_v17 = vld [vmem:[%s1327_s1 + $0x1b8] sm:$0xff] }
   0xc   :  { %v42_v40 = vld [vmem:[%s1327_s1 + $0xa0] sm:$0xff]  ;;  %v43_v42 = vld [vmem:[%s1327_s1 + $0xa8] sm:$0xff]  ;;  %v838_v44 = vcombine.low %v47_v33, %v51_v34  ;;  %v865_v21 = vcombine.high %v72_v14, %v76_v15  ;;  %v867_v22 = vcombine.high %v73_v16, %v77_v17  ;;  %v64_v23 = vld [vmem:[%s1327_s1 + $0x150] sm:$0xff] }
   0xd   :  { %v829_v45 = vcombine.high %v38_v39, %v42_v40  ;;  %v30_v46 = vld [vmem:[%s1327_s1 + $0x40] sm:$0xff]  ;;  %v831_v47 = vcombine.high %v39_v41, %v43_v42  ;;  %v31_v49 = vld [vmem:[%s1327_s1 + $0x48] sm:$0xff]  ;;  %v828_v51 = vcombine.low %v38_v39, %v42_v40  ;;  %v830_v52 = vcombine.low %v39_v41, %v43_v42  ;;  %v68_v24 = vld [vmem:[%s1327_s1 + $0x170] sm:$0xff] }
   0xe   :  { %423 = vmatpush1.bf16.msra.mxu0 %v852_v27  ;;  %476 = vmatpush1.bf16.msra.mxu1 %v854_v28  ;;  %v34_v48 = vld [vmem:[%s1327_s1 + $0x60] sm:$0xff]  ;;  %v35_v50 = vld [vmem:[%s1327_s1 + $0x68] sm:$0xff]  ;;  %v65_v25 = vld [vmem:[%s1327_s1 + $0x158] sm:$0xff]  ;;  %v864_v27 = vcombine.low %v72_v14, %v76_v15 }
   0xf   :  { %424 = vmatprep.subr.bf16.mxu0 %v845_v29  ;;  %477 = vmatprep.subr.bf16.mxu1 %v847_v30  ;;  %v821_v53 = vcombine.high %v30_v46, %v34_v48  ;;  %v823_v54 = vcombine.high %v31_v49, %v35_v50  ;;  %v22_v55 = vld [vmem:[%s1327_s1] sm:$0xff]  ;;  %v23_v57 = vld [vmem:[%s1327_s1 + $0x8] sm:$0xff]  ;;  %v820_v61 = vcombine.low %v30_v46, %v34_v48  ;;  %v69_v26 = vld [vmem:[%s1327_s1 + $0x178] sm:$0xff] }
  0x10   :  { %v26_v56 = vld [vmem:[%s1327_s1 + $0x20] sm:$0xff]  ;;  %v27_v58 = vld [vmem:[%s1327_s1 + $0x28] sm:$0xff]  ;;  %v822_v62 = vcombine.low %v31_v49, %v35_v50  ;;  %v689_v28 = vld [vmem:[%s1330_s3 + $0x18] sm:$0xff]  ;;  %v866_v29 = vcombine.low %v73_v16, %v77_v17  ;;  %v857_v30 = vcombine.high %v64_v23, %v68_v24  ;;  %v859_v32 = vcombine.high %v65_v25, %v69_v26 }
  0x11   :  { %v630_v59 = vld [vmem:[%s1329_s2] sm:$0xff]  ;;  %v813_v63 = vcombine.high %v22_v55, %v26_v56  ;;  %v631_v0 = vld [vmem:[%s1329_s2 + $0x8] sm:$0xff]  ;;  %v815_v1 = vcombine.high %v23_v57, %v27_v58  ;;  %v812_v8 = vcombine.low %v22_v55, %v26_v56  ;;  %v814_v9 = vcombine.low %v23_v57, %v27_v58  ;;  %v688_v31 = vld [vmem:[%s1330_s3 + $0x10] sm:$0xff] }
  0x12   :  { %425 = vmatpush1.bf16.msra.mxu0 %v844_v35  ;;  %478 = vmatpush1.bf16.msra.mxu1 %v846_v36  ;;  %v686_v11 = vld [vmem:[%s1330_s3] sm:$0xff]  ;;  %v687_v18 = vld [vmem:[%s1330_s3 + $0x8] sm:$0xff]  ;;  %v56_v33 = vld [vmem:[%s1327_s1 + $0x110] sm:$0xff]  ;;  %v858_v39 = vcombine.low %v65_v25, %v69_v26 }
  0x13   :  { %426 = vmatprep.subr.bf16.mxu0 %v837_v37  ;;  %479 = vmatprep.subr.bf16.mxu1 %v839_v38  ;;  %v1037_v12 = vld [vmem:[%s1328_s0] sm:$0xff]   ;;  %v60_v34 = vld [vmem:[%s1327_s1 + $0x130] sm:$0xff]  ;;  %v57_v35 = vld [vmem:[%s1327_s1 + $0x118] sm:$0xff]  ;;  %v856_v38 = vcombine.low %v64_v23, %v68_v24 }
  0x14   :  { %636 = vperm.xlu0 %877, %v630_v59   ;;  %697 = vperm.xlu1 %878, %v687_v18   ;;  %v61_v36 = vld [vmem:[%s1327_s1 + $0x138] sm:$0xff]  ;;  %v1091_v37 = vld [vmem:[%s1328_s0 + $0x8] sm:$0xff]   ;;  %v849_v40 = vcombine.high %v56_v33, %v60_v34  ;;  %v48_v42 = vld [vmem:[%s1327_s1 + $0xd0] sm:$0xff]  ;;  %v848_v46 = vcombine.low %v56_v33, %v60_v34 }
  0x15   :  { %v851_v41 = vcombine.high %v57_v35, %v61_v36  ;;  %v40_v50 = vld [vmem:[%s1327_s1 + $0x90] sm:$0xff]  ;;  %v33_v60 = vld [vmem:[%s1327_s1 + $0x58] sm:$0xff] }
  0x16   :  { %427 = vmatpush1.bf16.msra.mxu0 %v836_v43  ;;  %480 = vmatpush1.bf16.msra.mxu1 %v838_v44  ;;  %v52_v43 = vld [vmem:[%s1327_s1 + $0xf0] sm:$0xff]  ;;  %v49_v44 = vld [vmem:[%s1327_s1 + $0xd8] sm:$0xff] }
  0x17   :  { %428 = vmatprep.subr.bf16.mxu0 %v829_v45  ;;  %481 = vmatprep.subr.bf16.mxu1 %v831_v47  ;;  %v53_v45 = vld [vmem:[%s1327_s1 + $0xf8] sm:$0xff]  ;;  %v850_v47 = vcombine.low %v57_v35, %v61_v36  ;;  %v841_v48 = vcombine.high %v48_v42, %v52_v43  ;;  %v32_v58 = vld [vmem:[%s1327_s1 + $0x50] sm:$0xff] }
  0x18   :  { %641 = vperm.xlu0 %877, %v631_v0   ;;  %707 = vperm.xlu1 %878, %v689_v28   ;;  %v843_v49 = vcombine.high %v49_v44, %v53_v45  ;;  %v842_v55 = vcombine.low %v49_v44, %v53_v45  ;;  %v36_v59 = vld [vmem:[%s1327_s1 + $0x70] sm:$0xff]  ;;  %v25_v5 = vld [vmem:[%s1327_s1 + $0x18] sm:$0xff] }
  0x19   :  { %v825_v0 = vcombine.high %v32_v58, %v36_v59  ;;  %v24_v2 = vld [vmem:[%s1327_s1 + $0x10] sm:$0xff]  ;;  %v29_v6 = vld [vmem:[%s1327_s1 + $0x38] sm:$0xff]  ;;  %v824_v7 = vcombine.low %v32_v58, %v36_v59 }
  0x1a   :  { %429 = vmatpush1.bf16.msra.mxu0 %v828_v51  ;;  %482 = vmatpush1.bf16.msra.mxu1 %v830_v52  ;;  %v44_v51 = vld [vmem:[%s1327_s1 + $0xb0] sm:$0xff]  ;;  %v41_v52 = vld [vmem:[%s1327_s1 + $0x98] sm:$0xff] }
  0x1b   :  { %430 = vmatprep.subr.bf16.mxu0 %v821_v53  ;;  %483 = vmatprep.subr.bf16.mxu1 %v823_v54  ;;  %v45_v53 = vld [vmem:[%s1327_s1 + $0xb8] sm:$0xff]  ;;  %v840_v54 = vcombine.low %v48_v42, %v52_v43  ;;  %v833_v56 = vcombine.high %v40_v50, %v44_v51  ;;  %v28_v4 = vld [vmem:[%s1327_s1 + $0x30] sm:$0xff] }
  0x1c   :  { %692 = vperm.xlu0 %877, %v686_v11   ;;  %v835_v57 = vcombine.high %v41_v52, %v45_v53  ;;  %v816_v11 = vcombine.low %v24_v2, %v28_v4 }
  0x1e   :  { %431 = vmatpush1.bf16.msra.mxu0 %v820_v61  ;;  %484 = vmatpush1.bf16.msra.mxu1 %v822_v62  ;;  %v37_v61 = vld [vmem:[%s1327_s1 + $0x78] sm:$0xff]  ;;  %v832_v62 = vcombine.low %v40_v50, %v44_v51 }
  0x1f   :  { %432 = vmatprep.subr.bf16.mxu0 %v813_v63  ;;  %485 = vmatprep.subr.bf16.mxu1 %v815_v1  ;;  %v834_v63 = vcombine.low %v41_v52, %v45_v53  ;;  %v827_v1 = vcombine.high %v33_v60, %v37_v61 }
  0x20   :  { %702 = vperm.xlu0 %877, %v688_v31  }
  0x22   :  { %433 = vmatpush1.bf16.msra.mxu0 %v812_v8  ;;  %486 = vmatpush1.bf16.msra.mxu1 %v814_v9  ;;  %v826_v8 = vcombine.low %v33_v60, %v37_v61  ;;  %v817_v9 = vcombine.high %v24_v2, %v28_v4 }
  0x23   :  { %524 = vmatprep.subr.bf16.mxu0 %v873_v10  ;;  %577 = vmatprep.subr.bf16.mxu1 %v875_v13  ;;  %v819_v10 = vcombine.high %v25_v5, %v29_v6  ;;  %v818_v13 = vcombine.low %v25_v5, %v29_v6 }
  0x25   :  { %451 = vmatmul.mubr.bf16.vlgmr.msra.gmra.mxu0 %v1037_v12  ;;  %504 = vmatmul.mubr.bf16.vlgmr.msra.gmra.mxu1 %v1037_v12 }
  0x26   :  { %525 = vmatpush1.bf16.msra.mxu0 %v872_v19  ;;  %578 = vmatpush1.bf16.msra.mxu1 %v874_v20 }
  0x27   :  { %526 = vmatprep.subr.bf16.mxu0 %v865_v21  ;;  %579 = vmatprep.subr.bf16.mxu1 %v867_v22 }
  0x28   :  { %460 = vmatprep.mubr.bf16.mxu0 %v881_v3  ;;  %513 = vmatprep.mubr.bf16.mxu1 %v881_v3 }
  0x2a   :  { %527 = vmatpush1.bf16.msra.mxu0 %v864_v27  ;;  %580 = vmatpush1.bf16.msra.mxu1 %v866_v29 }
  0x2b   :  { %528 = vmatprep.subr.bf16.mxu0 %v857_v30  ;;  %581 = vmatprep.subr.bf16.mxu1 %v859_v32 }
  0x2d   :  { %461 = vmatmul.mubr.bf16.gmra.mxu0 %v1091_v37  ;;  %514 = vmatmul.mubr.bf16.gmra.mxu1 %v1091_v37 }
  0x2e   :  { %529 = vmatpush1.bf16.msra.mxu0 %v856_v38  ;;  %582 = vmatpush1.bf16.msra.mxu1 %v858_v39 }
  0x2f   :  { %530 = vmatprep.subr.bf16.mxu0 %v849_v40  ;;  %583 = vmatprep.subr.bf16.mxu1 %v851_v41 }
  0x30   :  { %556 = vmatprep.mubr.bf16.mxu0 %v881_v3  ;;  %609 = vmatprep.mubr.bf16.mxu1 %v881_v3 }
  0x32   :  { %531 = vmatpush1.bf16.msra.mxu0 %v848_v46  ;;  %584 = vmatpush1.bf16.msra.mxu1 %v850_v47 }
  0x33   :  { %532 = vmatprep.subr.bf16.mxu0 %v841_v48  ;;  %585 = vmatprep.subr.bf16.mxu1 %v843_v49 }
  0x36   :  { %533 = vmatpush1.bf16.msra.mxu0 %v840_v54  ;;  %586 = vmatpush1.bf16.msra.mxu1 %v842_v55 }
  0x37   :  { %534 = vmatprep.subr.bf16.mxu0 %v833_v56  ;;  %587 = vmatprep.subr.bf16.mxu1 %v835_v57 }
  0x3a   :  { %535 = vmatpush1.bf16.msra.mxu0 %v832_v62  ;;  %588 = vmatpush1.bf16.msra.mxu1 %v834_v63 }
  0x3b   :  { %536 = vmatprep.subr.bf16.mxu0 %v825_v0  ;;  %589 = vmatprep.subr.bf16.mxu1 %v827_v1 }
  0x3e   :  { %537 = vmatpush1.bf16.msra.mxu0 %v824_v7  ;;  %590 = vmatpush1.bf16.msra.mxu1 %v826_v8 }
  0x3f   :  { %538 = vmatprep.subr.bf16.mxu0 %v817_v9  ;;  %591 = vmatprep.subr.bf16.mxu1 %v819_v10 }
  0x42   :  { %539 = vmatpush1.bf16.msra.mxu0 %v816_v11  ;;  %592 = vmatpush1.bf16.msra.mxu1 %v818_v13 }
  0x45   :  { %557 = vmatmul.mubr.bf16.vlgmr.msra.gmra.mxu0 %v1037_v12  ;;  %610 = vmatmul.mubr.bf16.vlgmr.msra.gmra.mxu1 %v1037_v12 }
  0x46   :  { %566 = vmatprep.mubr.bf16.mxu0 %v881_v3  ;;  %619 = vmatprep.mubr.bf16.mxu1 %v881_v3 }
  0x4d   :  { %567 = vmatmul.mubr.bf16.gmra.mxu0 %v1091_v37  ;;  %620 = vmatmul.mubr.bf16.gmra.mxu1 %v1091_v37 }
  0x7e   :  { %v1153_v15 = vpop.permute.xlu1 %646 }
  0x83   :  { %v1157_v17 = vpop.permute.xlu1 %651 }
  0x8f   :  { %v1151_v14 = vpop.permute.xlu0 %636  ;;  %v1167_v28 = vpop.permute.xlu1 %697 }
  0x93   :  { %v1155_v16 = vpop.permute.xlu0 %641  ;;  %v1204_v61 = vpop.permute.xlu1 %707 }
  0x97   :  { %v1159_v19 = vpop.permute.xlu0 %692 }
  0x9b   :  { %v1183_v45 = vpop.permute.xlu0 %702 }
  0xe5   :  { %v452_v18 = vpop.f32.mrf.mxu0  ;;  %v505_v20 = vpop.f32.mrf.mxu1 }
  0xe6   :  { %v654_v12 = vmul.f32 %v1151_v14, %v452_v18  ;;  %v656_v3 = vmul.f32 %v1151_v14, %v505_v20 }
  0xe7   :  { %v454_v21 = vpop.f32.mrf.mxu0  ;;  %v507_v23 = vpop.f32.mrf.mxu1 }
  0xe8   :  { %v655_v22 = vmul.f32 %v1151_v14, %v454_v21  ;;  %v710_v24 = vadd.f32 %v1159_v19, %v654_v12  ;;  %v657_v25 = vmul.f32 %v1151_v14, %v507_v23  ;;  %v712_v26 = vadd.f32 %v1159_v19, %v656_v3 }
  0xe9   :  { %v456_v27 = vpop.f32.mrf.mxu0  ;;  %v509_v32 = vpop.f32.mrf.mxu1 }
  0xea   :  { %v711_v29 = vadd.f32 %v1159_v19, %v655_v22  ;;  %v742_v30 = vmax.f32 %v710_v24, 0.0  ;;  %v662_v31 = vmul.f32 %v1155_v16, %v456_v27  ;;  %v713_v33 = vadd.f32 %v1159_v19, %v657_v25 }
  0xeb   :  { %v744_v34 = vmax.f32 %v712_v26, 0.0  ;;  %v664_v35 = vmul.f32 %v1155_v16, %v509_v32  ;;  %v458_v36 = vpop.f32.mrf.mxu0  ;;  %v511_v40 = vpop.f32.mrf.mxu1 }
  0xec   :  { %v743_v37 = vmax.f32 %v711_v29, 0.0  ;;  %774 = vst [vmem:[%s1331_s4] sm:$0xff] %v742_v30  ;;  %v718_v38 = vadd.f32 %v1167_v28, %v662_v31  ;;  %v663_v39 = vmul.f32 %v1155_v16, %v458_v36  ;;  %v745_v41 = vmax.f32 %v713_v33, 0.0 }
  0xed   :  { %776 = vst [vmem:[%s1331_s4 + $0x10] sm:$0xff] %v744_v34  ;;  %v720_v42 = vadd.f32 %v1167_v28, %v664_v35  ;;  %v665_v43 = vmul.f32 %v1155_v16, %v511_v40  ;;  %v462_v44 = vpop.f32.mrf.mxu0  ;;  %v515_v49 = vpop.f32.mrf.mxu1 }
  0xee   :  { %775 = vst [vmem:[%s1331_s4 + $0x8] sm:$0xff] %v743_v37  ;;  %v750_v46 = vmax.f32 %v718_v38, 0.0  ;;  %v719_v47 = vadd.f32 %v1167_v28, %v663_v39  ;;  %v670_v48 = vmul.f32 %v1153_v15, %v462_v44  ;;  %777 = vst [vmem:[%s1331_s4 + $0x18] sm:$0xff] %v745_v41  ;;  %v672_v52 = vmul.f32 %v1153_v15, %v515_v49 }
  0xef   :  { %v752_v50 = vmax.f32 %v720_v42, 0.0  ;;  %v721_v51 = vadd.f32 %v1167_v28, %v665_v43  ;;  %v464_v53 = vpop.f32.mrf.mxu0  ;;  %v517_v56 = vpop.f32.mrf.mxu1 }
  0xf0   :  { %782 = vst [vmem:[%s1331_s4 + $0x40] sm:$0xff] %v750_v46  ;;  %v751_v54 = vmax.f32 %v719_v47, 0.0  ;;  %v671_v55 = vmul.f32 %v1153_v15, %v464_v53  ;;  %v726_v57 = vadd.f32 %v1183_v45, %v670_v48  ;;  %v673_v59 = vmul.f32 %v1153_v15, %v517_v56 }
  0xf1   :  { %784 = vst [vmem:[%s1331_s4 + $0x50] sm:$0xff] %v752_v50  ;;  %v753_v58 = vmax.f32 %v721_v51, 0.0  ;;  %v466_v60 = vpop.f32.mrf.mxu0  ;;  %v728_v62 = vadd.f32 %v1183_v45, %v672_v52  ;;  %v519_v0 = vpop.f32.mrf.mxu1 }
  0xf2   :  { %783 = vst [vmem:[%s1331_s4 + $0x48] sm:$0xff] %v751_v54  ;;  %v678_v63 = vmul.f32 %v1157_v17, %v466_v60  ;;  %v727_v1 = vadd.f32 %v1183_v45, %v671_v55  ;;  %v758_v2 = vmax.f32 %v726_v57, 0.0  ;;  %v680_v4 = vmul.f32 %v1157_v17, %v519_v0 }
  0xf3   :  { %785 = vst [vmem:[%s1331_s4 + $0x58] sm:$0xff] %v753_v58  ;;  %v468_v5 = vpop.f32.mrf.mxu0  ;;  %v729_v6 = vadd.f32 %v1183_v45, %v673_v59  ;;  %v760_v7 = vmax.f32 %v728_v62, 0.0  ;;  %v521_v9 = vpop.f32.mrf.mxu1 }
  0xf4   :  { %v679_v8 = vmul.f32 %v1157_v17, %v468_v5  ;;  %v734_v10 = vadd.f32 %v1204_v61, %v678_v63  ;;  %v759_v11 = vmax.f32 %v727_v1, 0.0  ;;  %790 = vst [vmem:[%s1331_s4 + $0x80] sm:$0xff] %v758_v2  ;;  %v681_v13 = vmul.f32 %v1157_v17, %v521_v9 }
  0xf5   :  { %v736_v18 = vadd.f32 %v1204_v61, %v680_v4  ;;  %v761_v12 = vmax.f32 %v729_v6, 0.0  ;;  %792 = vst [vmem:[%s1331_s4 + $0x90] sm:$0xff] %v760_v7 }
  0xf6   :  { %v735_v20 = vadd.f32 %v1204_v61, %v679_v8  ;;  %v766_v3 = vmax.f32 %v734_v10, 0.0  ;;  %791 = vst [vmem:[%s1331_s4 + $0x88] sm:$0xff] %v759_v11  ;;  %v737_v21 = vadd.f32 %v1204_v61, %v681_v13 }
  0xf7   :  { %v768_v22 = vmax.f32 %v736_v18, 0.0  ;;  %793 = vst [vmem:[%s1331_s4 + $0x98] sm:$0xff] %v761_v12 }
  0xf8   :  { %v767_v23 = vmax.f32 %v735_v20, 0.0  ;;  %798 = vst [vmem:[%s1331_s4 + $0xc0] sm:$0xff] %v766_v3  ;;  %v769_v24 = vmax.f32 %v737_v21, 0.0 }
  0xf9   :  { %800 = vst [vmem:[%s1331_s4 + $0xd0] sm:$0xff] %v768_v22 }
  0xfa   :  { %799 = vst [vmem:[%s1331_s4 + $0xc8] sm:$0xff] %v767_v23  ;;  %801 = vst [vmem:[%s1331_s4 + $0xd8] sm:$0xff] %v769_v24 }
 0x105   :  { %v558_v25 = vpop.f32.mrf.mxu0  ;;  %v611_v27 = vpop.f32.mrf.mxu1 }
 0x106   :  { %v658_v26 = vmul.f32 %v1151_v14, %v558_v25  ;;  %v660_v29 = vmul.f32 %v1151_v14, %v611_v27 }
 0x107   :  { %v560_v30 = vpop.f32.mrf.mxu0  ;;  %v613_v33 = vpop.f32.mrf.mxu1 }
 0x108   :  { %v714_v31 = vadd.f32 %v1159_v19, %v658_v26  ;;  %v659_v32 = vmul.f32 %v1151_v14, %v560_v30  ;;  %v716_v34 = vadd.f32 %v1159_v19, %v660_v29  ;;  %v661_v35 = vmul.f32 %v1151_v14, %v613_v33 }
 0x109   :  { %v562_v36 = vpop.f32.mrf.mxu0  ;;  %v615_v40 = vpop.f32.mrf.mxu1 }
 0x10a   :  { %v746_v37 = vmax.f32 %v714_v31, 0.0  ;;  %v715_v38 = vadd.f32 %v1159_v19, %v659_v32  ;;  %v666_v39 = vmul.f32 %v1155_v16, %v562_v36  ;;  %v748_v41 = vmax.f32 %v716_v34, 0.0 }
 0x10b   :  { %v717_v42 = vadd.f32 %v1159_v19, %v661_v35  ;;  %v668_v43 = vmul.f32 %v1155_v16, %v615_v40  ;;  %v564_v44 = vpop.f32.mrf.mxu0  ;;  %v617_v48 = vpop.f32.mrf.mxu1 }
 0x10c   :  { %778 = vst [vmem:[%s1331_s4 + $0x20] sm:$0xff] %v746_v37  ;;  %v747_v46 = vmax.f32 %v715_v38, 0.0  ;;  %v722_v14 = vadd.f32 %v1167_v28, %v666_v39  ;;  %v667_v47 = vmul.f32 %v1155_v16, %v564_v44  ;;  %780 = vst [vmem:[%s1331_s4 + $0x30] sm:$0xff] %v748_v41  ;;  %v669_v50 = vmul.f32 %v1155_v16, %v617_v48 }
 0x10d   :  { %v749_v49 = vmax.f32 %v717_v42, 0.0  ;;  %v724_v19 = vadd.f32 %v1167_v28, %v668_v43  ;;  %v568_v51 = vpop.f32.mrf.mxu0  ;;  %v621_v55 = vpop.f32.mrf.mxu1 }
 0x10e   :  { %779 = vst [vmem:[%s1331_s4 + $0x28] sm:$0xff] %v747_v46  ;;  %v754_v52 = vmax.f32 %v722_v14, 0.0  ;;  %v723_v53 = vadd.f32 %v1167_v28, %v667_v47  ;;  %v674_v54 = vmul.f32 %v1153_v15, %v568_v51  ;;  %v725_v57 = vadd.f32 %v1167_v28, %v669_v50 }
 0x10f   :  { %781 = vst [vmem:[%s1331_s4 + $0x38] sm:$0xff] %v749_v49  ;;  %v756_v56 = vmax.f32 %v724_v19, 0.0  ;;  %v676_v16 = vmul.f32 %v1153_v15, %v621_v55  ;;  %v570_v58 = vpop.f32.mrf.mxu0  ;;  %v623_v63 = vpop.f32.mrf.mxu1 }
 0x110   :  { %786 = vst [vmem:[%s1331_s4 + $0x60] sm:$0xff] %v754_v52  ;;  %v755_v59 = vmax.f32 %v723_v53, 0.0  ;;  %v730_v60 = vadd.f32 %v1183_v45, %v674_v54  ;;  %v675_v62 = vmul.f32 %v1153_v15, %v570_v58  ;;  %v757_v0 = vmax.f32 %v725_v57, 0.0 }
 0x111   :  { %788 = vst [vmem:[%s1331_s4 + $0x70] sm:$0xff] %v756_v56  ;;  %v732_v28 = vadd.f32 %v1183_v45, %v676_v16  ;;  %v677_v1 = vmul.f32 %v1153_v15, %v623_v63  ;;  %v572_v2 = vpop.f32.mrf.mxu0  ;;  %v625_v7 = vpop.f32.mrf.mxu1 }
 0x112   :  { %787 = vst [vmem:[%s1331_s4 + $0x68] sm:$0xff] %v755_v59  ;;  %v762_v4 = vmax.f32 %v730_v60, 0.0  ;;  %v731_v5 = vadd.f32 %v1183_v45, %v675_v62  ;;  %v682_v6 = vmul.f32 %v1157_v17, %v572_v2  ;;  %789 = vst [vmem:[%s1331_s4 + $0x78] sm:$0xff] %v757_v0  ;;  %v684_v15 = vmul.f32 %v1157_v17, %v625_v7 }
 0x113   :  { %v764_v8 = vmax.f32 %v732_v28, 0.0  ;;  %v733_v9 = vadd.f32 %v1183_v45, %v677_v1  ;;  %v574_v10 = vpop.f32.mrf.mxu0  ;;  %v627_v12 = vpop.f32.mrf.mxu1 }
 0x114   :  { %794 = vst [vmem:[%s1331_s4 + $0xa0] sm:$0xff] %v762_v4  ;;  %v763_v11 = vmax.f32 %v731_v5, 0.0  ;;  %v738_v13 = vadd.f32 %v1204_v61, %v682_v6  ;;  %v683_v18 = vmul.f32 %v1157_v17, %v574_v10  ;;  %v740_v45 = vadd.f32 %v1204_v61, %v684_v15 }
 0x115   :  { %796 = vst [vmem:[%s1331_s4 + $0xb0] sm:$0xff] %v764_v8  ;;  %v765_v20 = vmax.f32 %v733_v9, 0.0  ;;  %v685_v3 = vmul.f32 %v1157_v17, %v627_v12 }
 0x116   :  { %795 = vst [vmem:[%s1331_s4 + $0xa8] sm:$0xff] %v763_v11  ;;  %v770_v21 = vmax.f32 %v738_v13, 0.0  ;;  %v739_v22 = vadd.f32 %v1204_v61, %v683_v18  ;;  %v772_v23 = vmax.f32 %v740_v45, 0.0 }
 0x117   :  { %797 = vst [vmem:[%s1331_s4 + $0xb8] sm:$0xff] %v765_v20  ;;  %v741_v24 = vadd.f32 %v1204_v61, %v685_v3 }
 0x118   :  { %802 = vst [vmem:[%s1331_s4 + $0xe0] sm:$0xff] %v770_v21  ;;  %v771_v25 = vmax.f32 %v739_v22, 0.0  ;;  %804 = vst [vmem:[%s1331_s4 + $0xf0] sm:$0xff] %v772_v23 }
 0x119   :  { %v773_v17 = vmax.f32 %v741_v24, 0.0 }
 0x11a   :  { %803 = vst [vmem:[%s1331_s4 + $0xe8] sm:$0xff] %v771_v25 }
 0x11b   :  { %805 = vst [vmem:[%s1331_s4 + $0xf8] sm:$0xff] %v773_v17 }

// kernel: forward.12
= control target key start
LH: loop header
LB: loop body
LE: loop exit
PB: predicated region body
PF: predicated region fallthrough
CT: control target
= control target key end

     0   :  { %v707_v1 = vmov 0   ;;  %s1025_s1 = inlined_call_operand.vmem [shape: bf16[128,512], index: 1, kind: input, shape index: {}]   ;;  %s1026_s0 = inlined_call_operand.vmem [shape: bf16[64,128], index: 0, kind: input, shape index: {}]   ;;  %s1027_s2 = inlined_call_operand.vmem [shape: f32[64,1], index: 2, kind: input, shape index: {}]   ;;  %s1028_s3 = inlined_call_operand.vmem [shape: f32[64,1], index: 3, kind: input, shape index: {}]   ;;  %s1029_s4 = inlined_call_operand.vmem [shape: f32[64,512], index: 4, kind: output, shape index: {}]  }
   0x1   :  { %v655_v0 = vld [vmem:[%s1025_s1 + $0xe4] ss:$16 sps:$4 sm:$0xff]   ;;  %274 = vmatprep.mubr.bf16.mxu0 %v707_v1  ;;  %347 = vmatprep.mubr.bf16.mxu1 %v707_v1  ;;  %v657_v2 = vld [vmem:[%s1025_s1 + $0xec] ss:$16 sps:$4 sm:$0xff]   ;;  %v659_v3 = vld [vmem:[%s1025_s1 + $0xe0] ss:$16 sps:$4 sm:$0xff]  }
   0x2   :  { %654 = vset.pattern.permute.xlu1 %v707_v1  ;;  %653 = vset.pattern.permute.xlu0 %v707_v1  ;;  %v660_v4 = vld [vmem:[%s1025_s1 + $0xe8] ss:$16 sps:$4 sm:$0xff]   ;;  %v661_v5 = vld [vmem:[%s1025_s1 + $0xc4] ss:$16 sps:$4 sm:$0xff]   ;;  %v663_v6 = vld [vmem:[%s1025_s1 + $0xcc] ss:$16 sps:$4 sm:$0xff]  }
   0x3   :  { %242 = vmatprep.subr.bf16.mxu0 %v655_v0  ;;  %315 = vmatprep.subr.bf16.mxu1 %v657_v2  ;;  %v665_v7 = vld [vmem:[%s1025_s1 + $0xc0] ss:$16 sps:$4 sm:$0xff]   ;;  %v666_v8 = vld [vmem:[%s1025_s1 + $0xc8] ss:$16 sps:$4 sm:$0xff]   ;;  %v667_v9 = vld [vmem:[%s1025_s1 + $0xa4] ss:$16 sps:$4 sm:$0xff]  }
   0x4   :  { %243 = vmatpush1.bf16.msra.mxu0 %v659_v3  ;;  %316 = vmatpush1.bf16.msra.mxu1 %v660_v4  ;;  %v669_v10 = vld [vmem:[%s1025_s1 + $0xac] ss:$16 sps:$4 sm:$0xff]   ;;  %v671_v11 = vld [vmem:[%s1025_s1 + $0xa0] ss:$16 sps:$4 sm:$0xff]   ;;  %v672_v12 = vld [vmem:[%s1025_s1 + $0xa8] ss:$16 sps:$4 sm:$0xff]  }
   0x5   :  { %244 = vmatprep.subr.bf16.mxu0 %v661_v5  ;;  %317 = vmatprep.subr.bf16.mxu1 %v663_v6  ;;  %v673_v13 = vld [vmem:[%s1025_s1 + $0x84] ss:$16 sps:$4 sm:$0xff]   ;;  %v675_v14 = vld [vmem:[%s1025_s1 + $0x8c] ss:$16 sps:$4 sm:$0xff]   ;;  %v677_v15 = vld [vmem:[%s1025_s1 + $0x80] ss:$16 sps:$4 sm:$0xff]  }
   0x6   :  { %v678_v16 = vld [vmem:[%s1025_s1 + $0x88] ss:$16 sps:$4 sm:$0xff]   ;;  %v679_v17 = vld [vmem:[%s1025_s1 + $0x64] ss:$16 sps:$4 sm:$0xff]   ;;  %v681_v18 = vld [vmem:[%s1025_s1 + $0x6c] ss:$16 sps:$4 sm:$0xff]  }
   0x7   :  { %v683_v19 = vld [vmem:[%s1025_s1 + $0x60] ss:$16 sps:$4 sm:$0xff]   ;;  %v684_v20 = vld [vmem:[%s1025_s1 + $0x68] ss:$16 sps:$4 sm:$0xff]   ;;  %v685_v21 = vld [vmem:[%s1025_s1 + $0x44] ss:$16 sps:$4 sm:$0xff]  }
   0x8   :  { %245 = vmatpush1.bf16.msra.mxu0 %v665_v7  ;;  %318 = vmatpush1.bf16.msra.mxu1 %v666_v8  ;;  %v687_v22 = vld [vmem:[%s1025_s1 + $0x4c] ss:$16 sps:$4 sm:$0xff]   ;;  %v689_v23 = vld [vmem:[%s1025_s1 + $0x40] ss:$16 sps:$4 sm:$0xff]   ;;  %v690_v24 = vld [vmem:[%s1025_s1 + $0x48] ss:$16 sps:$4 sm:$0xff]  }
   0x9   :  { %246 = vmatprep.subr.bf16.mxu0 %v667_v9  ;;  %319 = vmatprep.subr.bf16.mxu1 %v669_v10  ;;  %v691_v25 = vld [vmem:[%s1025_s1 + $0x24] ss:$16 sps:$4 sm:$0xff]   ;;  %v693_v26 = vld [vmem:[%s1025_s1 + $0x2c] ss:$16 sps:$4 sm:$0xff]   ;;  %v695_v27 = vld [vmem:[%s1025_s1 + $0x20] ss:$16 sps:$4 sm:$0xff]  }
   0xa   :  { %v696_v28 = vld [vmem:[%s1025_s1 + $0x28] ss:$16 sps:$4 sm:$0xff]   ;;  %v697_v29 = vld [vmem:[%s1025_s1 + $0x4] ss:$16 sps:$4 sm:$0xff]   ;;  %v699_v30 = vld [vmem:[%s1025_s1 + $0xc] ss:$16 sps:$4 sm:$0xff]  }
   0xb   :  { %v390_v31 = vld [vmem:[%s1027_s2 + $0x10] sm:$0xff]  ;;  %v388_v32 = vld [vmem:[%s1027_s2] sm:$0xff]  ;;  %v391_v33 = vld [vmem:[%s1027_s2 + $0x18] sm:$0xff] }
   0xc   :  { %247 = vmatpush1.bf16.msra.mxu0 %v671_v11  ;;  %320 = vmatpush1.bf16.msra.mxu1 %v672_v12  ;;  %v389_v34 = vld [vmem:[%s1027_s2 + $0x8] sm:$0xff]  ;;  %v701_v35 = vld [vmem:[%s1025_s1] ss:$16 sps:$4 sm:$0xff]   ;;  %v395_v40 = vld [vmem:[%s1027_s2 + $0x38] sm:$0xff] }
   0xd   :  { %248 = vmatprep.subr.bf16.mxu0 %v673_v13  ;;  %321 = vmatprep.subr.bf16.mxu1 %v675_v14  ;;  %v702_v36 = vld [vmem:[%s1025_s1 + $0x8] ss:$16 sps:$4 sm:$0xff]   ;;  %v703_v37 = vld [vmem:[%s1026_s0] sm:$0xff]   ;;  %v394_v41 = vld [vmem:[%s1027_s2 + $0x30] sm:$0xff] }
   0xe   :  { %408 = vperm.xlu1 %654, %v390_v31   ;;  %398 = vperm.xlu0 %653, %v388_v32   ;;  %v393_v38 = vld [vmem:[%s1027_s2 + $0x28] sm:$0xff]  ;;  %v392_v39 = vld [vmem:[%s1027_s2 + $0x20] sm:$0xff]  ;;  %v471_v45 = vld [vmem:[%s1028_s3 + $0x18] sm:$0xff] }
   0xf   :  { %v704_v42 = vld [vmem:[%s1026_s0 + $0x8] sm:$0xff]   ;;  %v468_v44 = vld [vmem:[%s1028_s3] sm:$0xff]  ;;  %v470_v46 = vld [vmem:[%s1028_s3 + $0x10] sm:$0xff] }
  0x10   :  { %249 = vmatpush1.bf16.msra.mxu0 %v677_v15  ;;  %322 = vmatpush1.bf16.msra.mxu1 %v678_v16  ;;  %v469_v43 = vld [vmem:[%s1028_s3 + $0x8] sm:$0xff]  ;;  %v705_v47 = vld [vmem:[%s1026_s0 + $0x10] sm:$0xff]   ;;  %v472_v49 = vld [vmem:[%s1028_s3 + $0x20] sm:$0xff] }
  0x11   :  { %250 = vmatprep.subr.bf16.mxu0 %v679_v17  ;;  %323 = vmatprep.subr.bf16.mxu1 %v681_v18  ;;  %v473_v48 = vld [vmem:[%s1028_s3 + $0x28] sm:$0xff]  ;;  %v475_v50 = vld [vmem:[%s1028_s3 + $0x38] sm:$0xff]  ;;  %v474_v51 = vld [vmem:[%s1028_s3 + $0x30] sm:$0xff] }
  0x12   :  { %413 = vperm.xlu1 %654, %v391_v33   ;;  %403 = vperm.xlu0 %653, %v389_v34   ;;  %v706_v52 = vld [vmem:[%s1026_s0 + $0x18] sm:$0xff]  }
  0x14   :  { %251 = vmatpush1.bf16.msra.mxu0 %v683_v19  ;;  %324 = vmatpush1.bf16.msra.mxu1 %v684_v20 }
  0x15   :  { %252 = vmatprep.subr.bf16.mxu0 %v685_v21  ;;  %325 = vmatprep.subr.bf16.mxu1 %v687_v22 }
  0x16   :  { %423 = vperm.xlu1 %654, %v393_v38   ;;  %418 = vperm.xlu0 %653, %v392_v39  }
  0x18   :  { %253 = vmatpush1.bf16.msra.mxu0 %v689_v23  ;;  %326 = vmatpush1.bf16.msra.mxu1 %v690_v24 }
  0x19   :  { %254 = vmatprep.subr.bf16.mxu0 %v691_v25  ;;  %327 = vmatprep.subr.bf16.mxu1 %v693_v26 }
  0x1a   :  { %433 = vperm.xlu1 %654, %v395_v40   ;;  %428 = vperm.xlu0 %653, %v394_v41  }
  0x1c   :  { %255 = vmatpush1.bf16.msra.mxu0 %v695_v27  ;;  %328 = vmatpush1.bf16.msra.mxu1 %v696_v28 }
  0x1d   :  { %256 = vmatprep.subr.bf16.mxu0 %v697_v29  ;;  %329 = vmatprep.subr.bf16.mxu1 %v699_v30 }
  0x1e   :  { %483 = vperm.xlu1 %654, %v469_v43   ;;  %478 = vperm.xlu0 %653, %v468_v44  }
  0x20   :  { %257 = vmatpush1.bf16.msra.mxu0 %v701_v35  ;;  %330 = vmatpush1.bf16.msra.mxu1 %v702_v36 }
  0x22   :  { %493 = vperm.xlu1 %654, %v471_v45   ;;  %488 = vperm.xlu0 %653, %v470_v46  }
  0x23   :  { %275 = vmatmul.mubr.bf16.vlgmr.msra.gmra.mxu0 %v703_v37  ;;  %348 = vmatmul.mubr.bf16.vlgmr.msra.gmra.mxu1 %v703_v37 }
  0x24   :  { %284 = vmatprep.mubr.bf16.mxu0 %v707_v1  ;;  %357 = vmatprep.mubr.bf16.mxu1 %v707_v1 }
  0x26   :  { %503 = vperm.xlu1 %654, %v473_v48   ;;  %498 = vperm.xlu0 %653, %v472_v49  }
  0x2a   :  { %513 = vperm.xlu1 %654, %v475_v50   ;;  %508 = vperm.xlu0 %653, %v474_v51  }
  0x2b   :  { %285 = vmatmul.mubr.bf16.gmra.mxu0 %v704_v42  ;;  %358 = vmatmul.mubr.bf16.gmra.mxu1 %v704_v42 }
  0x2c   :  { %294 = vmatprep.mubr.bf16.mxu0 %v707_v1  ;;  %367 = vmatprep.mubr.bf16.mxu1 %v707_v1 }
  0x33   :  { %295 = vmatmul.mubr.bf16.gmra.mxu0 %v705_v47  ;;  %368 = vmatmul.mubr.bf16.gmra.mxu1 %v705_v47 }
  0x34   :  { %304 = vmatprep.mubr.bf16.mxu0 %v707_v1  ;;  %377 = vmatprep.mubr.bf16.mxu1 %v707_v1 }
  0x3b   :  { %305 = vmatmul.mubr.bf16.gmra.mxu0 %v706_v52  ;;  %378 = vmatmul.mubr.bf16.gmra.mxu1 %v706_v52 }
  0x89   :  { %v399_v53 = vpop.permute.xlu0 %398  ;;  %v409_v54 = vpop.permute.xlu1 %408 }
  0x8d   :  { %v404_v55 = vpop.permute.xlu0 %403  ;;  %v899_v56 = vpop.permute.xlu1 %413 }
  0x91   :  { %v901_v57 = vpop.permute.xlu0 %418  ;;  %v903_v58 = vpop.permute.xlu1 %423 }
  0x95   :  { %v905_v59 = vpop.permute.xlu0 %428  ;;  %v907_v62 = vpop.permute.xlu1 %433 }
  0x99   :  { %v479_v63 = vpop.permute.xlu0 %478  ;;  %v484_v18 = vpop.permute.xlu1 %483 }
  0x9d   :  { %v489_v27 = vpop.permute.xlu0 %488  ;;  %v494_v44 = vpop.permute.xlu1 %493 }
  0xe3   :  { %v276_v60 = vpop.f32.mrf.mxu0  ;;  %v349_v61 = vpop.f32.mrf.mxu1 }
  0xe4   :  { %v436_v0 = vmul.f32 %v399_v53, %v276_v60  ;;  %v438_v1 = vmul.f32 %v399_v53, %v349_v61 }
  0xe5   :  { %v278_v2 = vpop.f32.mrf.mxu0  ;;  %v351_v3 = vpop.f32.mrf.mxu1 }
  0xe6   :  { %v516_v4 = vadd.f32 %v479_v63, %v436_v0  ;;  %v518_v5 = vadd.f32 %v479_v63, %v438_v1  ;;  %v437_v6 = vmul.f32 %v399_v53, %v278_v2  ;;  %v439_v7 = vmul.f32 %v399_v53, %v351_v3 }
  0xe7   :  { %v280_v8 = vpop.f32.mrf.mxu0  ;;  %v353_v9 = vpop.f32.mrf.mxu1 }
  0xe8   :  { %v548_v10 = vmax.f32 %v516_v4, 0.0  ;;  %v550_v11 = vmax.f32 %v518_v5, 0.0  ;;  %v517_v12 = vadd.f32 %v479_v63, %v437_v6  ;;  %v519_v13 = vadd.f32 %v479_v63, %v439_v7 }
  0xe9   :  { %v440_v14 = vmul.f32 %v404_v55, %v280_v8  ;;  %v442_v15 = vmul.f32 %v404_v55, %v353_v9  ;;  %v282_v16 = vpop.f32.mrf.mxu0  ;;  %v355_v17 = vpop.f32.mrf.mxu1 }
  0xea   :  { %580 = vst [vmem:[%s1029_s4] sm:$0xff] %v548_v10  ;;  %582 = vst [vmem:[%s1029_s4 + $0x10] sm:$0xff] %v550_v11  ;;  %v549_v19 = vmax.f32 %v517_v12, 0.0  ;;  %v551_v20 = vmax.f32 %v519_v13, 0.0  ;;  %v441_v21 = vmul.f32 %v404_v55, %v282_v16  ;;  %v443_v22 = vmul.f32 %v404_v55, %v355_v17  ;;  %v499_v9 = vpop.permute.xlu0 %498 }
  0xeb   :  { %v520_v23 = vadd.f32 %v484_v18, %v440_v14  ;;  %v522_v24 = vadd.f32 %v484_v18, %v442_v15  ;;  %v286_v25 = vpop.f32.mrf.mxu0  ;;  %v359_v26 = vpop.f32.mrf.mxu1 }
  0xec   :  { %581 = vst [vmem:[%s1029_s4 + $0x8] sm:$0xff] %v549_v19  ;;  %583 = vst [vmem:[%s1029_s4 + $0x18] sm:$0xff] %v551_v20  ;;  %v521_v28 = vadd.f32 %v484_v18, %v441_v21  ;;  %v523_v29 = vadd.f32 %v484_v18, %v443_v22  ;;  %v444_v30 = vmul.f32 %v409_v54, %v286_v25  ;;  %v504_v18 = vpop.permute.xlu1 %503 }
  0xed   :  { %v446_v31 = vmul.f32 %v409_v54, %v359_v26  ;;  %v552_v32 = vmax.f32 %v520_v23, 0.0  ;;  %v554_v33 = vmax.f32 %v522_v24, 0.0  ;;  %v288_v34 = vpop.f32.mrf.mxu0  ;;  %v361_v35 = vpop.f32.mrf.mxu1 }
  0xee   :  { %v553_v36 = vmax.f32 %v521_v28, 0.0  ;;  %v555_v37 = vmax.f32 %v523_v29, 0.0  ;;  %v524_v38 = vadd.f32 %v489_v27, %v444_v30  ;;  %v445_v40 = vmul.f32 %v409_v54, %v288_v34  ;;  %v509_v34 = vpop.permute.xlu0 %508 }
  0xef   :  { %v526_v39 = vadd.f32 %v489_v27, %v446_v31  ;;  %584 = vst [vmem:[%s1029_s4 + $0x20] sm:$0xff] %v552_v32  ;;  %586 = vst [vmem:[%s1029_s4 + $0x30] sm:$0xff] %v554_v33  ;;  %v447_v41 = vmul.f32 %v409_v54, %v361_v35  ;;  %v290_v42 = vpop.f32.mrf.mxu0  ;;  %v363_v43 = vpop.f32.mrf.mxu1 }
  0xf0   :  { %585 = vst [vmem:[%s1029_s4 + $0x28] sm:$0xff] %v553_v36  ;;  %587 = vst [vmem:[%s1029_s4 + $0x38] sm:$0xff] %v555_v37  ;;  %v556_v45 = vmax.f32 %v524_v38, 0.0  ;;  %v448_v47 = vmul.f32 %v899_v56, %v290_v42  ;;  %v450_v48 = vmul.f32 %v899_v56, %v363_v43  ;;  %v525_v49 = vadd.f32 %v489_v27, %v445_v40 }
  0xf1   :  { %v558_v46 = vmax.f32 %v526_v39, 0.0  ;;  %v527_v50 = vadd.f32 %v489_v27, %v447_v41  ;;  %v292_v51 = vpop.f32.mrf.mxu0  ;;  %v365_v52 = vpop.f32.mrf.mxu1 }
  0xf2   :  { %588 = vst [vmem:[%s1029_s4 + $0x40] sm:$0xff] %v556_v45  ;;  %v528_v53 = vadd.f32 %v494_v44, %v448_v47  ;;  %v530_v54 = vadd.f32 %v494_v44, %v450_v48  ;;  %v449_v55 = vmul.f32 %v899_v56, %v292_v51  ;;  %v451_v60 = vmul.f32 %v899_v56, %v365_v52 }
  0xf3   :  { %590 = vst [vmem:[%s1029_s4 + $0x50] sm:$0xff] %v558_v46  ;;  %v557_v61 = vmax.f32 %v525_v49, 0.0  ;;  %v559_v63 = vmax.f32 %v527_v50, 0.0  ;;  %v296_v0 = vpop.f32.mrf.mxu0  ;;  %v369_v1 = vpop.f32.mrf.mxu1 }
  0xf4   :  { %v560_v2 = vmax.f32 %v528_v53, 0.0  ;;  %v562_v3 = vmax.f32 %v530_v54, 0.0  ;;  %v529_v4 = vadd.f32 %v494_v44, %v449_v55  ;;  %v531_v5 = vadd.f32 %v494_v44, %v451_v60 }
  0xf5   :  { %589 = vst [vmem:[%s1029_s4 + $0x48] sm:$0xff] %v557_v61  ;;  %591 = vst [vmem:[%s1029_s4 + $0x58] sm:$0xff] %v559_v63  ;;  %v452_v6 = vmul.f32 %v901_v57, %v296_v0  ;;  %v454_v56 = vmul.f32 %v901_v57, %v369_v1  ;;  %v298_v7 = vpop.f32.mrf.mxu0  ;;  %v371_v8 = vpop.f32.mrf.mxu1 }
  0xf6   :  { %592 = vst [vmem:[%s1029_s4 + $0x60] sm:$0xff] %v560_v2  ;;  %594 = vst [vmem:[%s1029_s4 + $0x70] sm:$0xff] %v562_v3  ;;  %v561_v10 = vmax.f32 %v529_v4, 0.0  ;;  %v563_v11 = vmax.f32 %v531_v5, 0.0  ;;  %v453_v12 = vmul.f32 %v901_v57, %v298_v7  ;;  %v455_v13 = vmul.f32 %v901_v57, %v371_v8  ;;  %v514_v61 = vpop.permute.xlu1 %513 }
  0xf7   :  { %v532_v14 = vadd.f32 %v499_v9, %v452_v6  ;;  %v534_v15 = vadd.f32 %v499_v9, %v454_v56  ;;  %v300_v16 = vpop.f32.mrf.mxu0  ;;  %v373_v17 = vpop.f32.mrf.mxu1 }
  0xf8   :  { %593 = vst [vmem:[%s1029_s4 + $0x68] sm:$0xff] %v561_v10  ;;  %595 = vst [vmem:[%s1029_s4 + $0x78] sm:$0xff] %v563_v11  ;;  %v533_v19 = vadd.f32 %v499_v9, %v453_v12  ;;  %v535_v20 = vadd.f32 %v499_v9, %v455_v13  ;;  %v456_v21 = vmul.f32 %v903_v58, %v300_v16 }
  0xf9   :  { %v458_v22 = vmul.f32 %v903_v58, %v373_v17  ;;  %v564_v57 = vmax.f32 %v532_v14, 0.0  ;;  %v566_v23 = vmax.f32 %v534_v15, 0.0  ;;  %v302_v24 = vpop.f32.mrf.mxu0  ;;  %v375_v25 = vpop.f32.mrf.mxu1 }
  0xfa   :  { %v565_v26 = vmax.f32 %v533_v19, 0.0  ;;  %v567_v27 = vmax.f32 %v535_v20, 0.0  ;;  %v536_v28 = vadd.f32 %v504_v18, %v456_v21  ;;  %v457_v30 = vmul.f32 %v903_v58, %v302_v24 }
  0xfb   :  { %v538_v29 = vadd.f32 %v504_v18, %v458_v22  ;;  %596 = vst [vmem:[%s1029_s4 + $0x80] sm:$0xff] %v564_v57  ;;  %598 = vst [vmem:[%s1029_s4 + $0x90] sm:$0xff] %v566_v23  ;;  %v459_v31 = vmul.f32 %v903_v58, %v375_v25  ;;  %v306_v32 = vpop.f32.mrf.mxu0  ;;  %v379_v33 = vpop.f32.mrf.mxu1 }
  0xfc   :  { %597 = vst [vmem:[%s1029_s4 + $0x88] sm:$0xff] %v565_v26  ;;  %599 = vst [vmem:[%s1029_s4 + $0x98] sm:$0xff] %v567_v27  ;;  %v568_v35 = vmax.f32 %v536_v28, 0.0  ;;  %v460_v37 = vmul.f32 %v905_v59, %v306_v32  ;;  %v462_v38 = vmul.f32 %v905_v59, %v379_v33  ;;  %v537_v39 = vadd.f32 %v504_v18, %v457_v30 }
  0xfd   :  { %v570_v36 = vmax.f32 %v538_v29, 0.0  ;;  %v539_v40 = vadd.f32 %v504_v18, %v459_v31  ;;  %v308_v58 = vpop.f32.mrf.mxu0  ;;  %v381_v41 = vpop.f32.mrf.mxu1 }
  0xfe   :  { %600 = vst [vmem:[%s1029_s4 + $0xa0] sm:$0xff] %v568_v35  ;;  %v540_v42 = vadd.f32 %v509_v34, %v460_v37  ;;  %v542_v43 = vadd.f32 %v509_v34, %v462_v38  ;;  %v461_v44 = vmul.f32 %v905_v59, %v308_v58  ;;  %v463_v45 = vmul.f32 %v905_v59, %v381_v41 }
  0xff   :  { %602 = vst [vmem:[%s1029_s4 + $0xb0] sm:$0xff] %v570_v36  ;;  %v569_v46 = vmax.f32 %v537_v39, 0.0  ;;  %v571_v47 = vmax.f32 %v539_v40, 0.0  ;;  %v310_v48 = vpop.f32.mrf.mxu0  ;;  %v383_v49 = vpop.f32.mrf.mxu1 }
 0x100   :  { %v572_v50 = vmax.f32 %v540_v42, 0.0  ;;  %v574_v51 = vmax.f32 %v542_v43, 0.0  ;;  %v541_v52 = vadd.f32 %v509_v34, %v461_v44  ;;  %v543_v53 = vadd.f32 %v509_v34, %v463_v45 }
 0x101   :  { %601 = vst [vmem:[%s1029_s4 + $0xa8] sm:$0xff] %v569_v46  ;;  %603 = vst [vmem:[%s1029_s4 + $0xb8] sm:$0xff] %v571_v47  ;;  %v464_v54 = vmul.f32 %v907_v62, %v310_v48  ;;  %v466_v59 = vmul.f32 %v907_v62, %v383_v49  ;;  %v312_v55 = vpop.f32.mrf.mxu0  ;;  %v385_v60 = vpop.f32.mrf.mxu1 }
 0x102   :  { %604 = vst [vmem:[%s1029_s4 + $0xc0] sm:$0xff] %v572_v50  ;;  %606 = vst [vmem:[%s1029_s4 + $0xd0] sm:$0xff] %v574_v51  ;;  %v573_v63 = vmax.f32 %v541_v52, 0.0  ;;  %v575_v0 = vmax.f32 %v543_v53, 0.0  ;;  %v465_v1 = vmul.f32 %v907_v62, %v312_v55  ;;  %v467_v2 = vmul.f32 %v907_v62, %v385_v60 }
 0x103   :  { %v544_v3 = vadd.f32 %v514_v61, %v464_v54  ;;  %v546_v4 = vadd.f32 %v514_v61, %v466_v59 }
 0x104   :  { %605 = vst [vmem:[%s1029_s4 + $0xc8] sm:$0xff] %v573_v63  ;;  %607 = vst [vmem:[%s1029_s4 + $0xd8] sm:$0xff] %v575_v0  ;;  %v545_v5 = vadd.f32 %v514_v61, %v465_v1  ;;  %v547_v6 = vadd.f32 %v514_v61, %v467_v2 }
 0x105   :  { %v576_v56 = vmax.f32 %v544_v3, 0.0  ;;  %v578_v7 = vmax.f32 %v546_v4, 0.0 }
 0x106   :  { %v577_v8 = vmax.f32 %v545_v5, 0.0  ;;  %v579_v9 = vmax.f32 %v547_v6, 0.0 }
 0x107   :  { %608 = vst [vmem:[%s1029_s4 + $0xe0] sm:$0xff] %v576_v56  ;;  %610 = vst [vmem:[%s1029_s4 + $0xf0] sm:$0xff] %v578_v7 }
 0x108   :  { %609 = vst [vmem:[%s1029_s4 + $0xe8] sm:$0xff] %v577_v8  ;;  %611 = vst [vmem:[%s1029_s4 + $0xf8] sm:$0xff] %v579_v9 }

// kernel: forward.13
= control target key start
LH: loop header
LB: loop body
LE: loop exit
PB: predicated region body
PF: predicated region fallthrough
CT: control target
= control target key end

     0   :  { %vm2826_vm0 = vcmask 261120   ;;  %s5036_s1 = inlined_call_operand.vmem [shape: bf16[2048,32], index: 1, kind: input, shape index: {}]   ;;  %s5037_s0 = inlined_call_operand.vmem [shape: bf16[128,2048], index: 0, kind: input, shape index: {}]   ;;  %s5038_s2 = inlined_call_operand.vmem [shape: f32[128,1], index: 2, kind: input, shape index: {}]   ;;  %s5039_s3 = inlined_call_operand.vmem [shape: f32[128,1], index: 3, kind: input, shape index: {}]   ;;  %s5040_s4 = inlined_call_operand.vmem [shape: f32[128,32], index: 4, kind: output, shape index: {}]  }
   0x1   :  { %v3618_v0 = vld [vmem:[%s5036_s1 + $0x78] sm:$0xff]   ;;  %v3622_v4 = vld [vmem:[%s5036_s1 + $0x70] sm:$0xff]   ;;  %v3626_v8 = vld [vmem:[%s5036_s1 + $0x68] sm:$0xff]  }
   0x2   :  { %v3619_v1 = vld [vmem:[%s5036_s1 + $0xf8] sm:$0xff]   ;;  %3103 = vmatprep.subr.bf16.mxu0 %v3618_v0  ;;  %v3623_v5 = vld [vmem:[%s5036_s1 + $0xf0] sm:$0xff]   ;;  %v3627_v9 = vld [vmem:[%s5036_s1 + $0xe8] sm:$0xff]  }
   0x3   :  { %v3620_v2 = vld [vmem:[%s5036_s1 + $0x38] sm:$0xff]   ;;  %3167 = vmatprep.subr.bf16.mxu1 %v3619_v1  ;;  %v3624_v6 = vld [vmem:[%s5036_s1 + $0x30] sm:$0xff]   ;;  %v3628_v10 = vld [vmem:[%s5036_s1 + $0x28] sm:$0xff]  }
   0x4   :  { %v3621_v3 = vld [vmem:[%s5036_s1 + $0xb8] sm:$0xff]   ;;  %3104 = vmatpush3.bf16.msra.mxu0 %v3620_v2  ;;  %v3625_v7 = vld [vmem:[%s5036_s1 + $0xb0] sm:$0xff]   ;;  %v3629_v11 = vld [vmem:[%s5036_s1 + $0xa8] sm:$0xff]  }
   0x5   :  { %3168 = vmatpush3.bf16.msra.mxu1 %v3621_v3  ;;  %3105 = vmatprep.subr.bf16.mxu0 %v3622_v4  ;;  %v3630_v12 = vld [vmem:[%s5036_s1 + $0x60] sm:$0xff]   ;;  %v3634_v16 = vld [vmem:[%s5036_s1 + $0x58] sm:$0xff]   ;;  %v3638_v20 = vld [vmem:[%s5036_s1 + $0x50] sm:$0xff]  }
   0x6   :  { %3169 = vmatprep.subr.bf16.mxu1 %v3623_v5  ;;  %v3631_v13 = vld [vmem:[%s5036_s1 + $0xe0] sm:$0xff]   ;;  %v3635_v17 = vld [vmem:[%s5036_s1 + $0xd8] sm:$0xff]   ;;  %v3639_v21 = vld [vmem:[%s5036_s1 + $0xd0] sm:$0xff]  }
   0x7   :  { %v3632_v14 = vld [vmem:[%s5036_s1 + $0x20] sm:$0xff]   ;;  %v3636_v18 = vld [vmem:[%s5036_s1 + $0x18] sm:$0xff]   ;;  %v3640_v22 = vld [vmem:[%s5036_s1 + $0x10] sm:$0xff]  }
   0x8   :  { %3106 = vmatpush3.bf16.msra.mxu0 %v3624_v6  ;;  %v3633_v15 = vld [vmem:[%s5036_s1 + $0xa0] sm:$0xff]   ;;  %v3637_v19 = vld [vmem:[%s5036_s1 + $0x98] sm:$0xff]   ;;  %v3641_v23 = vld [vmem:[%s5036_s1 + $0x90] sm:$0xff]  }
   0x9   :  { %3170 = vmatpush3.bf16.msra.mxu1 %v3625_v7  ;;  %3107 = vmatprep.subr.bf16.mxu0 %v3626_v8  ;;  %v3642_v24 = vld [vmem:[%s5036_s1 + $0x48] sm:$0xff]   ;;  %v3646_v28 = vld [vmem:[%s5036_s1 + $0x40] sm:$0xff]   ;;  %v3650_v40 = vld [vmem:[%s5036_s1 + $0x178] sm:$0xff]  }
   0xa   :  { %3171 = vmatprep.subr.bf16.mxu1 %v3627_v9  ;;  %v3643_v25 = vld [vmem:[%s5036_s1 + $0xc8] sm:$0xff]   ;;  %v3647_v29 = vld [vmem:[%s5036_s1 + $0xc0] sm:$0xff]   ;;  %v3651_v41 = vld [vmem:[%s5036_s1 + $0x138] sm:$0xff]  }
   0xb   :  { %v3644_v26 = vld [vmem:[%s5036_s1 + $0x8] sm:$0xff]   ;;  %v3648_v30 = vld [vmem:[%s5036_s1] sm:$0xff]   ;;  %v3652_v42 = vld [vmem:[%s5036_s1 + $0x1f8] sm:$0xff]  }
   0xc   :  { %3108 = vmatpush3.bf16.msra.mxu0 %v3628_v10  ;;  %v3645_v27 = vld [vmem:[%s5036_s1 + $0x88] sm:$0xff]   ;;  %v3649_v31 = vld [vmem:[%s5036_s1 + $0x80] sm:$0xff]   ;;  %v3653_v43 = vld [vmem:[%s5036_s1 + $0x1b8] sm:$0xff]  }
   0xd   :  { %3172 = vmatpush3.bf16.msra.mxu1 %v3629_v11  ;;  %3109 = vmatprep.subr.bf16.mxu0 %v3630_v12  ;;  %v18_v32 = vld [vmem:[%s5037_s0] sm:$0xff]  ;;  %v19_v34 = vld [vmem:[%s5037_s0 + $0x8] sm:$0xff]  ;;  %v3654_v50 = vld [vmem:[%s5036_s1 + $0x170] sm:$0xff]  }
   0xe   :  { %3173 = vmatprep.subr.bf16.mxu1 %v3631_v13  ;;  %v26_v33 = vld [vmem:[%s5037_s0 + $0x40] sm:$0xff]  ;;  %v27_v37 = vld [vmem:[%s5037_s0 + $0x48] sm:$0xff]  ;;  %v3655_v52 = vld [vmem:[%s5036_s1 + $0x130] sm:$0xff]  }
   0xf   :  { %v2847_v35 = vcombine.low %v18_v32, %v26_v33  ;;  %v2848_v36 = vcombine.high %v18_v32, %v26_v33  ;;  %v2849_v38 = vcombine.low %v19_v34, %v27_v37  ;;  %v2850_v39 = vcombine.high %v19_v34, %v27_v37  ;;  %v34_v44 = vld [vmem:[%s5037_s0 + $0x80] sm:$0xff]  ;;  %v35_v47 = vld [vmem:[%s5037_s0 + $0x88] sm:$0xff]  ;;  %v3656_v54 = vld [vmem:[%s5036_s1 + $0x1f0] sm:$0xff]  }
  0x10   :  { %3110 = vmatpush3.bf16.msra.mxu0 %v3632_v14  ;;  %v42_v45 = vld [vmem:[%s5037_s0 + $0xc0] sm:$0xff]  ;;  %v43_v48 = vld [vmem:[%s5037_s0 + $0xc8] sm:$0xff]  ;;  %v3657_v55 = vld [vmem:[%s5036_s1 + $0x1b0] sm:$0xff]  }
  0x11   :  { %3174 = vmatpush3.bf16.msra.mxu1 %v3633_v15  ;;  %3111 = vmatprep.subr.bf16.mxu0 %v3634_v16  ;;  %v2864_v46 = vcombine.high %v34_v44, %v42_v45  ;;  %v2866_v49 = vcombine.high %v35_v47, %v43_v48  ;;  %v2863_v51 = vcombine.low %v34_v44, %v42_v45  ;;  %v50_v56 = vld [vmem:[%s5037_s0 + $0x100] sm:$0xff]  ;;  %v51_v58 = vld [vmem:[%s5037_s0 + $0x108] sm:$0xff]  ;;  %v3672_v32 = vld [vmem:[%s5036_s1 + $0x1d0] sm:$0xff]  }
  0x12   :  { %3175 = vmatprep.subr.bf16.mxu1 %v3635_v17  ;;  %1842 = vmatprep.mubr.bf16.mxu0 %v2848_v36  ;;  %v2865_v53 = vcombine.low %v35_v47, %v43_v48  ;;  %v58_v57 = vld [vmem:[%s5037_s0 + $0x140] sm:$0xff]  ;;  %v59_v59 = vld [vmem:[%s5037_s0 + $0x148] sm:$0xff]  ;;  %v3673_v33 = vld [vmem:[%s5036_s1 + $0x190] sm:$0xff]  }
  0x13   :  { %1939 = vmatprep.mubr.bf16.mxu1 %v2850_v39  ;;  %v2880_v60 = vcombine.high %v50_v56, %v58_v57  ;;  %v2882_v61 = vcombine.high %v51_v58, %v59_v59  ;;  %v3658_v62 = vld [vmem:[%s5036_s1 + $0x168] sm:$0xff]   ;;  %v2879_v2 = vcombine.low %v50_v56, %v58_v57  ;;  %v66_v3 = vld [vmem:[%s5037_s0 + $0x180] sm:$0xff]  ;;  %v2881_v6 = vcombine.low %v51_v58, %v59_v59  ;;  %v3682_v56 = vld [vmem:[%s5036_s1 + $0x278] sm:$0xff]  }
  0x14   :  { %3112 = vmatpush3.bf16.msra.mxu0 %v3636_v18  ;;  %v3659_v63 = vld [vmem:[%s5036_s1 + $0x128] sm:$0xff]   ;;  %v74_v4 = vld [vmem:[%s5037_s0 + $0x1c0] sm:$0xff]  ;;  %v3666_v18 = vld [vmem:[%s5036_s1 + $0x158] sm:$0xff]  }
  0x15   :  { %3176 = vmatpush3.bf16.msra.mxu1 %v3637_v19  ;;  %3113 = vmatprep.subr.bf16.mxu0 %v3638_v20  ;;  %v3660_v0 = vld [vmem:[%s5036_s1 + $0x1e8] sm:$0xff]   ;;  %v2896_v7 = vcombine.high %v66_v3, %v74_v4  ;;  %v3662_v10 = vld [vmem:[%s5036_s1 + $0x160] sm:$0xff]   ;;  %v2895_v19 = vcombine.low %v66_v3, %v74_v4  ;;  %v3667_v20 = vld [vmem:[%s5036_s1 + $0x118] sm:$0xff]  }
  0x16   :  { %3177 = vmatprep.subr.bf16.mxu1 %v3639_v21  ;;  %v3661_v1 = vld [vmem:[%s5036_s1 + $0x1a8] sm:$0xff]   ;;  %v3663_v11 = vld [vmem:[%s5036_s1 + $0x120] sm:$0xff]   ;;  %v3684_v58 = vld [vmem:[%s5036_s1 + $0x2f8] sm:$0xff]  }
  0x17   :  { %v67_v5 = vld [vmem:[%s5037_s0 + $0x188] sm:$0xff]  ;;  %v3664_v12 = vld [vmem:[%s5036_s1 + $0x1e0] sm:$0xff]   ;;  %v29_v3 = vld [vmem:[%s5037_s0 + $0x58] sm:$0xff] }
  0x18   :  { %3114 = vmatpush3.bf16.msra.mxu0 %v3640_v22  ;;  %v75_v8 = vld [vmem:[%s5037_s0 + $0x1c8] sm:$0xff]  ;;  %v3665_v13 = vld [vmem:[%s5036_s1 + $0x1a0] sm:$0xff]  }
  0x19   :  { %3178 = vmatpush3.bf16.msra.mxu1 %v3641_v23  ;;  %3115 = vmatprep.subr.bf16.mxu0 %v3642_v24  ;;  %v2898_v9 = vcombine.high %v67_v5, %v75_v8  ;;  %v82_v14 = vld [vmem:[%s5037_s0 + $0x200] sm:$0xff]  ;;  %v83_v16 = vld [vmem:[%s5037_s0 + $0x208] sm:$0xff]  ;;  %v2897_v21 = vcombine.low %v67_v5, %v75_v8  ;;  %v3668_v23 = vld [vmem:[%s5036_s1 + $0x1d8] sm:$0xff]  }
  0x1a   :  { %3179 = vmatprep.subr.bf16.mxu1 %v3643_v25  ;;  %v90_v15 = vld [vmem:[%s5037_s0 + $0x240] sm:$0xff]  ;;  %v91_v17 = vld [vmem:[%s5037_s0 + $0x248] sm:$0xff]  ;;  %v3669_v25 = vld [vmem:[%s5036_s1 + $0x198] sm:$0xff]  }
  0x1b   :  { %v2912_v22 = vcombine.high %v82_v14, %v90_v15  ;;  %v2914_v24 = vcombine.high %v83_v16, %v91_v17  ;;  %v2911_v34 = vcombine.low %v82_v14, %v90_v15  ;;  %v3675_v39 = vld [vmem:[%s5036_s1 + $0x108] sm:$0xff]   ;;  %v3679_v48 = vld [vmem:[%s5036_s1 + $0x100] sm:$0xff]   ;;  %v36_v8 = vld [vmem:[%s5037_s0 + $0x90] sm:$0xff] }
  0x1c   :  { %3116 = vmatpush3.bf16.msra.mxu0 %v3644_v26  ;;  %v98_v26 = vld [vmem:[%s5037_s0 + $0x280] sm:$0xff]  ;;  %v115_v44 = vld [vmem:[%s5037_s0 + $0x308] sm:$0xff]  ;;  %v3685_v15 = vld [vmem:[%s5036_s1 + $0x2b8] sm:$0xff]  }
  0x1d   :  { %3180 = vmatpush3.bf16.msra.mxu1 %v3645_v27  ;;  %3117 = vmatprep.subr.bf16.mxu0 %v3646_v28  ;;  %v106_v27 = vld [vmem:[%s5037_s0 + $0x2c0] sm:$0xff]  ;;  %v3670_v28 = vld [vmem:[%s5036_s1 + $0x150] sm:$0xff]   ;;  %v123_v45 = vld [vmem:[%s5037_s0 + $0x348] sm:$0xff] }
  0x1e   :  { %3181 = vmatprep.subr.bf16.mxu1 %v3647_v29  ;;  %v99_v29 = vld [vmem:[%s5037_s0 + $0x288] sm:$0xff]  ;;  %v2928_v36 = vcombine.high %v98_v26, %v106_v27  ;;  %v2927_v47 = vcombine.low %v98_v26, %v106_v27 }
  0x1f   :  { %v131_v57 = vld [vmem:[%s5037_s0 + $0x388] sm:$0xff] }
  0x20   :  { %3118 = vmatpush3.bf16.msra.mxu0 %v3648_v30  ;;  %v107_v30 = vld [vmem:[%s5037_s0 + $0x2c8] sm:$0xff] }
  0x21   :  { %3182 = vmatpush3.bf16.msra.mxu1 %v3649_v31  ;;  %3231 = vmatprep.subr.bf16.mxu0 %v3650_v40  ;;  %v3671_v31 = vld [vmem:[%s5036_s1 + $0x110] sm:$0xff]   ;;  %v2930_v37 = vcombine.high %v99_v29, %v107_v30  ;;  %v3676_v40 = vld [vmem:[%s5036_s1 + $0x1c8] sm:$0xff]  }
  0x22   :  { %3295 = vmatprep.subr.bf16.mxu1 %v3652_v42  ;;  %v122_v42 = vld [vmem:[%s5037_s0 + $0x340] sm:$0xff]  ;;  %v139_v59 = vld [vmem:[%s5037_s0 + $0x3c8] sm:$0xff] }
  0x23   :  { %1843 = vmatmul.mubr.bf16.vlgmr.msra.gmra.mxu0 %v2847_v35  ;;  %v2913_v35 = vcombine.low %v83_v16, %v91_v17  ;;  %v2961_v5 = vcombine.low %v131_v57, %v139_v59  ;;  %v3686_v17 = vld [vmem:[%s5036_s1 + $0x270] sm:$0xff]   ;;  %v3690_v26 = vld [vmem:[%s5036_s1 + $0x268] sm:$0xff]  }
  0x24   :  { %1940 = vmatmul.mubr.bf16.vlgmr.msra.gmra.mxu1 %v2849_v38  ;;  %3232 = vmatpush3.bf16.msra.mxu0 %v3651_v41  ;;  %v3674_v38 = vld [vmem:[%s5036_s1 + $0x148] sm:$0xff]   ;;  %v114_v41 = vld [vmem:[%s5037_s0 + $0x300] sm:$0xff] }
  0x25   :  { %3296 = vmatpush3.bf16.msra.mxu1 %v3653_v43  ;;  %1850 = vmatprep.mubr.bf16.mxu0 %v2864_v46  ;;  %v3677_v43 = vld [vmem:[%s5036_s1 + $0x188] sm:$0xff]   ;;  %v3678_v46 = vld [vmem:[%s5036_s1 + $0x140] sm:$0xff]  }
  0x26   :  { %1947 = vmatprep.mubr.bf16.mxu1 %v2866_v49  ;;  %3233 = vmatprep.subr.bf16.mxu0 %v3654_v50  ;;  %v2929_v49 = vcombine.low %v99_v29, %v107_v30  ;;  %v2944_v50 = vcombine.high %v114_v41, %v122_v42  ;;  %v3692_v27 = vld [vmem:[%s5036_s1 + $0x2e8] sm:$0xff]  }
  0x27   :  { %3297 = vmatprep.subr.bf16.mxu1 %v3656_v54  ;;  %v130_v54 = vld [vmem:[%s5037_s0 + $0x380] sm:$0xff] }
  0x28   :  { %3234 = vmatpush3.bf16.msra.mxu0 %v3655_v52  ;;  %v2946_v52 = vcombine.high %v115_v44, %v123_v45 }
  0x29   :  { %3298 = vmatpush3.bf16.msra.mxu1 %v3657_v55  ;;  %3235 = vmatprep.subr.bf16.mxu0 %v3658_v62  ;;  %v138_v55 = vld [vmem:[%s5037_s0 + $0x3c0] sm:$0xff] }
  0x2a   :  { %3299 = vmatprep.subr.bf16.mxu1 %v3660_v0  ;;  %v2960_v62 = vcombine.high %v130_v54, %v138_v55  ;;  %v20_v0 = vld [vmem:[%s5037_s0 + $0x10] sm:$0xff]  ;;  %v2959_v4 = vcombine.low %v130_v54, %v138_v55  ;;  %v85_v54 = vld [vmem:[%s5037_s0 + $0x218] sm:$0xff] }
  0x2b   :  { %1851 = vmatmul.mubr.bf16.gmra.mxu0 %v2863_v51  ;;  %v3680_v51 = vld [vmem:[%s5036_s1 + $0x1c0] sm:$0xff]   ;;  %v93_v55 = vld [vmem:[%s5037_s0 + $0x258] sm:$0xff] }
  0x2c   :  { %1948 = vmatmul.mubr.bf16.gmra.mxu1 %v2865_v53  ;;  %1858 = vmatprep.mubr.bf16.mxu0 %v2880_v60  ;;  %v3681_v53 = vld [vmem:[%s5036_s1 + $0x180] sm:$0xff]   ;;  %v2943_v60 = vcombine.low %v114_v41, %v122_v42  ;;  %v3698_v42 = vld [vmem:[%s5036_s1 + $0x258] sm:$0xff]  }
  0x2d   :  { %1955 = vmatprep.mubr.bf16.mxu1 %v2882_v61  ;;  %3236 = vmatpush3.bf16.msra.mxu0 %v3659_v63  ;;  %v2945_v61 = vcombine.low %v115_v44, %v123_v45  ;;  %v2962_v63 = vcombine.high %v131_v57, %v139_v59  ;;  %v3697_v41 = vld [vmem:[%s5036_s1 + $0x2a0] sm:$0xff]   ;;  %v3700_v44 = vld [vmem:[%s5036_s1 + $0x2d8] sm:$0xff]   ;;  %v3705_v57 = vld [vmem:[%s5036_s1 + $0x290] sm:$0xff]  }
  0x2e   :  { %3300 = vmatpush3.bf16.msra.mxu1 %v3661_v1  ;;  %3237 = vmatprep.subr.bf16.mxu0 %v3662_v10  ;;  %v28_v1 = vld [vmem:[%s5037_s0 + $0x50] sm:$0xff] }
  0x2f   :  { %3301 = vmatprep.subr.bf16.mxu1 %v3664_v12  ;;  %v2851_v10 = vcombine.low %v20_v0, %v28_v1  ;;  %v37_v12 = vld [vmem:[%s5037_s0 + $0x98] sm:$0xff] }
  0x31   :  { %3238 = vmatpush3.bf16.msra.mxu0 %v3663_v11  ;;  %v3683_v11 = vld [vmem:[%s5036_s1 + $0x238] sm:$0xff]  }
  0x32   :  { %3302 = vmatpush3.bf16.msra.mxu1 %v3665_v13  ;;  %3239 = vmatprep.subr.bf16.mxu0 %v3666_v18  ;;  %v45_v13 = vld [vmem:[%s5037_s0 + $0xd8] sm:$0xff] }
  0x33   :  { %1859 = vmatmul.mubr.bf16.gmra.mxu0 %v2879_v2  ;;  %3303 = vmatprep.subr.bf16.mxu1 %v3668_v23  ;;  %v21_v2 = vld [vmem:[%s5037_s0 + $0x18] sm:$0xff]  ;;  %v2870_v18 = vcombine.high %v37_v12, %v45_v13  ;;  %v60_v23 = vld [vmem:[%s5037_s0 + $0x150] sm:$0xff]  ;;  %v2869_v29 = vcombine.low %v37_v12, %v45_v13 }
  0x34   :  { %1956 = vmatmul.mubr.bf16.gmra.mxu1 %v2881_v6  ;;  %1866 = vmatprep.mubr.bf16.mxu0 %v2896_v7  ;;  %v2852_v6 = vcombine.high %v20_v0, %v28_v1  ;;  %v2854_v7 = vcombine.high %v21_v2, %v29_v3  ;;  %v2853_v14 = vcombine.low %v21_v2, %v29_v3  ;;  %v3707_v1 = vld [vmem:[%s5036_s1 + $0x208] sm:$0xff]   ;;  %v3710_v3 = vld [vmem:[%s5036_s1 + $0x240] sm:$0xff]   ;;  %v3716_v13 = vld [vmem:[%s5036_s1 + $0x3f8] sm:$0xff]  }
  0x35   :  { %1963 = vmatprep.mubr.bf16.mxu1 %v2898_v9  ;;  %3240 = vmatpush3.bf16.msra.mxu0 %v3667_v20  ;;  %v44_v9 = vld [vmem:[%s5037_s0 + $0xd0] sm:$0xff]  ;;  %v2918_v0 = vcombine.high %v85_v54, %v93_v55  ;;  %v3709_v2 = vld [vmem:[%s5036_s1 + $0x288] sm:$0xff]  }
  0x36   :  { %3304 = vmatpush3.bf16.msra.mxu1 %v3669_v25  ;;  %3241 = vmatprep.subr.bf16.mxu0 %v3670_v28  ;;  %v2868_v16 = vcombine.high %v36_v8, %v44_v9  ;;  %v3688_v20 = vld [vmem:[%s5036_s1 + $0x2f0] sm:$0xff]   ;;  %v61_v25 = vld [vmem:[%s5037_s0 + $0x158] sm:$0xff]  ;;  %v2867_v28 = vcombine.low %v36_v8, %v44_v9  ;;  %v3711_v9 = vld [vmem:[%s5036_s1 + $0x200] sm:$0xff]  }
  0x37   :  { %3305 = vmatprep.subr.bf16.mxu1 %v3672_v32  ;;  %v3691_v32 = vld [vmem:[%s5036_s1 + $0x228] sm:$0xff]   ;;  %v109_v8 = vld [vmem:[%s5037_s0 + $0x2d8] sm:$0xff] }
  0x39   :  { %3242 = vmatpush3.bf16.msra.mxu0 %v3671_v31 }
  0x3a   :  { %3306 = vmatpush3.bf16.msra.mxu1 %v3673_v33  ;;  %3243 = vmatprep.subr.bf16.mxu0 %v3674_v38  ;;  %v3693_v33 = vld [vmem:[%s5036_s1 + $0x2a8] sm:$0xff]   ;;  %v69_v38 = vld [vmem:[%s5037_s0 + $0x198] sm:$0xff] }
  0x3b   :  { %1867 = vmatmul.mubr.bf16.gmra.mxu0 %v2895_v19  ;;  %3307 = vmatprep.subr.bf16.mxu1 %v3676_v40  ;;  %v3687_v19 = vld [vmem:[%s5036_s1 + $0x230] sm:$0xff]   ;;  %v3695_v40 = vld [vmem:[%s5036_s1 + $0x220] sm:$0xff]  }
  0x3c   :  { %1964 = vmatmul.mubr.bf16.gmra.mxu1 %v2897_v21  ;;  %1874 = vmatprep.mubr.bf16.mxu0 %v2912_v22  ;;  %v3689_v21 = vld [vmem:[%s5036_s1 + $0x2b0] sm:$0xff]  }
  0x3d   :  { %1971 = vmatprep.mubr.bf16.mxu1 %v2914_v24  ;;  %3244 = vmatpush3.bf16.msra.mxu0 %v3675_v39  ;;  %v52_v22 = vld [vmem:[%s5037_s0 + $0x110] sm:$0xff]  ;;  %v53_v24 = vld [vmem:[%s5037_s0 + $0x118] sm:$0xff] }
  0x3e   :  { %3308 = vmatpush3.bf16.msra.mxu1 %v3677_v43  ;;  %3245 = vmatprep.subr.bf16.mxu0 %v3678_v46  ;;  %v2884_v30 = vcombine.high %v52_v22, %v60_v23  ;;  %v2886_v31 = vcombine.high %v53_v24, %v61_v25  ;;  %v77_v39 = vld [vmem:[%s5037_s0 + $0x1d8] sm:$0xff]  ;;  %v2883_v43 = vcombine.low %v52_v22, %v60_v23 }
  0x3f   :  { %3309 = vmatprep.subr.bf16.mxu1 %v3680_v51  ;;  %v2885_v45 = vcombine.low %v53_v24, %v61_v25  ;;  %v84_v51 = vld [vmem:[%s5037_s0 + $0x210] sm:$0xff] }
  0x40   :  { %v132_v25 = vld [vmem:[%s5037_s0 + $0x390] sm:$0xff] }
  0x41   :  { %3246 = vmatpush3.bf16.msra.mxu0 %v3679_v48  ;;  %v2902_v48 = vcombine.high %v69_v38, %v77_v39 }
  0x42   :  { %3310 = vmatpush3.bf16.msra.mxu1 %v3681_v53  ;;  %3359 = vmatprep.subr.bf16.mxu0 %v3682_v56  ;;  %v92_v53 = vld [vmem:[%s5037_s0 + $0x250] sm:$0xff] }
  0x43   :  { %1875 = vmatmul.mubr.bf16.gmra.mxu0 %v2911_v34  ;;  %3423 = vmatprep.subr.bf16.mxu1 %v3684_v58  ;;  %v3694_v34 = vld [vmem:[%s5036_s1 + $0x260] sm:$0xff]   ;;  %v3703_v56 = vld [vmem:[%s5036_s1 + $0x210] sm:$0xff]   ;;  %v3706_v58 = vld [vmem:[%s5036_s1 + $0x248] sm:$0xff]   ;;  %v2915_v12 = vcombine.low %v84_v51, %v92_v53 }
  0x44   :  { %1972 = vmatmul.mubr.bf16.gmra.mxu1 %v2913_v35  ;;  %1882 = vmatprep.mubr.bf16.mxu0 %v2928_v36  ;;  %v68_v35 = vld [vmem:[%s5037_s0 + $0x190] sm:$0xff] }
  0x45   :  { %1979 = vmatprep.mubr.bf16.mxu1 %v2930_v37  ;;  %v76_v36 = vld [vmem:[%s5037_s0 + $0x1d0] sm:$0xff]  ;;  %v3696_v37 = vld [vmem:[%s5036_s1 + $0x2e0] sm:$0xff]  }
  0x46   :  { %v2900_v46 = vcombine.high %v68_v35, %v76_v36  ;;  %v2899_v59 = vcombine.low %v68_v35, %v76_v36  ;;  %v23_v35 = vld [vmem:[%s5037_s0 + $0x28] sm:$0xff] }
  0x47   :  { %v31_v36 = vld [vmem:[%s5037_s0 + $0x68] sm:$0xff] }
  0x4b   :  { %1883 = vmatmul.mubr.bf16.gmra.mxu0 %v2927_v47  ;;  %v3699_v47 = vld [vmem:[%s5036_s1 + $0x218] sm:$0xff]  }
  0x4c   :  { %1980 = vmatmul.mubr.bf16.gmra.mxu1 %v2929_v49  ;;  %1890 = vmatprep.mubr.bf16.mxu0 %v2944_v50  ;;  %v3701_v49 = vld [vmem:[%s5036_s1 + $0x298] sm:$0xff]   ;;  %v3702_v50 = vld [vmem:[%s5036_s1 + $0x250] sm:$0xff]  }
  0x4d   :  { %1987 = vmatprep.mubr.bf16.mxu1 %v2946_v52  ;;  %v3704_v52 = vld [vmem:[%s5036_s1 + $0x2d0] sm:$0xff]  }
  0x53   :  { %1891 = vmatmul.mubr.bf16.gmra.mxu0 %v2943_v60  ;;  %v3708_v60 = vld [vmem:[%s5036_s1 + $0x2c8] sm:$0xff]  }
  0x54   :  { %1988 = vmatmul.mubr.bf16.gmra.mxu1 %v2945_v61  ;;  %1898 = vmatprep.mubr.bf16.mxu0 %v2960_v62  ;;  %v3746_v61 = vmov 0   ;;  %v2901_v62 = vcombine.low %v69_v38, %v77_v39 }
  0x55   :  { %1995 = vmatprep.mubr.bf16.mxu1 %v2962_v63  ;;  %3617 = vset.pattern.permute.xlu1 %v3746_v61  ;;  %v2916_v63 = vcombine.high %v84_v51, %v92_v53  ;;  %v3718_v51 = vld [vmem:[%s5036_s1 + $0x370] sm:$0xff]  }
  0x56   :  { %3616 = vset.pattern.permute.xlu0 %v3746_v61  ;;  %v3720_v53 = vld [vmem:[%s5036_s1 + $0x3f0] sm:$0xff]   ;;  %v63_v61 = vld [vmem:[%s5037_s0 + $0x168] sm:$0xff] }
  0x5b   :  { %1899 = vmatmul.mubr.bf16.gmra.mxu0 %v2959_v4  ;;  %v100_v4 = vld [vmem:[%s5037_s0 + $0x290] sm:$0xff] }
  0x5c   :  { %1996 = vmatmul.mubr.bf16.gmra.mxu1 %v2961_v5  ;;  %2036 = vmatprep.mubr.bf16.mxu0 %v2852_v6  ;;  %v108_v5 = vld [vmem:[%s5037_s0 + $0x2d0] sm:$0xff]  ;;  %v3712_v6 = vld [vmem:[%s5036_s1 + $0x2c0] sm:$0xff]  }
  0x5d   :  { %2133 = vmatprep.mubr.bf16.mxu1 %v2854_v7  ;;  %v101_v7 = vld [vmem:[%s5037_s0 + $0x298] sm:$0xff] }
  0x5e   :  { %v2933_v22 = vcombine.low %v101_v7, %v109_v8 }
  0x63   :  { %2037 = vmatmul.mubr.bf16.vlgmr.msra.gmra.mxu0 %v2851_v10  ;;  %v3713_v10 = vld [vmem:[%s5036_s1 + $0x280] sm:$0xff]  }
  0x64   :  { %2134 = vmatmul.mubr.bf16.vlgmr.msra.gmra.mxu1 %v2853_v14  ;;  %3360 = vmatpush3.bf16.msra.mxu0 %v3683_v11  ;;  %v3714_v11 = vld [vmem:[%s5036_s1 + $0x378] sm:$0xff]   ;;  %v2917_v14 = vcombine.low %v85_v54, %v93_v55  ;;  %v3721_v54 = vld [vmem:[%s5036_s1 + $0x3b0] sm:$0xff]   ;;  %v54_v55 = vld [vmem:[%s5037_s0 + $0x120] sm:$0xff] }
  0x65   :  { %3424 = vmatpush3.bf16.msra.mxu1 %v3685_v15  ;;  %2044 = vmatprep.mubr.bf16.mxu0 %v2868_v16  ;;  %v2932_v15 = vcombine.high %v100_v4, %v108_v5  ;;  %v2934_v16 = vcombine.high %v101_v7, %v109_v8  ;;  %v3728_v7 = vld [vmem:[%s5036_s1 + $0x3e0] sm:$0xff]  }
  0x66   :  { %2141 = vmatprep.mubr.bf16.mxu1 %v2870_v18  ;;  %3361 = vmatprep.subr.bf16.mxu0 %v3686_v17  ;;  %v116_v17 = vld [vmem:[%s5037_s0 + $0x310] sm:$0xff]  ;;  %v70_v8 = vld [vmem:[%s5037_s0 + $0x1a0] sm:$0xff] }
  0x67   :  { %3425 = vmatprep.subr.bf16.mxu1 %v3688_v20  ;;  %v124_v18 = vld [vmem:[%s5037_s0 + $0x350] sm:$0xff]  ;;  %v125_v20 = vld [vmem:[%s5037_s0 + $0x358] sm:$0xff] }
  0x68   :  { %3362 = vmatpush3.bf16.msra.mxu0 %v3687_v19  ;;  %v117_v19 = vld [vmem:[%s5037_s0 + $0x318] sm:$0xff]  ;;  %v2948_v23 = vcombine.high %v116_v17, %v124_v18 }
  0x69   :  { %3426 = vmatpush3.bf16.msra.mxu1 %v3689_v21  ;;  %3363 = vmatprep.subr.bf16.mxu0 %v3690_v26  ;;  %v2931_v21 = vcombine.low %v100_v4, %v108_v5  ;;  %v2950_v24 = vcombine.high %v117_v19, %v125_v20  ;;  %v140_v26 = vld [vmem:[%s5037_s0 + $0x3d0] sm:$0xff]  ;;  %v3723_v4 = vld [vmem:[%s5036_s1 + $0x328] sm:$0xff]  }
  0x6a   :  { %3427 = vmatprep.subr.bf16.mxu1 %v3692_v27  ;;  %v133_v27 = vld [vmem:[%s5037_s0 + $0x398] sm:$0xff]  ;;  %v3725_v5 = vld [vmem:[%s5036_s1 + $0x3a8] sm:$0xff]  }
  0x6b   :  { %2045 = vmatmul.mubr.bf16.gmra.mxu0 %v2867_v28  ;;  %v141_v28 = vld [vmem:[%s5037_s0 + $0x3d8] sm:$0xff] }
  0x6c   :  { %2142 = vmatmul.mubr.bf16.gmra.mxu1 %v2869_v29  ;;  %2052 = vmatprep.mubr.bf16.mxu0 %v2884_v30  ;;  %v2947_v29 = vcombine.low %v116_v17, %v124_v18  ;;  %v2949_v30 = vcombine.low %v117_v19, %v125_v20  ;;  %v2965_v38 = vcombine.low %v133_v27, %v141_v28  ;;  %v3732_v18 = vld [vmem:[%s5036_s1 + $0x3d8] sm:$0xff]  }
  0x6d   :  { %2149 = vmatprep.mubr.bf16.mxu1 %v2886_v31  ;;  %3364 = vmatpush3.bf16.msra.mxu0 %v3691_v32  ;;  %v2964_v31 = vcombine.high %v132_v25, %v140_v26  ;;  %v2966_v32 = vcombine.high %v133_v27, %v141_v28  ;;  %v94_v27 = vld [vmem:[%s5037_s0 + $0x260] sm:$0xff] }
  0x6e   :  { %3428 = vmatpush3.bf16.msra.mxu1 %v3693_v33  ;;  %3365 = vmatprep.subr.bf16.mxu0 %v3694_v34  ;;  %v22_v33 = vld [vmem:[%s5037_s0 + $0x20] sm:$0xff] }
  0x6f   :  { %3429 = vmatprep.subr.bf16.mxu1 %v3696_v37  ;;  %v30_v34 = vld [vmem:[%s5037_s0 + $0x60] sm:$0xff]  ;;  %v2963_v37 = vcombine.low %v132_v25, %v140_v26  ;;  %v3736_v25 = vld [vmem:[%s5036_s1 + $0x3d0] sm:$0xff]  }
  0x70   :  { %v2856_v39 = vcombine.high %v22_v33, %v30_v34  ;;  %v86_v26 = vld [vmem:[%s5037_s0 + $0x220] sm:$0xff] }
  0x71   :  { %3366 = vmatpush3.bf16.msra.mxu0 %v3695_v40  ;;  %v2858_v40 = vcombine.high %v23_v35, %v31_v36  ;;  %v2590_v28 = vld [vmem:[%s5038_s2 + $0x20] sm:$0xff] }
  0x72   :  { %3430 = vmatpush3.bf16.msra.mxu1 %v3697_v41  ;;  %3367 = vmatprep.subr.bf16.mxu0 %v3698_v42  ;;  %v38_v41 = vld [vmem:[%s5037_s0 + $0xa0] sm:$0xff] }
  0x73   :  { %2053 = vmatmul.mubr.bf16.gmra.mxu0 %v2883_v43  ;;  %3431 = vmatprep.subr.bf16.mxu1 %v3700_v44  ;;  %v46_v42 = vld [vmem:[%s5037_s0 + $0xe0] sm:$0xff]  ;;  %v2855_v43 = vcombine.low %v22_v33, %v30_v34  ;;  %v39_v44 = vld [vmem:[%s5037_s0 + $0xa8] sm:$0xff]  ;;  %v3737_v33 = vld [vmem:[%s5036_s1 + $0x390] sm:$0xff]  }
  0x74   :  { %2150 = vmatmul.mubr.bf16.gmra.mxu1 %v2885_v45  ;;  %2060 = vmatprep.mubr.bf16.mxu0 %v2900_v46  ;;  %v47_v45 = vld [vmem:[%s5037_s0 + $0xe8] sm:$0xff]  ;;  %v2857_v46 = vcombine.low %v23_v35, %v31_v36 }
  0x75   :  { %2157 = vmatprep.mubr.bf16.mxu1 %v2902_v48  ;;  %3368 = vmatpush3.bf16.msra.mxu0 %v3699_v47  ;;  %v3715_v47 = vld [vmem:[%s5036_s1 + $0x338] sm:$0xff]   ;;  %v3738_v34 = vld [vmem:[%s5036_s1 + $0x348] sm:$0xff]  }
  0x76   :  { %3432 = vmatpush3.bf16.msra.mxu1 %v3701_v49  ;;  %3369 = vmatprep.subr.bf16.mxu0 %v3702_v50  ;;  %v3717_v48 = vld [vmem:[%s5036_s1 + $0x3b8] sm:$0xff]   ;;  %v2872_v49 = vcombine.high %v38_v41, %v46_v42  ;;  %v2874_v50 = vcombine.high %v39_v44, %v47_v45  ;;  %v3740_v36 = vld [vmem:[%s5036_s1 + $0x3c8] sm:$0xff]  }
  0x77   :  { %3433 = vmatprep.subr.bf16.mxu1 %v3704_v52  ;;  %v3719_v52 = vld [vmem:[%s5036_s1 + $0x330] sm:$0xff]  }
  0x79   :  { %3370 = vmatpush3.bf16.msra.mxu0 %v3703_v56  ;;  %v2588_v56 = vld [vmem:[%s5038_s2 + $0x10] sm:$0xff] }
  0x7a   :  { %3434 = vmatpush3.bf16.msra.mxu1 %v3705_v57  ;;  %3371 = vmatprep.subr.bf16.mxu0 %v3706_v58  ;;  %v62_v57 = vld [vmem:[%s5037_s0 + $0x160] sm:$0xff]  ;;  %v3722_v58 = vld [vmem:[%s5036_s1 + $0x368] sm:$0xff]  }
  0x7b   :  { %2061 = vmatmul.mubr.bf16.gmra.mxu0 %v2899_v59  ;;  %3435 = vmatprep.subr.bf16.mxu1 %v3708_v60  ;;  %v2586_v59 = vld [vmem:[%s5038_s2] sm:$0xff]  ;;  %v55_v60 = vld [vmem:[%s5037_s0 + $0x128] sm:$0xff]  ;;  %v2887_v17 = vcombine.low %v54_v55, %v62_v57 }
  0x7c   :  { %2158 = vmatmul.mubr.bf16.gmra.mxu1 %v2901_v62  ;;  %2068 = vmatprep.mubr.bf16.mxu0 %v2916_v63  ;;  %v3724_v62 = vld [vmem:[%s5036_s1 + $0x3e8] sm:$0xff]   ;;  %v2871_v63 = vcombine.low %v38_v41, %v46_v42  ;;  %v2889_v19 = vcombine.low %v55_v60, %v63_v61  ;;  %v3742_v42 = vld [vmem:[%s5036_s1 + $0x340] sm:$0xff]  }
  0x7d   :  { %2165 = vmatprep.mubr.bf16.mxu1 %v2918_v0  ;;  %3372 = vmatpush3.bf16.msra.mxu0 %v3707_v1  ;;  %v2873_v0 = vcombine.low %v39_v44, %v47_v45  ;;  %v2888_v1 = vcombine.high %v54_v55, %v62_v57  ;;  %v3741_v41 = vld [vmem:[%s5036_s1 + $0x388] sm:$0xff]   ;;  %v102_v44 = vld [vmem:[%s5037_s0 + $0x2a0] sm:$0xff]  ;;  %v2592_v45 = vld [vmem:[%s5038_s2 + $0x30] sm:$0xff] }
  0x7e   :  { %3436 = vmatpush3.bf16.msra.mxu1 %v3709_v2  ;;  %3373 = vmatprep.subr.bf16.mxu0 %v3710_v3  ;;  %v2589_v2 = vld [vmem:[%s5038_s2 + $0x18] sm:$0xff]  ;;  %v2890_v3 = vcombine.high %v55_v60, %v63_v61  ;;  %v2594_v55 = vld [vmem:[%s5038_s2 + $0x40] sm:$0xff]  ;;  %v119_v61 = vld [vmem:[%s5037_s0 + $0x328] sm:$0xff] }
  0x7f   :  { %3437 = vmatprep.subr.bf16.mxu1 %v3712_v6  ;;  %2614 = vperm.xlu1 %3617, %v2588_v56   ;;  %v3726_v6 = vld [vmem:[%s5036_s1 + $0x360] sm:$0xff]   ;;  %v2597_v57 = vld [vmem:[%s5038_s2 + $0x58] sm:$0xff] }
  0x80   :  { %2604 = vperm.xlu0 %3616, %v2586_v59   ;;  %v118_v59 = vld [vmem:[%s5037_s0 + $0x320] sm:$0xff] }
  0x81   :  { %3374 = vmatpush3.bf16.msra.mxu0 %v3711_v9  ;;  %v78_v9 = vld [vmem:[%s5037_s0 + $0x1e0] sm:$0xff] }
  0x82   :  { %3438 = vmatpush3.bf16.msra.mxu1 %v3713_v10  ;;  %3487 = vmatprep.subr.bf16.mxu0 %v3714_v11  ;;  %v2587_v10 = vld [vmem:[%s5038_s2 + $0x8] sm:$0xff]  ;;  %v2904_v20 = vcombine.high %v70_v8, %v78_v9  ;;  %v2903_v35 = vcombine.low %v70_v8, %v78_v9  ;;  %v126_v60 = vld [vmem:[%s5037_s0 + $0x360] sm:$0xff] }
  0x83   :  { %2069 = vmatmul.mubr.bf16.gmra.mxu0 %v2915_v12  ;;  %3551 = vmatprep.subr.bf16.mxu1 %v3716_v13  ;;  %v71_v11 = vld [vmem:[%s5037_s0 + $0x1a8] sm:$0xff]  ;;  %v3727_v12 = vld [vmem:[%s5036_s1 + $0x320] sm:$0xff]  }
  0x84   :  { %2166 = vmatmul.mubr.bf16.gmra.mxu1 %v2917_v14  ;;  %2076 = vmatprep.mubr.bf16.mxu0 %v2932_v15  ;;  %v2591_v13 = vld [vmem:[%s5038_s2 + $0x28] sm:$0xff]  ;;  %v3729_v15 = vld [vmem:[%s5036_s1 + $0x3a0] sm:$0xff]  }
  0x85   :  { %2173 = vmatprep.mubr.bf16.mxu1 %v2934_v16  ;;  %2619 = vperm.xlu1 %3617, %v2589_v2   ;;  %v79_v14 = vld [vmem:[%s5037_s0 + $0x1e8] sm:$0xff]  ;;  %v3730_v16 = vld [vmem:[%s5036_s1 + $0x358] sm:$0xff]   ;;  %v2952_v2 = vcombine.high %v118_v59, %v126_v60  ;;  %v142_v8 = vld [vmem:[%s5037_s0 + $0x3e0] sm:$0xff] }
  0x86   :  { %2609 = vperm.xlu0 %3616, %v2587_v10   ;;  %v135_v9 = vld [vmem:[%s5037_s0 + $0x3a8] sm:$0xff] }
  0x87   :  { %v143_v10 = vld [vmem:[%s5037_s0 + $0x3e8] sm:$0xff] }
  0x89   :  { %2629 = vperm.xlu1 %3617, %v2591_v13  }
  0x8a   :  { %2624 = vperm.xlu0 %3616, %v2590_v28  }
  0x8b   :  { %2077 = vmatmul.mubr.bf16.gmra.mxu0 %v2931_v21  ;;  %v2906_v21 = vcombine.high %v71_v11, %v79_v14 }
  0x8c   :  { %2174 = vmatmul.mubr.bf16.gmra.mxu1 %v2933_v22  ;;  %2084 = vmatprep.mubr.bf16.mxu0 %v2948_v23  ;;  %v3731_v22 = vld [vmem:[%s5036_s1 + $0x318] sm:$0xff]  }
  0x8d   :  { %2181 = vmatprep.mubr.bf16.mxu1 %v2950_v24  ;;  %v3733_v23 = vld [vmem:[%s5036_s1 + $0x398] sm:$0xff]   ;;  %v3734_v24 = vld [vmem:[%s5036_s1 + $0x350] sm:$0xff]  }
  0x8e   :  { %2634 = vperm.xlu0 %3616, %v2592_v45  }
  0x92   :  { %2644 = vperm.xlu0 %3616, %v2594_v55  }
  0x93   :  { %2085 = vmatmul.mubr.bf16.gmra.mxu0 %v2947_v29  ;;  %v87_v29 = vld [vmem:[%s5037_s0 + $0x228] sm:$0xff] }
  0x94   :  { %2182 = vmatmul.mubr.bf16.gmra.mxu1 %v2949_v30  ;;  %2092 = vmatprep.mubr.bf16.mxu0 %v2964_v31  ;;  %v3735_v30 = vld [vmem:[%s5036_s1 + $0x310] sm:$0xff]   ;;  %v2593_v31 = vld [vmem:[%s5038_s2 + $0x38] sm:$0xff] }
  0x95   :  { %2189 = vmatprep.mubr.bf16.mxu1 %v2966_v32  ;;  %v95_v32 = vld [vmem:[%s5037_s0 + $0x268] sm:$0xff]  ;;  %2639 = vperm.xlu1 %3617, %v2593_v31   ;;  %v40_v31 = vld [vmem:[%s5037_s0 + $0xb0] sm:$0xff] }
  0x9b   :  { %2093 = vmatmul.mubr.bf16.gmra.mxu0 %v2963_v37  ;;  %v2905_v37 = vcombine.low %v71_v11, %v79_v14  ;;  %v2699_v11 = vld [vmem:[%s5039_s3 + $0x8] sm:$0xff] }
  0x9c   :  { %2190 = vmatmul.mubr.bf16.gmra.mxu1 %v2965_v38  ;;  %2230 = vmatprep.mubr.bf16.mxu0 %v2856_v39  ;;  %v2920_v38 = vcombine.high %v86_v26, %v94_v27  ;;  %v2922_v39 = vcombine.high %v87_v29, %v95_v32 }
  0x9d   :  { %2327 = vmatprep.mubr.bf16.mxu1 %v2858_v40  ;;  %v3739_v40 = vld [vmem:[%s5036_s1 + $0x308] sm:$0xff]  }
  0xa3   :  { %2231 = vmatmul.mubr.bf16.vlgmr.msra.gmra.mxu0 %v2855_v43  ;;  %v3744_v43 = vld [vmem:[%s5036_s1 + $0x3c0] sm:$0xff]  }
  0xa4   :  { %2328 = vmatmul.mubr.bf16.vlgmr.msra.gmra.mxu1 %v2857_v46  ;;  %3488 = vmatpush3.bf16.msra.mxu0 %v3715_v47  ;;  %v110_v46 = vld [vmem:[%s5037_s0 + $0x2e0] sm:$0xff] }
  0xa5   :  { %3552 = vmatpush3.bf16.msra.mxu1 %v3717_v48  ;;  %2238 = vmatprep.mubr.bf16.mxu0 %v2872_v49  ;;  %v3743_v47 = vld [vmem:[%s5036_s1 + $0x300] sm:$0xff]   ;;  %v2595_v48 = vld [vmem:[%s5038_s2 + $0x48] sm:$0xff] }
  0xa6   :  { %2335 = vmatprep.mubr.bf16.mxu1 %v2874_v50  ;;  %3489 = vmatprep.subr.bf16.mxu0 %v3718_v51  ;;  %v103_v49 = vld [vmem:[%s5037_s0 + $0x2a8] sm:$0xff]  ;;  %v3745_v51 = vld [vmem:[%s5036_s1 + $0x380] sm:$0xff]  }
  0xa7   :  { %3553 = vmatprep.subr.bf16.mxu1 %v3720_v53  ;;  %v111_v50 = vld [vmem:[%s5037_s0 + $0x2e8] sm:$0xff]  ;;  %v2921_v53 = vcombine.low %v87_v29, %v95_v32  ;;  %2649 = vperm.xlu1 %3617, %v2595_v48   ;;  %v2705_v29 = vld [vmem:[%s5039_s3 + $0x38] sm:$0xff]  ;;  %v48_v32 = vld [vmem:[%s5037_s0 + $0xf0] sm:$0xff] }
  0xa8   :  { %3490 = vmatpush3.bf16.msra.mxu0 %v3719_v52  ;;  %v2919_v52 = vcombine.low %v86_v26, %v94_v27  ;;  %v2938_v56 = vcombine.high %v103_v49, %v111_v50  ;;  %v2702_v27 = vld [vmem:[%s5039_s3 + $0x20] sm:$0xff]  ;;  %v2875_v55 = vcombine.low %v40_v31, %v48_v32 }
  0xa9   :  { %3554 = vmatpush3.bf16.msra.mxu1 %v3721_v54  ;;  %3491 = vmatprep.subr.bf16.mxu0 %v3722_v58  ;;  %v2936_v54 = vcombine.high %v102_v44, %v110_v46  ;;  %v2596_v58 = vld [vmem:[%s5038_s2 + $0x50] sm:$0xff] }
  0xaa   :  { %3555 = vmatprep.subr.bf16.mxu1 %v3724_v62  ;;  %v127_v62 = vld [vmem:[%s5037_s0 + $0x368] sm:$0xff]  ;;  %2654 = vperm.xlu0 %3616, %v2596_v58  }
  0xab   :  { %2239 = vmatmul.mubr.bf16.gmra.mxu0 %v2871_v63  ;;  %2659 = vperm.xlu1 %3617, %v2597_v57   ;;  %v2599_v63 = vld [vmem:[%s5038_s2 + $0x68] sm:$0xff]  ;;  %v2953_v13 = vcombine.low %v119_v61, %v127_v62 }
  0xac   :  { %2336 = vmatmul.mubr.bf16.gmra.mxu1 %v2873_v0  ;;  %2246 = vmatprep.mubr.bf16.mxu0 %v2888_v1  ;;  %v2935_v0 = vcombine.low %v102_v44, %v110_v46  ;;  %v2937_v1 = vcombine.low %v103_v49, %v111_v50  ;;  %v2708_v44 = vld [vmem:[%s5039_s3 + $0x50] sm:$0xff]  ;;  %v57_v50 = vld [vmem:[%s5037_s0 + $0x138] sm:$0xff] }
  0xad   :  { %2343 = vmatprep.mubr.bf16.mxu1 %v2890_v3  ;;  %3492 = vmatpush3.bf16.msra.mxu0 %v3723_v4  ;;  %v2598_v3 = vld [vmem:[%s5038_s2 + $0x60] sm:$0xff]  ;;  %v2954_v4 = vcombine.high %v119_v61, %v127_v62  ;;  %v56_v46 = vld [vmem:[%s5037_s0 + $0x130] sm:$0xff] }
  0xae   :  { %3556 = vmatpush3.bf16.msra.mxu1 %v3725_v5  ;;  %3493 = vmatprep.subr.bf16.mxu0 %v3726_v6  ;;  %v2601_v5 = vld [vmem:[%s5038_s2 + $0x78] sm:$0xff]  ;;  %v2600_v6 = vld [vmem:[%s5038_s2 + $0x70] sm:$0xff] }
  0xaf   :  { %3557 = vmatprep.subr.bf16.mxu1 %v3728_v7  ;;  %2669 = vperm.xlu1 %3617, %v2599_v63   ;;  %v134_v7 = vld [vmem:[%s5037_s0 + $0x3a0] sm:$0xff] }
  0xb0   :  { %2664 = vperm.xlu0 %3616, %v2598_v3   ;;  %v2968_v14 = vcombine.high %v134_v7, %v142_v8 }
  0xb1   :  { %3494 = vmatpush3.bf16.msra.mxu0 %v3727_v12  ;;  %v2951_v12 = vcombine.low %v118_v59, %v126_v60  ;;  %v2710_v59 = vld [vmem:[%s5039_s3 + $0x60] sm:$0xff] }
  0xb2   :  { %3558 = vmatpush3.bf16.msra.mxu1 %v3729_v15  ;;  %3495 = vmatprep.subr.bf16.mxu0 %v3730_v16  ;;  %v2698_v15 = vld [vmem:[%s5039_s3] sm:$0xff]  ;;  %v2970_v16 = vcombine.high %v135_v9, %v143_v10 }
  0xb3   :  { %2247 = vmatmul.mubr.bf16.gmra.mxu0 %v2887_v17  ;;  %3559 = vmatprep.subr.bf16.mxu1 %v3732_v18  ;;  %v2701_v17 = vld [vmem:[%s5039_s3 + $0x18] sm:$0xff]  ;;  %v2700_v18 = vld [vmem:[%s5039_s3 + $0x10] sm:$0xff] }
  0xb4   :  { %2344 = vmatmul.mubr.bf16.gmra.mxu1 %v2889_v19  ;;  %2254 = vmatprep.mubr.bf16.mxu0 %v2904_v20  ;;  %v24_v19 = vld [vmem:[%s5037_s0 + $0x30] sm:$0xff] }
  0xb5   :  { %2351 = vmatprep.mubr.bf16.mxu1 %v2906_v21  ;;  %3496 = vmatpush3.bf16.msra.mxu0 %v3731_v22  ;;  %v32_v20 = vld [vmem:[%s5037_s0 + $0x70] sm:$0xff]  ;;  %v25_v21 = vld [vmem:[%s5037_s0 + $0x38] sm:$0xff] }
  0xb6   :  { %3560 = vmatpush3.bf16.msra.mxu1 %v3733_v23  ;;  %3497 = vmatprep.subr.bf16.mxu0 %v3734_v24  ;;  %v33_v22 = vld [vmem:[%s5037_s0 + $0x78] sm:$0xff]  ;;  %v2703_v23 = vld [vmem:[%s5039_s3 + $0x28] sm:$0xff]  ;;  %v2967_v24 = vcombine.low %v134_v7, %v142_v8  ;;  %v2860_v26 = vcombine.high %v24_v19, %v32_v20  ;;  %v72_v8 = vld [vmem:[%s5037_s0 + $0x1b0] sm:$0xff] }
  0xb7   :  { %3561 = vmatprep.subr.bf16.mxu1 %v3736_v25  ;;  %2679 = vperm.xlu1 %3617, %v2601_v5   ;;  %v2969_v25 = vcombine.low %v135_v9, %v143_v10  ;;  %v2862_v28 = vcombine.high %v25_v21, %v33_v22  ;;  %v2712_v5 = vld [vmem:[%s5039_s3 + $0x70] sm:$0xff] }
  0xb8   :  { %2674 = vperm.xlu0 %3616, %v2600_v6   ;;  %v80_v9 = vld [vmem:[%s5037_s0 + $0x1f0] sm:$0xff] }
  0xb9   :  { %3498 = vmatpush3.bf16.msra.mxu0 %v3735_v30  ;;  %v2704_v30 = vld [vmem:[%s5039_s3 + $0x30] sm:$0xff] }
  0xba   :  { %3562 = vmatpush3.bf16.msra.mxu1 %v3737_v33  ;;  %3499 = vmatprep.subr.bf16.mxu0 %v3738_v34  ;;  %v41_v33 = vld [vmem:[%s5037_s0 + $0xb8] sm:$0xff] }
  0xbb   :  { %2255 = vmatmul.mubr.bf16.gmra.mxu0 %v2903_v35  ;;  %3563 = vmatprep.subr.bf16.mxu1 %v3740_v36  ;;  %v49_v34 = vld [vmem:[%s5037_s0 + $0xf8] sm:$0xff]  ;;  %v2707_v35 = vld [vmem:[%s5039_s3 + $0x48] sm:$0xff]  ;;  %v2859_v36 = vcombine.low %v24_v19, %v32_v20  ;;  %v2908_v19 = vcombine.high %v72_v8, %v80_v9 }
  0xbc   :  { %2352 = vmatmul.mubr.bf16.gmra.mxu1 %v2905_v37  ;;  %2262 = vmatprep.mubr.bf16.mxu0 %v2920_v38  ;;  %v2861_v37 = vcombine.low %v25_v21, %v33_v22  ;;  %v2876_v38 = vcombine.high %v40_v31, %v48_v32  ;;  %v2877_v57 = vcombine.low %v41_v33, %v49_v34  ;;  %v96_v31 = vld [vmem:[%s5037_s0 + $0x270] sm:$0xff] }
  0xbd   :  { %2359 = vmatprep.mubr.bf16.mxu1 %v2922_v39  ;;  %3500 = vmatpush3.bf16.msra.mxu0 %v3739_v40  ;;  %v2706_v39 = vld [vmem:[%s5039_s3 + $0x40] sm:$0xff]  ;;  %v2878_v40 = vcombine.high %v41_v33, %v49_v34  ;;  %v89_v34 = vld [vmem:[%s5037_s0 + $0x238] sm:$0xff] }
  0xbe   :  { %3564 = vmatpush3.bf16.msra.mxu1 %v3741_v41  ;;  %3501 = vmatprep.subr.bf16.mxu0 %v3742_v42  ;;  %v2709_v41 = vld [vmem:[%s5039_s3 + $0x58] sm:$0xff] }
  0xbf   :  { %3565 = vmatprep.subr.bf16.mxu1 %v3744_v43  ;;  %2721 = vperm.xlu1 %3617, %v2699_v11  }
  0xc0   :  { %2716 = vperm.xlu0 %3616, %v2698_v15  }
  0xc1   :  { %3502 = vmatpush3.bf16.msra.mxu0 %v3743_v47  ;;  %v64_v47 = vld [vmem:[%s5037_s0 + $0x170] sm:$0xff] }
  0xc2   :  { %3566 = vmatpush3.bf16.msra.mxu1 %v3745_v51  ;;  %v65_v51 = vld [vmem:[%s5037_s0 + $0x178] sm:$0xff]  ;;  %v2892_v58 = vcombine.high %v56_v46, %v64_v47 }
  0xc3   :  { %2263 = vmatmul.mubr.bf16.gmra.mxu0 %v2919_v52  ;;  %2731 = vperm.xlu1 %3617, %v2701_v17   ;;  %v2711_v52 = vld [vmem:[%s5039_s3 + $0x68] sm:$0xff]  ;;  %v2894_v62 = vcombine.high %v57_v50, %v65_v51 }
  0xc4   :  { %2360 = vmatmul.mubr.bf16.gmra.mxu1 %v2921_v53  ;;  %2270 = vmatprep.mubr.bf16.mxu0 %v2936_v54 }
  0xc5   :  { %2367 = vmatprep.mubr.bf16.mxu1 %v2938_v56  ;;  %2726 = vperm.xlu0 %3616, %v2700_v18   ;;  %v2893_v18 = vcombine.low %v57_v50, %v65_v51 }
  0xc7   :  { %2741 = vperm.xlu1 %3617, %v2703_v23  }
  0xc9   :  { %2736 = vperm.xlu0 %3616, %v2702_v27  }
  0xcb   :  { %2271 = vmatmul.mubr.bf16.gmra.mxu0 %v2935_v0  ;;  %2751 = vperm.xlu1 %3617, %v2705_v29  }
  0xcc   :  { %2368 = vmatmul.mubr.bf16.gmra.mxu1 %v2937_v1  ;;  %2278 = vmatprep.mubr.bf16.mxu0 %v2952_v2  ;;  %v2713_v1 = vld [vmem:[%s5039_s3 + $0x78] sm:$0xff] }
  0xcd   :  { %2375 = vmatprep.mubr.bf16.mxu1 %v2954_v4  ;;  %2746 = vperm.xlu0 %3616, %v2704_v30   ;;  %v88_v30 = vld [vmem:[%s5037_s0 + $0x230] sm:$0xff] }
  0xcf   :  { %2761 = vperm.xlu1 %3617, %v2707_v35   ;;  %v97_v35 = vld [vmem:[%s5037_s0 + $0x278] sm:$0xff] }
  0xd1   :  { %2756 = vperm.xlu0 %3616, %v2706_v39  }
  0xd3   :  { %2279 = vmatmul.mubr.bf16.gmra.mxu0 %v2951_v12  ;;  %2771 = vperm.xlu1 %3617, %v2709_v41   ;;  %v73_v12 = vld [vmem:[%s5037_s0 + $0x1b8] sm:$0xff]  ;;  %v2924_v41 = vcombine.high %v88_v30, %v96_v31 }
  0xd4   :  { %2376 = vmatmul.mubr.bf16.gmra.mxu1 %v2953_v13  ;;  %2286 = vmatprep.mubr.bf16.mxu0 %v2968_v14  ;;  %v81_v13 = vld [vmem:[%s5037_s0 + $0x1f8] sm:$0xff] }
  0xd5   :  { %2383 = vmatprep.mubr.bf16.mxu1 %v2970_v16  ;;  %2766 = vperm.xlu0 %3616, %v2708_v44   ;;  %v2891_v16 = vcombine.low %v56_v46, %v64_v47  ;;  %v2910_v22 = vcombine.high %v73_v12, %v81_v13  ;;  %v2926_v44 = vcombine.high %v89_v34, %v97_v35 }
  0xd7   :  { %2781 = vperm.xlu1 %3617, %v2711_v52   ;;  %v104_v52 = vld [vmem:[%s5037_s0 + $0x2b0] sm:$0xff] }
  0xd9   :  { %2776 = vperm.xlu0 %3616, %v2710_v59  }
  0xdb   :  { %2287 = vmatmul.mubr.bf16.gmra.mxu0 %v2967_v24  ;;  %2791 = vperm.xlu1 %3617, %v2713_v1  }
  0xdc   :  { %2384 = vmatmul.mubr.bf16.gmra.mxu1 %v2969_v25  ;;  %2424 = vmatprep.mubr.bf16.mxu0 %v2860_v26 }
  0xdd   :  { %2521 = vmatprep.mubr.bf16.mxu1 %v2862_v28  ;;  %2786 = vperm.xlu0 %3616, %v2712_v5  }
  0xe3   :  { %v3119_v42 = vpop.f32.mrf.mxu0  ;;  %2425 = vmatmul.mubr.bf16.vlgmr.msra.gmra.mxu0 %v2859_v36 }
  0xe4   :  { %v3183_v43 = vpop.f32.mrf.mxu1  ;;  %2522 = vmatmul.mubr.bf16.vlgmr.msra.gmra.mxu1 %v2861_v37  ;;  %2432 = vmatprep.mubr.bf16.mxu0 %v2876_v38  ;;  %v2907_v38 = vcombine.low %v72_v8, %v80_v9 }
  0xe5   :  { %v3120_v45 = vpop.f32.mrf.mxu0  ;;  %2529 = vmatprep.mubr.bf16.mxu1 %v2878_v40  ;;  %v2909_v40 = vcombine.low %v73_v12, %v81_v13  ;;  %v120_v12 = vld [vmem:[%s5037_s0 + $0x330] sm:$0xff] }
  0xe6   :  { %v3121_v48 = vadd.f32 %v3120_v45, %v3119_v42  ;;  %v3184_v49 = vpop.f32.mrf.mxu1  ;;  %v128_v13 = vld [vmem:[%s5037_s0 + $0x370] sm:$0xff] }
  0xe7   :  { %v3185_v53 = vadd.f32 %v3184_v49, %v3183_v43  ;;  %v3122_v54 = vpop.f32.mrf.mxu0 }
  0xe8   :  { %v3186_v56 = vpop.f32.mrf.mxu1 }
  0xe9   :  { %v4570_v60 = vadd.f32 %v3185_v53, %v3121_v48  ;;  %v3123_v61 = vpop.f32.mrf.mxu0  ;;  %v112_v53 = vld [vmem:[%s5037_s0 + $0x2f0] sm:$0xff] }
  0xea   :  { %v3124_v63 = vadd.f32 %v3123_v61, %v3122_v54  ;;  %v3187_v0 = vpop.f32.mrf.mxu1  ;;  %v2923_v61 = vcombine.low %v88_v30, %v96_v31 }
  0xeb   :  { %v3188_v2 = vadd.f32 %v3187_v0, %v3186_v56  ;;  %v3125_v3 = vpop.f32.mrf.mxu0  ;;  %2433 = vmatmul.mubr.bf16.gmra.mxu0 %v2875_v55  ;;  %v105_v56 = vld [vmem:[%s5037_s0 + $0x2b8] sm:$0xff]  ;;  %v2940_v0 = vcombine.high %v104_v52, %v112_v53 }
  0xec   :  { %v3189_v4 = vpop.f32.mrf.mxu1  ;;  %2530 = vmatmul.mubr.bf16.gmra.mxu1 %v2877_v57  ;;  %2440 = vmatprep.mubr.bf16.mxu0 %v2892_v58  ;;  %v113_v57 = vld [vmem:[%s5037_s0 + $0x2f8] sm:$0xff] }
  0xed   :  { %v4578_v6 = vadd.f32 %v3188_v2, %v3124_v63  ;;  %v3126_v7 = vpop.f32.mrf.mxu0  ;;  %2537 = vmatprep.mubr.bf16.mxu1 %v2894_v62  ;;  %v2925_v63 = vcombine.low %v89_v34, %v97_v35 }
  0xee   :  { %v3127_v10 = vadd.f32 %v3126_v7, %v3125_v3  ;;  %v3190_v11 = vpop.f32.mrf.mxu1  ;;  %v2942_v3 = vcombine.high %v105_v56, %v113_v57 }
  0xef   :  { %v3191_v14 = vadd.f32 %v3190_v11, %v3189_v4  ;;  %v3128_v15 = vpop.f32.mrf.mxu0 }
  0xf0   :  { %v3192_v17 = vpop.f32.mrf.mxu1 }
  0xf1   :  { %v4592_v20 = vadd.f32 %v3191_v14, %v3127_v10  ;;  %v3129_v21 = vpop.f32.mrf.mxu0 }
  0xf2   :  { %v3130_v23 = vadd.f32 %v3129_v21, %v3128_v15  ;;  %v3193_v24 = vpop.f32.mrf.mxu1  ;;  %v2939_v21 = vcombine.low %v104_v52, %v112_v53 }
  0xf3   :  { %v3194_v25 = vadd.f32 %v3193_v24, %v3192_v17  ;;  %v3131_v26 = vpop.f32.mrf.mxu0  ;;  %2441 = vmatmul.mubr.bf16.gmra.mxu0 %v2891_v16  ;;  %v121_v16 = vld [vmem:[%s5037_s0 + $0x338] sm:$0xff]  ;;  %v2956_v24 = vcombine.high %v120_v12, %v128_v13 }
  0xf4   :  { %v3195_v27 = vpop.f32.mrf.mxu1  ;;  %2538 = vmatmul.mubr.bf16.gmra.mxu1 %v2893_v18  ;;  %2448 = vmatprep.mubr.bf16.mxu0 %v2908_v19  ;;  %v129_v17 = vld [vmem:[%s5037_s0 + $0x378] sm:$0xff] }
  0xf5   :  { %v4594_v28 = vadd.f32 %v3194_v25, %v3130_v23  ;;  %v3132_v29 = vpop.f32.mrf.mxu0  ;;  %2545 = vmatprep.mubr.bf16.mxu1 %v2910_v22  ;;  %v2941_v23 = vcombine.low %v105_v56, %v113_v57 }
  0xf6   :  { %v3133_v32 = vadd.f32 %v3132_v29, %v3131_v26  ;;  %v3196_v33 = vpop.f32.mrf.mxu1 }
  0xf7   :  { %v3197_v36 = vadd.f32 %v3196_v33, %v3195_v27  ;;  %v3134_v37 = vpop.f32.mrf.mxu0  ;;  %v2958_v27 = vcombine.high %v121_v16, %v129_v17 }
  0xf8   :  { %v3198_v39 = vpop.f32.mrf.mxu1 }
  0xf9   :  { %v4608_v42 = vadd.f32 %v3197_v36, %v3133_v32  ;;  %v3135_v43 = vpop.f32.mrf.mxu0  ;;  %v136_v36 = vld [vmem:[%s5037_s0 + $0x3b0] sm:$0xff] }
  0xfa   :  { %v3136_v45 = vadd.f32 %v3135_v43, %v3134_v37  ;;  %v3199_v46 = vpop.f32.mrf.mxu1  ;;  %v144_v37 = vld [vmem:[%s5037_s0 + $0x3f0] sm:$0xff] }
  0xfb   :  { %v3200_v47 = vadd.f32 %v3199_v46, %v3198_v39  ;;  %v3137_v48 = vpop.f32.mrf.mxu0  ;;  %2449 = vmatmul.mubr.bf16.gmra.mxu0 %v2907_v38 }
  0xfc   :  { %v3201_v49 = vpop.f32.mrf.mxu1  ;;  %2546 = vmatmul.mubr.bf16.gmra.mxu1 %v2909_v40  ;;  %2456 = vmatprep.mubr.bf16.mxu0 %v2924_v41  ;;  %v137_v40 = vld [vmem:[%s5037_s0 + $0x3b8] sm:$0xff] }
  0xfd   :  { %v4610_v50 = vadd.f32 %v3200_v47, %v3136_v45  ;;  %v3138_v51 = vpop.f32.mrf.mxu0  ;;  %2553 = vmatprep.mubr.bf16.mxu1 %v2926_v44  ;;  %v145_v41 = vld [vmem:[%s5037_s0 + $0x3f8] sm:$0xff]  ;;  %v2955_v45 = vcombine.low %v120_v12, %v128_v13  ;;  %v2957_v47 = vcombine.low %v121_v16, %v129_v17 }
  0xfe   :  { %v3139_v54 = vadd.f32 %v3138_v51, %v3137_v48  ;;  %v3202_v55 = vpop.f32.mrf.mxu1  ;;  %v2972_v48 = vcombine.high %v136_v36, %v144_v37  ;;  %v2974_v52 = vcombine.high %v137_v40, %v145_v41 }
  0xff   :  { %v3203_v58 = vadd.f32 %v3202_v55, %v3201_v49  ;;  %v3140_v59 = vpop.f32.mrf.mxu0 }
 0x100   :  { %v3204_v62 = vpop.f32.mrf.mxu1 }
 0x101   :  { %v4624_v1 = vadd.f32 %v3203_v58, %v3139_v54  ;;  %v3141_v2 = vpop.f32.mrf.mxu0 }
 0x102   :  { %v3142_v4 = vadd.f32 %v3141_v2, %v3140_v59  ;;  %v3205_v5 = vpop.f32.mrf.mxu1  ;;  %v2971_v2 = vcombine.low %v136_v36, %v144_v37 }
 0x103   :  { %v3206_v7 = vadd.f32 %v3205_v5, %v3204_v62  ;;  %v3143_v8 = vpop.f32.mrf.mxu0  ;;  %2457 = vmatmul.mubr.bf16.gmra.mxu0 %v2923_v61 }
 0x104   :  { %v3207_v9 = vpop.f32.mrf.mxu1  ;;  %2554 = vmatmul.mubr.bf16.gmra.mxu1 %v2925_v63  ;;  %2464 = vmatprep.mubr.bf16.mxu0 %v2940_v0 }
 0x105   :  { %v4626_v10 = vadd.f32 %v3206_v7, %v3142_v4  ;;  %v3144_v11 = vpop.f32.mrf.mxu0  ;;  %2561 = vmatprep.mubr.bf16.mxu1 %v2942_v3  ;;  %v2973_v4 = vcombine.low %v137_v40, %v145_v41 }
 0x106   :  { %v3145_v14 = vadd.f32 %v3144_v11, %v3143_v8  ;;  %v3208_v15 = vpop.f32.mrf.mxu1 }
 0x107   :  { %v3209_v18 = vadd.f32 %v3208_v15, %v3207_v9  ;;  %v3146_v19 = vpop.f32.mrf.mxu0 }
 0x108   :  { %v3210_v22 = vpop.f32.mrf.mxu1 }
 0x109   :  { %v4640_v25 = vadd.f32 %v3209_v18, %v3145_v14  ;;  %v3147_v26 = vpop.f32.mrf.mxu0 }
 0x10a   :  { %v3148_v29 = vadd.f32 %v3147_v26, %v3146_v19  ;;  %v3211_v30 = vpop.f32.mrf.mxu1 }
 0x10b   :  { %v3212_v31 = vadd.f32 %v3211_v30, %v3210_v22  ;;  %v3149_v32 = vpop.f32.mrf.mxu0  ;;  %2465 = vmatmul.mubr.bf16.gmra.mxu0 %v2939_v21 }
 0x10c   :  { %v3213_v33 = vpop.f32.mrf.mxu1  ;;  %2562 = vmatmul.mubr.bf16.gmra.mxu1 %v2941_v23  ;;  %2472 = vmatprep.mubr.bf16.mxu0 %v2956_v24 }
 0x10d   :  { %v4642_v34 = vadd.f32 %v3212_v31, %v3148_v29  ;;  %v3150_v35 = vpop.f32.mrf.mxu0  ;;  %2569 = vmatprep.mubr.bf16.mxu1 %v2958_v27 }
 0x10e   :  { %v3151_v38 = vadd.f32 %v3150_v35, %v3149_v32  ;;  %v3214_v39 = vpop.f32.mrf.mxu1 }
 0x10f   :  { %v3215_v43 = vadd.f32 %v3214_v39, %v3213_v33  ;;  %v3152_v44 = vpop.f32.mrf.mxu0 }
 0x110   :  { %v3216_v46 = vpop.f32.mrf.mxu1 }
 0x111   :  { %v4656_v49 = vadd.f32 %v3215_v43, %v3151_v38  ;;  %v3153_v51 = vpop.f32.mrf.mxu0 }
 0x112   :  { %v3154_v53 = vadd.f32 %v3153_v51, %v3152_v44  ;;  %v3217_v54 = vpop.f32.mrf.mxu1 }
 0x113   :  { %v3218_v55 = vadd.f32 %v3217_v54, %v3216_v46  ;;  %v3155_v56 = vpop.f32.mrf.mxu0  ;;  %2473 = vmatmul.mubr.bf16.gmra.mxu0 %v2955_v45 }
 0x114   :  { %v3219_v57 = vpop.f32.mrf.mxu1  ;;  %2570 = vmatmul.mubr.bf16.gmra.mxu1 %v2957_v47  ;;  %2480 = vmatprep.mubr.bf16.mxu0 %v2972_v48 }
 0x115   :  { %v4658_v58 = vadd.f32 %v3218_v55, %v3154_v53  ;;  %v3156_v59 = vpop.f32.mrf.mxu0  ;;  %2577 = vmatprep.mubr.bf16.mxu1 %v2974_v52 }
 0x116   :  { %v3157_v61 = vadd.f32 %v3156_v59, %v3155_v56  ;;  %v3220_v62 = vpop.f32.mrf.mxu1 }
 0x117   :  { %v3221_v63 = vadd.f32 %v3220_v62, %v3219_v57  ;;  %v3158_v0 = vpop.f32.mrf.mxu0 }
 0x118   :  { %v3222_v3 = vpop.f32.mrf.mxu1 }
 0x119   :  { %v4660_v5 = vadd.f32 %v3221_v63, %v3157_v61  ;;  %v3159_v7 = vpop.f32.mrf.mxu0 }
 0x11a   :  { %v3160_v8 = vadd.f32 %v3159_v7, %v3158_v0  ;;  %v3223_v9 = vpop.f32.mrf.mxu1 }
 0x11b   :  { %v3224_v11 = vadd.f32 %v3223_v9, %v3222_v3  ;;  %v3161_v12 = vpop.f32.mrf.mxu0  ;;  %2481 = vmatmul.mubr.bf16.gmra.mxu0 %v2971_v2 }
 0x11c   :  { %v3225_v13 = vpop.f32.mrf.mxu1  ;;  %2578 = vmatmul.mubr.bf16.gmra.mxu1 %v2973_v4 }
 0x11d   :  { %v4662_v14 = vadd.f32 %v3224_v11, %v3160_v8  ;;  %v3162_v15 = vpop.f32.mrf.mxu0 }
 0x11e   :  { %v3163_v16 = vadd.f32 %v3162_v15, %v3161_v12  ;;  %v3226_v17 = vpop.f32.mrf.mxu1 }
 0x11f   :  { %v3227_v18 = vadd.f32 %v3226_v17, %v3225_v13  ;;  %v3164_v19 = vpop.f32.mrf.mxu0 }
 0x120   :  { %v3228_v21 = vpop.f32.mrf.mxu1 }
 0x121   :  { %v4664_v22 = vadd.f32 %v3227_v18, %v3163_v16  ;;  %v3165_v23 = vpop.f32.mrf.mxu0 }
 0x122   :  { %v3166_v24 = vadd.f32 %v3165_v23, %v3164_v19  ;;  %v3229_v26 = vpop.f32.mrf.mxu1 }
 0x123   :  { %v3230_v27 = vadd.f32 %v3229_v26, %v3228_v21  ;;  %v3247_v29 = vpop.f32.mrf.mxu0 }
 0x124   :  { %v3311_v30 = vpop.f32.mrf.mxu1 }
 0x125   :  { %v4666_v31 = vadd.f32 %v3230_v27, %v3166_v24  ;;  %v3248_v32 = vpop.f32.mrf.mxu0 }
 0x126   :  { %v3249_v33 = vadd.f32 %v3248_v32, %v3247_v29  ;;  %v3312_v35 = vpop.f32.mrf.mxu1 }
 0x127   :  { %v3313_v36 = vadd.f32 %v3312_v35, %v3311_v30  ;;  %v3250_v37 = vpop.f32.mrf.mxu0 }
 0x128   :  { %v2039_v38 = vadd.f32 %v3249_v33, %v4570_v60  ;;  %v3314_v39 = vpop.f32.mrf.mxu1 }
 0x129   :  { %v3251_v40 = vpop.f32.mrf.mxu0 }
 0x12a   :  { %v4669_v41 = vadd.f32 %v3313_v36, %v2039_v38  ;;  %v3252_v43 = vadd.f32 %v3251_v40, %v3250_v37  ;;  %v3315_v44 = vpop.f32.mrf.mxu1 }
 0x12b   :  { %v3316_v45 = vadd.f32 %v3315_v44, %v3314_v39  ;;  %v3253_v46 = vpop.f32.mrf.mxu0 }
 0x12c   :  { %v2042_v47 = vadd.f32 %v3252_v43, %v4578_v6  ;;  %v3317_v48 = vpop.f32.mrf.mxu1 }
 0x12d   :  { %v3254_v51 = vpop.f32.mrf.mxu0 }
 0x12e   :  { %v4672_v52 = vadd.f32 %v3316_v45, %v2042_v47  ;;  %v3255_v53 = vadd.f32 %v3254_v51, %v3253_v46  ;;  %v3318_v54 = vpop.f32.mrf.mxu1 }
 0x12f   :  { %v3319_v55 = vadd.f32 %v3318_v54, %v3317_v48  ;;  %v3256_v56 = vpop.f32.mrf.mxu0 }
 0x130   :  { %v2047_v60 = vadd.f32 %v3255_v53, %v4592_v20  ;;  %v3320_v57 = vpop.f32.mrf.mxu1 }
 0x131   :  { %v3257_v59 = vpop.f32.mrf.mxu0 }
 0x132   :  { %v4675_v61 = vadd.f32 %v3319_v55, %v2047_v60  ;;  %v3258_v62 = vadd.f32 %v3257_v59, %v3256_v56  ;;  %v3321_v63 = vpop.f32.mrf.mxu1 }
 0x133   :  { %v3322_v0 = vadd.f32 %v3321_v63, %v3320_v57  ;;  %v3259_v2 = vpop.f32.mrf.mxu0 }
 0x134   :  { %v2050_v6 = vadd.f32 %v3258_v62, %v4594_v28  ;;  %v3323_v3 = vpop.f32.mrf.mxu1 }
 0x135   :  { %v3260_v4 = vpop.f32.mrf.mxu0 }
 0x136   :  { %v4678_v7 = vadd.f32 %v3322_v0, %v2050_v6  ;;  %v3261_v8 = vadd.f32 %v3260_v4, %v3259_v2  ;;  %v3324_v9 = vpop.f32.mrf.mxu1 }
 0x137   :  { %v3325_v11 = vadd.f32 %v3324_v9, %v3323_v3  ;;  %v3262_v12 = vpop.f32.mrf.mxu0 }
 0x138   :  { %v2055_v20 = vadd.f32 %v3261_v8, %v4608_v42  ;;  %v3326_v13 = vpop.f32.mrf.mxu1 }
 0x139   :  { %v3263_v15 = vpop.f32.mrf.mxu0 }
 0x13a   :  { %v4681_v16 = vadd.f32 %v3325_v11, %v2055_v20  ;;  %v3264_v17 = vadd.f32 %v3263_v15, %v3262_v12  ;;  %v3327_v18 = vpop.f32.mrf.mxu1 }
 0x13b   :  { %v3328_v19 = vadd.f32 %v3327_v18, %v3326_v13  ;;  %v3265_v21 = vpop.f32.mrf.mxu0 }
 0x13c   :  { %v2058_v28 = vadd.f32 %v3264_v17, %v4610_v50  ;;  %v3329_v23 = vpop.f32.mrf.mxu1 }
 0x13d   :  { %v3266_v24 = vpop.f32.mrf.mxu0 }
 0x13e   :  { %v4684_v26 = vadd.f32 %v3328_v19, %v2058_v28  ;;  %v3267_v27 = vadd.f32 %v3266_v24, %v3265_v21  ;;  %v3330_v29 = vpop.f32.mrf.mxu1 }
 0x13f   :  { %v3331_v30 = vadd.f32 %v3330_v29, %v3329_v23  ;;  %v3268_v32 = vpop.f32.mrf.mxu0 }
 0x140   :  { %v2063_v42 = vadd.f32 %v3267_v27, %v4624_v1  ;;  %v3332_v33 = vpop.f32.mrf.mxu1 }
 0x141   :  { %v3269_v35 = vpop.f32.mrf.mxu0 }
 0x142   :  { %v4687_v36 = vadd.f32 %v3331_v30, %v2063_v42  ;;  %v3270_v37 = vadd.f32 %v3269_v35, %v3268_v32  ;;  %v3333_v38 = vpop.f32.mrf.mxu1 }
 0x143   :  { %v3334_v39 = vadd.f32 %v3333_v38, %v3332_v33  ;;  %v3271_v40 = vpop.f32.mrf.mxu0 }
 0x144   :  { %v2066_v50 = vadd.f32 %v3270_v37, %v4626_v10  ;;  %v3335_v43 = vpop.f32.mrf.mxu1 }
 0x145   :  { %v3272_v44 = vpop.f32.mrf.mxu0 }
 0x146   :  { %v4690_v45 = vadd.f32 %v3334_v39, %v2066_v50  ;;  %v3273_v46 = vadd.f32 %v3272_v44, %v3271_v40  ;;  %v3336_v47 = vpop.f32.mrf.mxu1 }
 0x147   :  { %v3337_v48 = vadd.f32 %v3336_v47, %v3335_v43  ;;  %v3274_v51 = vpop.f32.mrf.mxu0 }
 0x148   :  { %v2071_v1 = vadd.f32 %v3273_v46, %v4640_v25  ;;  %v3338_v53 = vpop.f32.mrf.mxu1 }
 0x149   :  { %v3275_v54 = vpop.f32.mrf.mxu0 }
 0x14a   :  { %v4693_v55 = vadd.f32 %v3337_v48, %v2071_v1  ;;  %v3276_v56 = vadd.f32 %v3275_v54, %v3274_v51  ;;  %v3339_v60 = vpop.f32.mrf.mxu1 }
 0x14b   :  { %v3340_v57 = vadd.f32 %v3339_v60, %v3338_v53  ;;  %v3277_v59 = vpop.f32.mrf.mxu0 }
 0x14c   :  { %v2074_v10 = vadd.f32 %v3276_v56, %v4642_v34  ;;  %v3341_v62 = vpop.f32.mrf.mxu1 }
 0x14d   :  { %v3278_v63 = vpop.f32.mrf.mxu0 }
 0x14e   :  { %v4696_v0 = vadd.f32 %v3340_v57, %v2074_v10  ;;  %v3279_v2 = vadd.f32 %v3278_v63, %v3277_v59  ;;  %v3342_v6 = vpop.f32.mrf.mxu1 }
 0x14f   :  { %v3343_v3 = vadd.f32 %v3342_v6, %v3341_v62  ;;  %v3280_v4 = vpop.f32.mrf.mxu0 }
 0x150   :  { %5041 = vst [vmem:[#allocation2_spill] sm:$0xff] %v4696_v0  ;;  %v2079_v25 = vadd.f32 %v3279_v2, %v4656_v49  ;;  %v3344_v8 = vpop.f32.mrf.mxu1 }
 0x151   :  { %v3281_v9 = vpop.f32.mrf.mxu0 }
 0x152   :  { %v4699_v11 = vadd.f32 %v3343_v3, %v2079_v25  ;;  %v3282_v12 = vadd.f32 %v3281_v9, %v3280_v4  ;;  %v3345_v20 = vpop.f32.mrf.mxu1 }
 0x153   :  { %v3346_v13 = vadd.f32 %v3345_v20, %v3344_v8  ;;  %v3283_v15 = vpop.f32.mrf.mxu0 }
 0x154   :  { %5042 = vst [vmem:[#allocation3_spill] sm:$0xff] %v4699_v11  ;;  %v2082_v34 = vadd.f32 %v3282_v12, %v4658_v58  ;;  %v3347_v17 = vpop.f32.mrf.mxu1 }
 0x155   :  { %v3284_v18 = vpop.f32.mrf.mxu0 }
 0x156   :  { %v4702_v19 = vadd.f32 %v3346_v13, %v2082_v34  ;;  %v3285_v21 = vadd.f32 %v3284_v18, %v3283_v15  ;;  %v3348_v28 = vpop.f32.mrf.mxu1 }
 0x157   :  { %v3349_v23 = vadd.f32 %v3348_v28, %v3347_v17  ;;  %v3286_v24 = vpop.f32.mrf.mxu0 }
 0x158   :  { %5043 = vst [vmem:[#allocation4_spill] sm:$0xff] %v4702_v19  ;;  %v2087_v49 = vadd.f32 %v3285_v21, %v4660_v5  ;;  %v3350_v27 = vpop.f32.mrf.mxu1 }
 0x159   :  { %v3287_v29 = vpop.f32.mrf.mxu0 }
 0x15a   :  { %v4705_v30 = vadd.f32 %v3349_v23, %v2087_v49  ;;  %v3288_v32 = vadd.f32 %v3287_v29, %v3286_v24  ;;  %v3351_v42 = vpop.f32.mrf.mxu1  ;;  %v4768_v24 = vpop.permute.xlu0 %2604 }
 0x15b   :  { %v3352_v33 = vadd.f32 %v3351_v42, %v3350_v27  ;;  %v3289_v35 = vpop.f32.mrf.mxu0  ;;  %v4778_v42 = vpop.permute.xlu1 %2614 }
 0x15c   :  { %5044 = vst [vmem:[#allocation5_spill] sm:$0xff] %v4705_v30  ;;  %v2090_v58 = vadd.f32 %v3288_v32, %v4662_v14  ;;  %v3353_v37 = vpop.f32.mrf.mxu1 }
 0x15d   :  { %v3290_v38 = vpop.f32.mrf.mxu0 }
 0x15e   :  { %v4708_v39 = vadd.f32 %v3352_v33, %v2090_v58  ;;  %v3291_v40 = vadd.f32 %v3290_v38, %v3289_v35  ;;  %v3354_v50 = vpop.f32.mrf.mxu1  ;;  %v4784_v58 = vpop.permute.xlu0 %2609 }
 0x15f   :  { %v3355_v43 = vadd.f32 %v3354_v50, %v3353_v37  ;;  %v3292_v44 = vpop.f32.mrf.mxu0 }
 0x160   :  { %5045 = vst [vmem:[#allocation6_spill] sm:$0xff] %v4708_v39  ;;  %v2095_v5 = vadd.f32 %v3291_v40, %v4664_v22  ;;  %v3356_v46 = vpop.f32.mrf.mxu1 }
 0x161   :  { %v3293_v47 = vpop.f32.mrf.mxu0 }
 0x162   :  { %v4711_v48 = vadd.f32 %v3355_v43, %v2095_v5  ;;  %v3294_v51 = vadd.f32 %v3293_v47, %v3292_v44  ;;  %v3357_v1 = vpop.f32.mrf.mxu1  ;;  %v4794_v43 = vpop.permute.xlu1 %2619 }
 0x163   :  { %v3358_v53 = vadd.f32 %v3357_v1, %v3356_v46  ;;  %v4713_v54 = vpop.f32.mrf.mxu0  ;;  %v4800_v46 = vpop.permute.xlu0 %2624 }
 0x164   :  { %5046 = vst [vmem:[#allocation7_spill] sm:$0xff] %v4711_v48  ;;  %v2098_v14 = vadd.f32 %v3294_v51, %v4666_v31  ;;  %v4716_v56 = vpop.f32.mrf.mxu1 }
 0x165   :  { %v4718_v60 = vpop.f32.mrf.mxu0 }
 0x166   :  { %v4720_v57 = vadd.f32 %v3358_v53, %v2098_v14  ;;  %v4722_v59 = vpop.f32.mrf.mxu1  ;;  %v4810_v14 = vpop.permute.xlu1 %2629 }
 0x167   :  { %v4724_v22 = vpop.f32.mrf.mxu0  ;;  %v4816_v39 = vpop.permute.xlu0 %2634 }
 0x168   :  { %5047 = vst [vmem:[#allocation8_spill] sm:$0xff] %v4720_v57  ;;  %v4726_v10 = vpop.f32.mrf.mxu1  ;;  %5055 = vst [vmem:[#allocation16_spill] sm:$0xff] %v4816_v39 }
 0x169   :  { %v4728_v62 = vpop.f32.mrf.mxu0 }
 0x16a   :  { %v4730_v63 = vpop.f32.mrf.mxu1 }
 0x16b   :  { %v4732_v2 = vpop.f32.mrf.mxu0 }
 0x16c   :  { %v4734_v6 = vpop.f32.mrf.mxu1 }
 0x16d   :  { %v4736_v31 = vpop.f32.mrf.mxu0 }
 0x16e   :  { %v4738_v3 = vpop.f32.mrf.mxu1 }
 0x16f   :  { %v4740_v4 = vpop.f32.mrf.mxu0 }
 0x170   :  { %v4742_v25 = vpop.f32.mrf.mxu1 }
 0x171   :  { %v4744_v8 = vpop.f32.mrf.mxu0 }
 0x172   :  { %v4746_v9 = vpop.f32.mrf.mxu1 }
 0x173   :  { %v4748_v12 = vpop.f32.mrf.mxu0 }
 0x174   :  { %v4750_v20 = vpop.f32.mrf.mxu1 }
 0x175   :  { %v4752_v13 = vpop.f32.mrf.mxu0 }
 0x176   :  { %v4754_v15 = vpop.f32.mrf.mxu1 }
 0x177   :  { %v4756_v34 = vpop.f32.mrf.mxu0 }
 0x178   :  { %v4758_v17 = vpop.f32.mrf.mxu1 }
 0x179   :  { %v4760_v18 = vpop.f32.mrf.mxu0 }
 0x17a   :  { %v4762_v21 = vpop.f32.mrf.mxu1 }
 0x17b   :  { %v4764_v28 = vpop.f32.mrf.mxu0 }
 0x17c   :  { %v4766_v23 = vpop.f32.mrf.mxu1 }
 0x17d   :  { %v4770_v49 = vpop.f32.mrf.mxu0 }
 0x17e   :  { %v4772_v27 = vpop.f32.mrf.mxu1 }
 0x17f   :  { %v4774_v29 = vpop.f32.mrf.mxu0 }
 0x180   :  { %v4776_v32 = vpop.f32.mrf.mxu1 }
 0x181   :  { %v4780_v33 = vpop.f32.mrf.mxu0 }
 0x182   :  { %v4782_v35 = vpop.f32.mrf.mxu1 }
 0x183   :  { %v4786_v37 = vpop.f32.mrf.mxu0 }
 0x184   :  { %v4788_v38 = vpop.f32.mrf.mxu1 }
 0x185   :  { %v4790_v40 = vpop.f32.mrf.mxu0 }
 0x186   :  { %v4792_v50 = vpop.f32.mrf.mxu1 }
 0x187   :  { %5048 = vst [vmem:[#allocation9_spill] sm:$0xff] %v4792_v50  ;;  %v4796_v44 = vpop.f32.mrf.mxu0 }
 0x188   :  { %v4798_v5 = vpop.f32.mrf.mxu1 }
 0x189   :  { %5049 = vst [vmem:[#allocation10_spill] sm:$0xff] %v4798_v5  ;;  %v4802_v47 = vpop.f32.mrf.mxu0 }
 0x18a   :  { %v4804_v51 = vpop.f32.mrf.mxu1 }
 0x18b   :  { %5050 = vst [vmem:[#allocation11_spill] sm:$0xff] %v4804_v51  ;;  %v4806_v1 = vpop.f32.mrf.mxu0  ;;  %v4826_v51 = vpop.permute.xlu1 %2639 }
 0x18c   :  { %5051 = vst [vmem:[#allocation12_spill] sm:$0xff] %v4806_v1  ;;  %v4808_v53 = vpop.f32.mrf.mxu1  ;;  %5060 = vst [vmem:[#allocation21_spill] sm:$0xff] %v4826_v51  ;;  %v4832_v1 = vpop.permute.xlu0 %2644 }
 0x18d   :  { %5052 = vst [vmem:[#allocation13_spill] sm:$0xff] %v4808_v53  ;;  %v4812_v57 = vpop.f32.mrf.mxu0  ;;  %5063 = vst [vmem:[#allocation24_spill] sm:$0xff] %v4832_v1 }
 0x18e   :  { %5053 = vst [vmem:[#allocation14_spill] sm:$0xff] %v4812_v57  ;;  %v4814_v48 = vpop.f32.mrf.mxu1 }
 0x18f   :  { %5054 = vst [vmem:[#allocation15_spill] sm:$0xff] %v4814_v48  ;;  %v4818_v30 = vpop.f32.mrf.mxu0 }
 0x190   :  { %5056 = vst [vmem:[#allocation17_spill] sm:$0xff] %v4818_v30  ;;  %v4820_v19 = vpop.f32.mrf.mxu1  ;;  %v4848_v51 = vpop.permute.xlu0 %2654 }
 0x191   :  { %5057 = vst [vmem:[#allocation18_spill] sm:$0xff] %v4820_v19  ;;  %v4822_v11 = vpop.f32.mrf.mxu0  ;;  %v4842_v19 = vpop.permute.xlu1 %2649  ;;  %5071 = vst [vmem:[#allocation32_spill] sm:$0xff] %v4848_v51 }
 0x192   :  { %5058 = vst [vmem:[#allocation19_spill] sm:$0xff] %v4822_v11  ;;  %v4824_v5 = vpop.f32.mrf.mxu1  ;;  %5068 = vst [vmem:[#allocation29_spill] sm:$0xff] %v4842_v19 }
 0x193   :  { %5059 = vst [vmem:[#allocation20_spill] sm:$0xff] %v4824_v5  ;;  %v4828_v0 = vpop.f32.mrf.mxu0 }
 0x194   :  { %5061 = vst [vmem:[#allocation22_spill] sm:$0xff] %v4828_v0  ;;  %v4830_v53 = vpop.f32.mrf.mxu1 }
 0x195   :  { %5062 = vst [vmem:[#allocation23_spill] sm:$0xff] %v4830_v53  ;;  %v4834_v57 = vpop.f32.mrf.mxu0 }
 0x196   :  { %5064 = vst [vmem:[#allocation25_spill] sm:$0xff] %v4834_v57  ;;  %v4836_v48 = vpop.f32.mrf.mxu1 }
 0x197   :  { %5065 = vst [vmem:[#allocation26_spill] sm:$0xff] %v4836_v48  ;;  %v4838_v39 = vpop.f32.mrf.mxu0  ;;  %v3377_v48 = vadd.f32 %v4718_v60, %v4713_v54  ;;  %v3441_v60 = vadd.f32 %v4722_v59, %v4716_v56 }
 0x198   :  { %5066 = vst [vmem:[#allocation27_spill] sm:$0xff] %v4838_v39  ;;  %v4840_v30 = vpop.f32.mrf.mxu1 }
 0x199   :  { %5067 = vst [vmem:[#allocation28_spill] sm:$0xff] %v4840_v30  ;;  %v4844_v11 = vpop.f32.mrf.mxu0  ;;  %v4860_v30 = vpop.permute.xlu1 %2659 }
 0x19a   :  { %5069 = vst [vmem:[#allocation30_spill] sm:$0xff] %v4844_v11  ;;  %v4846_v5 = vpop.f32.mrf.mxu1  ;;  %5076 = vst [vmem:[#allocation37_spill] sm:$0xff] %v4860_v30 }
 0x19b   :  { %5070 = vst [vmem:[#allocation31_spill] sm:$0xff] %v4846_v5  ;;  %v4850_v0 = vpop.f32.mrf.mxu0  ;;  %v4866_v5 = vpop.permute.xlu0 %2664 }
 0x19c   :  { %5072 = vst [vmem:[#allocation33_spill] sm:$0xff] %v4850_v0  ;;  %v4852_v53 = vpop.f32.mrf.mxu1  ;;  %5079 = vst [vmem:[#allocation40_spill] sm:$0xff] %v4866_v5  ;;  %v2233_v0 = vadd.f32 %v3377_v48, %v4669_v41 }
 0x19d   :  { %5073 = vst [vmem:[#allocation34_spill] sm:$0xff] %v4852_v53  ;;  %v4854_v1 = vpop.f32.mrf.mxu0  ;;  %v3380_v53 = vadd.f32 %v4728_v62, %v4724_v22  ;;  %v3444_v62 = vadd.f32 %v4730_v63, %v4726_v10 }
 0x19e   :  { %5074 = vst [vmem:[#allocation35_spill] sm:$0xff] %v4854_v1  ;;  %v4858_v39 = vpop.f32.mrf.mxu1  ;;  %v2330_v30 = vadd.f32 %v3441_v60, %v2233_v0  ;;  %v3386_v0 = vadd.f32 %v4744_v8, %v4740_v4 }
 0x19f   :  { %5075 = vst [vmem:[#allocation36_spill] sm:$0xff] %v4858_v39  ;;  %v4862_v19 = vpop.f32.mrf.mxu0  ;;  %v4882_v57 = vpop.permute.xlu0 %2674 }
 0x1a0   :  { %5077 = vst [vmem:[#allocation38_spill] sm:$0xff] %v4862_v19  ;;  %v4864_v11 = vpop.f32.mrf.mxu1  ;;  %v3383_v19 = vadd.f32 %v4736_v31, %v4732_v2  ;;  %5082 = vst [vmem:[#allocation43_spill] sm:$0xff] %v4882_v57  ;;  %v2244_v8 = vadd.f32 %v3386_v0, %v4678_v7  ;;  %v3392_v7 = vadd.f32 %v4760_v18, %v4756_v34 }
 0x1a1   :  { %5078 = vst [vmem:[#allocation39_spill] sm:$0xff] %v4864_v11  ;;  %v4868_v51 = vpop.f32.mrf.mxu0  ;;  %v4879_v11 = vpop.permute.xlu1 %2669  ;;  %v3453_v0 = vadd.f32 %v4754_v15, %v4750_v20 }
 0x1a2   :  { %5080 = vst [vmem:[#allocation41_spill] sm:$0xff] %v4868_v51  ;;  %v4873_v1 = vpop.f32.mrf.mxu1  ;;  %v2236_v51 = vadd.f32 %v3380_v53, %v4672_v52  ;;  %v2241_v50 = vadd.f32 %v3383_v19, %v4675_v61  ;;  %v3447_v53 = vadd.f32 %v4738_v3, %v4734_v6  ;;  %v3389_v19 = vadd.f32 %v4752_v13, %v4748_v12 }
 0x1a3   :  { %5081 = vst [vmem:[#allocation42_spill] sm:$0xff] %v4873_v1  ;;  %v3503_v54 = vpop.f32.mrf.mxu0  ;;  %v3450_v3 = vadd.f32 %v4746_v9, %v4742_v25 }
 0x1a4   :  { %v3567_v39 = vpop.f32.mrf.mxu1  ;;  %v2333_v31 = vadd.f32 %v3444_v62, %v2236_v51  ;;  %v2338_v61 = vadd.f32 %v3447_v53, %v2241_v50  ;;  %v2717_v51 = vpop.permute.xlu0 %2716  ;;  %v2249_v12 = vadd.f32 %v3389_v19, %v4681_v16  ;;  %v3456_v19 = vadd.f32 %v4762_v21, %v4758_v17 }
 0x1a5   :  { %v3504_v5 = vpop.f32.mrf.mxu0 }
 0x1a6   :  { %v3505_v41 = vadd.f32 %v3504_v5, %v3503_v54  ;;  %v3568_v48 = vpop.f32.mrf.mxu1  ;;  %v4891_v54 = vpop.permute.xlu1 %2679  ;;  %v2346_v53 = vadd.f32 %v3453_v0, %v2249_v12  ;;  %v3401_v12 = vadd.f32 %v4790_v40, %v4786_v37 }
 0x1a7   :  { %v3506_v22 = vpop.f32.mrf.mxu0  ;;  %v3569_v56 = vadd.f32 %v3568_v48, %v3567_v39 }
 0x1a8   :  { %v2427_v1 = vadd.f32 %v3505_v41, %v2330_v30  ;;  %v3570_v59 = vpop.f32.mrf.mxu1 }
 0x1a9   :  { %v3507_v2 = vpop.f32.mrf.mxu0 }
 0x1aa   :  { %v2524_v60 = vadd.f32 %v3569_v56, %v2427_v1  ;;  %v3508_v52 = vadd.f32 %v3507_v2, %v3506_v22  ;;  %v3571_v5 = vpop.f32.mrf.mxu1  ;;  %v2722_v13 = vpop.permute.xlu1 %2721 }
 0x1ab   :  { %v3509_v57 = vpop.f32.mrf.mxu0  ;;  %v3572_v10 = vadd.f32 %v3571_v5, %v3570_v59 }
 0x1ac   :  { %v2682_v30 = vmul.f32 %v4768_v24, %v2524_v60  ;;  %v2430_v39 = vadd.f32 %v3508_v52, %v2333_v31  ;;  %v3573_v63 = vpop.f32.mrf.mxu1 }
 0x1ad   :  { %v3510_v4 = vpop.f32.mrf.mxu0 }
 0x1ae   :  { %v2794_v1 = vadd.f32 %v2717_v51, %v2682_v30  ;;  %v2527_v41 = vadd.f32 %v3572_v10, %v2430_v39  ;;  %v3511_v48 = vadd.f32 %v3510_v4, %v3509_v57  ;;  %v3574_v6 = vpop.f32.mrf.mxu1  ;;  %v2341_v57 = vadd.f32 %v3450_v3, %v2244_v8  ;;  %v2727_v39 = vpop.permute.xlu0 %2726 }
 0x1af   :  { %v3512_v24 = vpop.f32.mrf.mxu0  ;;  %v3575_v56 = vadd.f32 %v3574_v6, %v3573_v63  ;;  %v2252_v30 = vadd.f32 %v3392_v7, %v4684_v26  ;;  %v3395_v63 = vadd.f32 %v4770_v49, %v4764_v28  ;;  %v3398_v49 = vadd.f32 %v4780_v33, %v4774_v29 }
 0x1b0   :  { %v2810_v22 = vmax.f32 %v2794_v1, 0.0  ;;  %v2683_v62 = vmul.f32 %v4784_v58, %v2527_v41  ;;  %v2435_v50 = vadd.f32 %v3511_v48, %v2338_v61  ;;  %v3576_v59 = vpop.f32.mrf.mxu1  ;;  %v2732_v48 = vpop.permute.xlu1 %2731 }
 0x1b1   :  { %v3513_v2 = vpop.f32.mrf.mxu0  ;;  %v2349_v28 = vadd.f32 %v3456_v19, %v2252_v30  ;;  %v2257_v3 = vadd.f32 %v3395_v63, %v4687_v36  ;;  %v2260_v36 = vadd.f32 %v3398_v49, %v4690_v45  ;;  %v5089_v49 = vld [vmem:[#allocation11_spill] sm:$0xff] }
 0x1b2   :  { %2827 = vst.msk [vmem:[%s5040_s4] sm:$0xff] %vm2826_vm0, %v2810_v22  ;;  %v2795_v25 = vadd.f32 %v2722_v13, %v2683_v62  ;;  %v2532_v9 = vadd.f32 %v3575_v56, %v2435_v50  ;;  %v3514_v31 = vadd.f32 %v3513_v2, %v3512_v24  ;;  %v3577_v58 = vpop.f32.mrf.mxu1  ;;  %v3459_v22 = vadd.f32 %v4772_v27, %v4766_v23  ;;  %v2737_v7 = vpop.permute.xlu0 %2736 }
 0x1b3   :  { %v3515_v60 = vpop.f32.mrf.mxu0  ;;  %v3578_v18 = vadd.f32 %v3577_v58, %v3576_v59 }
 0x1b4   :  { %v2811_v16 = vmax.f32 %v2795_v25, 0.0  ;;  %v2684_v52 = vmul.f32 %v4778_v42, %v2532_v9  ;;  %v2438_v34 = vadd.f32 %v3514_v31, %v2341_v57  ;;  %v3579_v5 = vpop.f32.mrf.mxu1  ;;  %v2354_v2 = vadd.f32 %v3459_v22, %v2257_v3 }
 0x1b5   :  { %v3516_v10 = vpop.f32.mrf.mxu0  ;;  %v3462_v25 = vadd.f32 %v4782_v35, %v4776_v32 }
 0x1b6   :  { %2828 = vst.msk [vmem:[%s5040_s4 + $0x8] sm:$0xff] %vm2826_vm0, %v2811_v16  ;;  %v2796_v20 = vadd.f32 %v2727_v39, %v2684_v52  ;;  %v2535_v15 = vadd.f32 %v3578_v18, %v2438_v34  ;;  %v3517_v61 = vadd.f32 %v3516_v10, %v3515_v60  ;;  %v3580_v42 = vpop.f32.mrf.mxu1  ;;  %v2265_v60 = vadd.f32 %v3401_v12, %v4693_v55  ;;  %v2742_v16 = vpop.permute.xlu1 %2741  ;;  %v5084_v55 = vld [vmem:[#allocation16_spill] sm:$0xff] }
 0x1b7   :  { %v3518_v51 = vpop.f32.mrf.mxu0  ;;  %v3581_v1 = vadd.f32 %v3580_v42, %v3579_v5  ;;  %v2357_v0 = vadd.f32 %v3462_v25, %v2260_v36  ;;  %v3404_v34 = vadd.f32 %v4802_v47, %v4796_v44  ;;  %v5083_v5 = vld [vmem:[#allocation9_spill] sm:$0xff]  ;;  %v5085_v47 = vld [vmem:[#allocation12_spill] sm:$0xff]  ;;  %v2747_v19 = vpop.permute.xlu0 %2746 }
 0x1b8   :  { %v2812_v4 = vmax.f32 %v2796_v20, 0.0  ;;  %v2685_v26 = vmul.f32 %v4794_v43, %v2535_v15  ;;  %v2443_v8 = vadd.f32 %v3517_v61, %v2346_v53  ;;  %v3582_v41 = vpop.f32.mrf.mxu1  ;;  %v3465_v53 = vadd.f32 %v5083_v5, %v4788_v38  ;;  %v5086_v61 = vld [vmem:[#allocation14_spill] sm:$0xff] }
 0x1b9   :  { %v3519_v6 = vpop.f32.mrf.mxu0  ;;  %v3407_v42 = vadd.f32 %v5086_v61, %v5085_v47 }
 0x1ba   :  { %2829 = vst.msk [vmem:[%s5040_s4 + $0x10] sm:$0xff] %vm2826_vm0, %v2812_v4  ;;  %v2797_v17 = vadd.f32 %v2732_v48, %v2685_v26  ;;  %v2540_v21 = vadd.f32 %v3581_v1, %v2443_v8  ;;  %v3520_v24 = vadd.f32 %v3519_v6, %v3518_v51  ;;  %v3583_v43 = vpop.f32.mrf.mxu1  ;;  %v2362_v44 = vadd.f32 %v3465_v53, %v2265_v60  ;;  %v5087_v4 = vld [vmem:[#allocation2_spill] sm:$0xff]  ;;  %v5097_v60 = vld [vmem:[#allocation4_spill] sm:$0xff] }
 0x1bb   :  { %v3521_v62 = vpop.f32.mrf.mxu0  ;;  %v3584_v56 = vadd.f32 %v3583_v43, %v3582_v41  ;;  %v2268_v26 = vadd.f32 %v3404_v34, %v5087_v4  ;;  %v5104_v4 = vld [vmem:[#allocation30_spill] sm:$0xff] }
 0x1bc   :  { %v2813_v50 = vmax.f32 %v2797_v17, 0.0  ;;  %v2686_v29 = vmul.f32 %v4800_v46, %v2540_v21  ;;  %v2446_v33 = vadd.f32 %v3520_v24, %v2349_v28  ;;  %v3585_v59 = vpop.f32.mrf.mxu1  ;;  %v5088_v28 = vld [vmem:[#allocation10_spill] sm:$0xff]  ;;  %v5090_v17 = vld [vmem:[#allocation21_spill] sm:$0xff] }
 0x1bd   :  { %v3522_v13 = vpop.f32.mrf.mxu0  ;;  %v3468_v48 = vadd.f32 %v5089_v49, %v5088_v28 }
 0x1be   :  { %2830 = vst.msk [vmem:[%s5040_s4 + $0x18] sm:$0xff] %vm2826_vm0, %v2813_v50  ;;  %v2798_v23 = vadd.f32 %v2737_v7, %v2686_v29  ;;  %v2543_v27 = vadd.f32 %v3584_v56, %v2446_v33  ;;  %v3523_v57 = vadd.f32 %v3522_v13, %v3521_v62  ;;  %v3586_v46 = vpop.f32.mrf.mxu1  ;;  %v5091_v62 = vld [vmem:[#allocation3_spill] sm:$0xff]  ;;  %v5092_v29 = vld [vmem:[#allocation17_spill] sm:$0xff] }
 0x1bf   :  { %v3524_v9 = vpop.f32.mrf.mxu0  ;;  %v3587_v40 = vadd.f32 %v3586_v46, %v3585_v59  ;;  %v2273_v50 = vadd.f32 %v3407_v42, %v5091_v62  ;;  %v5093_v33 = vld [vmem:[#allocation19_spill] sm:$0xff]  ;;  %v2752_v59 = vpop.permute.xlu1 %2751  ;;  %v2365_v12 = vadd.f32 %v3468_v48, %v2268_v26 }
 0x1c0   :  { %v2814_v45 = vmax.f32 %v2798_v23, 0.0  ;;  %v2687_v31 = vmul.f32 %v4810_v14, %v2543_v27  ;;  %v2451_v37 = vadd.f32 %v3523_v57, %v2354_v2  ;;  %v3588_v58 = vpop.f32.mrf.mxu1  ;;  %v3410_v56 = vadd.f32 %v5093_v33, %v5092_v29  ;;  %v5094_v27 = vld [vmem:[#allocation13_spill] sm:$0xff]  ;;  %v5095_v57 = vld [vmem:[#allocation15_spill] sm:$0xff] }
 0x1c1   :  { %v3525_v52 = vpop.f32.mrf.mxu0  ;;  %v3471_v46 = vadd.f32 %v5095_v57, %v5094_v27 }
 0x1c2   :  { %2831 = vst.msk [vmem:[%s5040_s4 + $0x20] sm:$0xff] %vm2826_vm0, %v2814_v45  ;;  %v2799_v32 = vadd.f32 %v2742_v16, %v2687_v31  ;;  %v2548_v35 = vadd.f32 %v3587_v40, %v2451_v37  ;;  %v3526_v18 = vadd.f32 %v3525_v52, %v3524_v9  ;;  %v3589_v14 = vpop.f32.mrf.mxu1  ;;  %v5096_v45 = vld [vmem:[#allocation24_spill] sm:$0xff]  ;;  %v2276_v16 = vadd.f32 %v3410_v56, %v5097_v60  ;;  %v2757_v52 = vpop.permute.xlu0 %2756  ;;  %v5109_v56 = vld [vmem:[#allocation6_spill] sm:$0xff] }
 0x1c3   :  { %v3527_v30 = vpop.f32.mrf.mxu0  ;;  %v3590_v20 = vadd.f32 %v3589_v14, %v3588_v58 }
 0x1c4   :  { %v2815_v39 = vmax.f32 %v2799_v32, 0.0  ;;  %v2688_v10 = vmul.f32 %v5084_v55, %v2548_v35  ;;  %v2454_v63 = vadd.f32 %v3526_v18, %v2357_v0  ;;  %v3591_v15 = vpop.f32.mrf.mxu1  ;;  %v2370_v0 = vadd.f32 %v3471_v46, %v2273_v50  ;;  %v5098_v32 = vld [vmem:[#allocation22_spill] sm:$0xff]  ;;  %v5099_v35 = vld [vmem:[#allocation25_spill] sm:$0xff]  ;;  %v5101_v55 = vld [vmem:[#allocation20_spill] sm:$0xff] }
 0x1c5   :  { %v3528_v51 = vpop.f32.mrf.mxu0  ;;  %v3413_v18 = vadd.f32 %v5099_v35, %v5098_v32  ;;  %v5115_v32 = vld [vmem:[#allocation7_spill] sm:$0xff] }
 0x1c6   :  { %2832 = vst.msk [vmem:[%s5040_s4 + $0x28] sm:$0xff] %vm2826_vm0, %v2815_v39  ;;  %v2800_v38 = vadd.f32 %v2747_v19, %v2688_v10  ;;  %v2551_v8 = vadd.f32 %v3590_v20, %v2454_v63  ;;  %v3529_v1 = vadd.f32 %v3528_v51, %v3527_v30  ;;  %v3592_v41 = vpop.f32.mrf.mxu1  ;;  %v5100_v39 = vld [vmem:[#allocation18_spill] sm:$0xff]  ;;  %v5103_v51 = vld [vmem:[#allocation27_spill] sm:$0xff] }
 0x1c7   :  { %v3530_v6 = vpop.f32.mrf.mxu0  ;;  %v3593_v43 = vadd.f32 %v3592_v41, %v3591_v15  ;;  %v3474_v10 = vadd.f32 %v5101_v55, %v5100_v39  ;;  %v5102_v15 = vld [vmem:[#allocation29_spill] sm:$0xff]  ;;  %v3416_v26 = vadd.f32 %v5104_v4, %v5103_v51 }
 0x1c8   :  { %v2816_v3 = vmax.f32 %v2800_v38, 0.0  ;;  %v2689_v21 = vmul.f32 %v5090_v17, %v2551_v8  ;;  %v2459_v24 = vadd.f32 %v3529_v1, %v2362_v44  ;;  %v3594_v22 = vpop.f32.mrf.mxu1  ;;  %v2762_v38 = vpop.permute.xlu1 %2761  ;;  %v5105_v1 = vld [vmem:[#allocation5_spill] sm:$0xff]  ;;  %v5107_v17 = vld [vmem:[#allocation26_spill] sm:$0xff] }
 0x1c9   :  { %v3531_v36 = vpop.f32.mrf.mxu0  ;;  %v2373_v19 = vadd.f32 %v3474_v10, %v2276_v16  ;;  %v2281_v41 = vadd.f32 %v3413_v18, %v5105_v1 }
 0x1ca   :  { %2833 = vst.msk [vmem:[%s5040_s4 + $0x30] sm:$0xff] %vm2826_vm0, %v2816_v3  ;;  %v2801_v7 = vadd.f32 %v2752_v59, %v2689_v21  ;;  %v2556_v13 = vadd.f32 %v3593_v43, %v2459_v24  ;;  %v3532_v2 = vadd.f32 %v3531_v36, %v3530_v6  ;;  %v3595_v23 = vpop.f32.mrf.mxu1  ;;  %v5106_v3 = vld [vmem:[#allocation23_spill] sm:$0xff]  ;;  %v2284_v59 = vadd.f32 %v3416_v26, %v5109_v56  ;;  %v5110_v36 = vld [vmem:[#allocation33_spill] sm:$0xff] }
 0x1cb   :  { %v3533_v25 = vpop.f32.mrf.mxu0  ;;  %v3596_v40 = vadd.f32 %v3595_v23, %v3594_v22  ;;  %v3477_v21 = vadd.f32 %v5107_v17, %v5106_v3  ;;  %v5108_v22 = vld [vmem:[#allocation32_spill] sm:$0xff]  ;;  %v5122_v17 = vld [vmem:[#allocation39_spill] sm:$0xff] }
 0x1cc   :  { %v2817_v9 = vmax.f32 %v2801_v7, 0.0  ;;  %v2690_v31 = vmul.f32 %v5096_v45, %v2556_v13  ;;  %v2462_v37 = vadd.f32 %v3532_v2, %v2365_v12  ;;  %v3597_v58 = vpop.f32.mrf.mxu1  ;;  %v5111_v12 = vld [vmem:[#allocation35_spill] sm:$0xff]  ;;  %v2767_v13 = vpop.permute.xlu0 %2766 }
 0x1cd   :  { %v3534_v34 = vpop.f32.mrf.mxu0  ;;  %v3419_v7 = vadd.f32 %v5111_v12, %v5110_v36  ;;  %v2378_v23 = vadd.f32 %v3477_v21, %v2281_v41  ;;  %v5113_v45 = vld [vmem:[#allocation31_spill] sm:$0xff]  ;;  %v2772_v18 = vpop.permute.xlu1 %2771  ;;  %v5121_v41 = vld [vmem:[#allocation8_spill] sm:$0xff]  ;;  %v5123_v21 = vld [vmem:[#allocation42_spill] sm:$0xff] }
 0x1ce   :  { %2834 = vst.msk [vmem:[%s5040_s4 + $0x38] sm:$0xff] %vm2826_vm0, %v2817_v9  ;;  %v2802_v14 = vadd.f32 %v2757_v52, %v2690_v31  ;;  %v2559_v5 = vadd.f32 %v3596_v40, %v2462_v37  ;;  %v3535_v53 = vadd.f32 %v3534_v34, %v3533_v25  ;;  %v3598_v30 = vpop.f32.mrf.mxu1  ;;  %v5112_v9 = vld [vmem:[#allocation28_spill] sm:$0xff] }
 0x1cf   :  { %v3536_v63 = vpop.f32.mrf.mxu0  ;;  %v3599_v61 = vadd.f32 %v3598_v30, %v3597_v58  ;;  %v3480_v31 = vadd.f32 %v5113_v45, %v5112_v9  ;;  %v5114_v58 = vld [vmem:[#allocation37_spill] sm:$0xff]  ;;  %v2289_v35 = vadd.f32 %v3419_v7, %v5115_v32 }
 0x1d0   :  { %v2818_v20 = vmax.f32 %v2802_v14, 0.0  ;;  %v2691_v44 = vmul.f32 %v5102_v15, %v2559_v5  ;;  %v2467_v47 = vadd.f32 %v3535_v53, %v2370_v0  ;;  %v3600_v42 = vpop.f32.mrf.mxu1  ;;  %v5116_v5 = vld [vmem:[#allocation38_spill] sm:$0xff]  ;;  %v5117_v53 = vld [vmem:[#allocation41_spill] sm:$0xff]  ;;  %v5119_v15 = vld [vmem:[#allocation36_spill] sm:$0xff] }
 0x1d1   :  { %v3537_v8 = vpop.f32.mrf.mxu0  ;;  %v2381_v34 = vadd.f32 %v3480_v31, %v2284_v59  ;;  %v3422_v30 = vadd.f32 %v5117_v53, %v5116_v5  ;;  %v2782_v56 = vpop.permute.xlu1 %2781 }
 0x1d2   :  { %2835 = vst.msk [vmem:[%s5040_s4 + $0x40] sm:$0xff] %vm2826_vm0, %v2818_v20  ;;  %v2803_v28 = vadd.f32 %v2762_v38, %v2691_v44  ;;  %v2564_v49 = vadd.f32 %v3599_v61, %v2467_v47  ;;  %v3538_v48 = vadd.f32 %v3537_v8, %v3536_v63  ;;  %v3601_v6 = vpop.f32.mrf.mxu1  ;;  %v5118_v20 = vld [vmem:[#allocation34_spill] sm:$0xff]  ;;  %v2777_v8 = vpop.permute.xlu0 %2776 }
 0x1d3   :  { %v3539_v24 = vpop.f32.mrf.mxu0  ;;  %v3602_v29 = vadd.f32 %v3601_v6, %v3600_v42  ;;  %v3483_v44 = vadd.f32 %v5119_v15, %v5118_v20  ;;  %v5120_v42 = vld [vmem:[#allocation40_spill] sm:$0xff] }
 0x1d4   :  { %v2819_v43 = vmax.f32 %v2803_v28, 0.0  ;;  %v2692_v62 = vmul.f32 %v5108_v22, %v2564_v49  ;;  %v2470_v50 = vadd.f32 %v3538_v48, %v2373_v19  ;;  %v3603_v33 = vpop.f32.mrf.mxu1  ;;  %v2292_v28 = vadd.f32 %v3422_v30, %v5121_v41 }
 0x1d5   :  { %v3540_v2 = vpop.f32.mrf.mxu0  ;;  %v2386_v38 = vadd.f32 %v3483_v44, %v2289_v35 }
 0x1d6   :  { %2836 = vst.msk [vmem:[%s5040_s4 + $0x48] sm:$0xff] %vm2826_vm0, %v2819_v43  ;;  %v2804_v27 = vadd.f32 %v2767_v13, %v2692_v62  ;;  %v2567_v57 = vadd.f32 %v3602_v29, %v2470_v50  ;;  %v3541_v46 = vadd.f32 %v3540_v2, %v3539_v24  ;;  %v3604_v25 = vpop.f32.mrf.mxu1  ;;  %v3486_v24 = vadd.f32 %v5123_v21, %v5122_v17 }
 0x1d7   :  { %v3542_v37 = vpop.f32.mrf.mxu0  ;;  %v3605_v16 = vadd.f32 %v3604_v25, %v3603_v33  ;;  %v2787_v25 = vpop.permute.xlu0 %2786 }
 0x1d8   :  { %v2820_v40 = vmax.f32 %v2804_v27, 0.0  ;;  %v2693_v0 = vmul.f32 %v5114_v58, %v2567_v57  ;;  %v2475_v60 = vadd.f32 %v3541_v46, %v2378_v23  ;;  %v3606_v52 = vpop.f32.mrf.mxu1  ;;  %v2389_v36 = vadd.f32 %v3486_v24, %v2292_v28  ;;  %v5124_v27 = vld [vmem:[#allocation43_spill] sm:$0xff] }
 0x1d9   :  { %v3543_v14 = vpop.f32.mrf.mxu0 }
 0x1da   :  { %2837 = vst.msk [vmem:[%s5040_s4 + $0x50] sm:$0xff] %vm2826_vm0, %v2820_v40  ;;  %v2805_v39 = vadd.f32 %v2772_v18, %v2693_v0  ;;  %v2572_v55 = vadd.f32 %v3605_v16, %v2475_v60  ;;  %v3544_v10 = vadd.f32 %v3543_v14, %v3542_v37  ;;  %v3607_v63 = vpop.f32.mrf.mxu1  ;;  %v2792_v40 = vpop.permute.xlu1 %2791 }
 0x1db   :  { %v3545_v47 = vpop.f32.mrf.mxu0  ;;  %v3608_v4 = vadd.f32 %v3607_v63, %v3606_v52 }
 0x1dc   :  { %v2821_v61 = vmax.f32 %v2805_v39, 0.0  ;;  %v2694_v19 = vmul.f32 %v5120_v42, %v2572_v55  ;;  %v2478_v51 = vadd.f32 %v3544_v10, %v2381_v34  ;;  %v3609_v26 = vpop.f32.mrf.mxu1 }
 0x1dd   :  { %v3546_v1 = vpop.f32.mrf.mxu0 }
 0x1de   :  { %2838 = vst.msk [vmem:[%s5040_s4 + $0x58] sm:$0xff] %vm2826_vm0, %v2821_v61  ;;  %v2806_v49 = vadd.f32 %v2777_v8, %v2694_v19  ;;  %v2575_v48 = vadd.f32 %v3608_v4, %v2478_v51  ;;  %v3547_v6 = vadd.f32 %v3546_v1, %v3545_v47  ;;  %v3610_v3 = vpop.f32.mrf.mxu1 }
 0x1df   :  { %v3548_v43 = vpop.f32.mrf.mxu0  ;;  %v3611_v29 = vadd.f32 %v3610_v3, %v3609_v26 }
 0x1e0   :  { %v2822_v22 = vmax.f32 %v2806_v49, 0.0  ;;  %v2695_v62 = vmul.f32 %v4879_v11, %v2575_v48  ;;  %v2483_v50 = vadd.f32 %v3547_v6, %v2386_v38  ;;  %v3612_v33 = vpop.f32.mrf.mxu1 }
 0x1e1   :  { %v3549_v59 = vpop.f32.mrf.mxu0 }
 0x1e2   :  { %2839 = vst.msk [vmem:[%s5040_s4 + $0x60] sm:$0xff] %vm2826_vm0, %v2822_v22  ;;  %v2807_v12 = vadd.f32 %v2782_v56, %v2695_v62  ;;  %v2580_v7 = vadd.f32 %v3611_v29, %v2483_v50  ;;  %v3550_v13 = vadd.f32 %v3549_v59, %v3548_v43  ;;  %v3613_v2 = vpop.f32.mrf.mxu1 }
 0x1e3   :  { %v3614_v11 = vadd.f32 %v3613_v2, %v3612_v33 }
 0x1e4   :  { %v2823_v23 = vmax.f32 %v2807_v12, 0.0  ;;  %v2696_v57 = vmul.f32 %v5124_v27, %v2580_v7  ;;  %v2486_v46 = vadd.f32 %v3550_v13, %v2389_v36 }
 0x1e6   :  { %2840 = vst.msk [vmem:[%s5040_s4 + $0x68] sm:$0xff] %vm2826_vm0, %v2823_v23  ;;  %v2808_v9 = vadd.f32 %v2787_v25, %v2696_v57  ;;  %v2583_v45 = vadd.f32 %v3614_v11, %v2486_v46 }
 0x1e8   :  { %v2824_v31 = vmax.f32 %v2808_v9, 0.0  ;;  %v2697_v37 = vmul.f32 %v4891_v54, %v2583_v45 }
 0x1ea   :  { %2841 = vst.msk [vmem:[%s5040_s4 + $0x70] sm:$0xff] %vm2826_vm0, %v2824_v31  ;;  %v2809_v58 = vadd.f32 %v2792_v40, %v2697_v37 }
 0x1ec   :  { %v2825_v0 = vmax.f32 %v2809_v58, 0.0 }
 0x1ee   :  { %2842 = vst.msk [vmem:[%s5040_s4 + $0x78] sm:$0xff] %vm2826_vm0, %v2825_v0 }

// kernel: forward.14
= control target key start
LH: loop header
LB: loop body
LE: loop exit
PB: predicated region body
PF: predicated region fallthrough
CT: control target
= control target key end

     0   :  { %v1438_v1 = vmov 0   ;;  %vm1102_vm0 = vcmask 64512   ;;  %s1898_s1 = inlined_call_operand.vmem [shape: bf16[1024,8], index: 1, kind: input, shape index: {}]   ;;  %s1899_s0 = inlined_call_operand.vmem [shape: bf16[64,1024], index: 0, kind: input, shape index: {}]   ;;  %s1900_s2 = inlined_call_operand.vmem [shape: f32[64,1], index: 2, kind: input, shape index: {}]   ;;  %s1901_s3 = inlined_call_operand.vmem [shape: f32[64,1], index: 3, kind: input, shape index: {}]   ;;  %s1902_s4 = inlined_call_operand.vmem [shape: f32[64,8], index: 4, kind: output, shape index: {}]  }
   0x1   :  { %v1374_v0 = vld [vmem:[%s1898_s1 + $0x78] sm:$0xff]   ;;  %1373 = vset.pattern.permute.xlu1 %v1438_v1  ;;  %1372 = vset.pattern.permute.xlu0 %v1438_v1  ;;  %v1378_v5 = vld [vmem:[%s1898_s1 + $0x70] sm:$0xff]   ;;  %v1382_v9 = vld [vmem:[%s1898_s1 + $0x68] sm:$0xff]  }
   0x2   :  { %v1375_v2 = vld [vmem:[%s1898_s1 + $0xf8] sm:$0xff]   ;;  %1211 = vmatprep.subr.bf16.mxu0 %v1374_v0  ;;  %v1379_v6 = vld [vmem:[%s1898_s1 + $0xf0] sm:$0xff]   ;;  %v1383_v10 = vld [vmem:[%s1898_s1 + $0xe8] sm:$0xff]  }
   0x3   :  { %v1376_v3 = vld [vmem:[%s1898_s1 + $0x38] sm:$0xff]   ;;  %1251 = vmatprep.subr.bf16.mxu1 %v1375_v2  ;;  %v1380_v7 = vld [vmem:[%s1898_s1 + $0x30] sm:$0xff]   ;;  %v1384_v11 = vld [vmem:[%s1898_s1 + $0x28] sm:$0xff]  }
   0x4   :  { %v1377_v4 = vld [vmem:[%s1898_s1 + $0xb8] sm:$0xff]   ;;  %1212 = vmatpush3.bf16.msra.mxu0 %v1376_v3  ;;  %v1381_v8 = vld [vmem:[%s1898_s1 + $0xb0] sm:$0xff]   ;;  %v1385_v12 = vld [vmem:[%s1898_s1 + $0xa8] sm:$0xff]  }
   0x5   :  { %1252 = vmatpush3.bf16.msra.mxu1 %v1377_v4  ;;  %1213 = vmatprep.subr.bf16.mxu0 %v1378_v5  ;;  %v1386_v13 = vld [vmem:[%s1898_s1 + $0x60] sm:$0xff]   ;;  %v1390_v17 = vld [vmem:[%s1898_s1 + $0x58] sm:$0xff]   ;;  %v1394_v21 = vld [vmem:[%s1898_s1 + $0x50] sm:$0xff]  }
   0x6   :  { %1253 = vmatprep.subr.bf16.mxu1 %v1379_v6  ;;  %v1387_v14 = vld [vmem:[%s1898_s1 + $0xe0] sm:$0xff]   ;;  %v1391_v18 = vld [vmem:[%s1898_s1 + $0xd8] sm:$0xff]   ;;  %v1395_v22 = vld [vmem:[%s1898_s1 + $0xd0] sm:$0xff]  }
   0x7   :  { %v1388_v15 = vld [vmem:[%s1898_s1 + $0x20] sm:$0xff]   ;;  %v1392_v19 = vld [vmem:[%s1898_s1 + $0x18] sm:$0xff]   ;;  %v1396_v23 = vld [vmem:[%s1898_s1 + $0x10] sm:$0xff]  }
   0x8   :  { %1214 = vmatpush3.bf16.msra.mxu0 %v1380_v7  ;;  %v1389_v16 = vld [vmem:[%s1898_s1 + $0xa0] sm:$0xff]   ;;  %v1393_v20 = vld [vmem:[%s1898_s1 + $0x98] sm:$0xff]   ;;  %v1397_v24 = vld [vmem:[%s1898_s1 + $0x90] sm:$0xff]  }
   0x9   :  { %1254 = vmatpush3.bf16.msra.mxu1 %v1381_v8  ;;  %1215 = vmatprep.subr.bf16.mxu0 %v1382_v9  ;;  %v1398_v25 = vld [vmem:[%s1898_s1 + $0x48] sm:$0xff]   ;;  %v1402_v29 = vld [vmem:[%s1898_s1 + $0x40] sm:$0xff]   ;;  %v1406_v41 = vld [vmem:[%s1898_s1 + $0x178] sm:$0xff]  }
   0xa   :  { %1255 = vmatprep.subr.bf16.mxu1 %v1383_v10  ;;  %v1399_v26 = vld [vmem:[%s1898_s1 + $0xc8] sm:$0xff]   ;;  %v1403_v30 = vld [vmem:[%s1898_s1 + $0xc0] sm:$0xff]   ;;  %v1407_v42 = vld [vmem:[%s1898_s1 + $0x1f8] sm:$0xff]  }
   0xb   :  { %v1400_v27 = vld [vmem:[%s1898_s1 + $0x8] sm:$0xff]   ;;  %v1404_v31 = vld [vmem:[%s1898_s1] sm:$0xff]   ;;  %v1408_v43 = vld [vmem:[%s1898_s1 + $0x138] sm:$0xff]  }
   0xc   :  { %1216 = vmatpush3.bf16.msra.mxu0 %v1384_v11  ;;  %v1401_v28 = vld [vmem:[%s1898_s1 + $0x88] sm:$0xff]   ;;  %v1405_v32 = vld [vmem:[%s1898_s1 + $0x80] sm:$0xff]   ;;  %v1409_v44 = vld [vmem:[%s1898_s1 + $0x1b8] sm:$0xff]  }
   0xd   :  { %1256 = vmatpush3.bf16.msra.mxu1 %v1385_v12  ;;  %1217 = vmatprep.subr.bf16.mxu0 %v1386_v13  ;;  %v18_v33 = vld [vmem:[%s1899_s0] sm:$0xff]  ;;  %v19_v35 = vld [vmem:[%s1899_s0 + $0x8] sm:$0xff]  ;;  %v1410_v45 = vld [vmem:[%s1898_s1 + $0x170] sm:$0xff]  }
   0xe   :  { %1257 = vmatprep.subr.bf16.mxu1 %v1387_v14  ;;  %v22_v34 = vld [vmem:[%s1899_s0 + $0x20] sm:$0xff]  ;;  %v23_v38 = vld [vmem:[%s1899_s0 + $0x28] sm:$0xff]  ;;  %v1411_v46 = vld [vmem:[%s1898_s1 + $0x1f0] sm:$0xff]  }
   0xf   :  { %v1115_v36 = vcombine.low %v18_v33, %v22_v34  ;;  %v1116_v37 = vcombine.high %v18_v33, %v22_v34  ;;  %v1117_v39 = vcombine.low %v19_v35, %v23_v38  ;;  %v1118_v40 = vcombine.high %v19_v35, %v23_v38  ;;  %v1412_v47 = vld [vmem:[%s1898_s1 + $0x130] sm:$0xff]   ;;  %v26_v49 = vld [vmem:[%s1899_s0 + $0x40] sm:$0xff]  ;;  %v27_v52 = vld [vmem:[%s1899_s0 + $0x48] sm:$0xff] }
  0x10   :  { %1218 = vmatpush3.bf16.msra.mxu0 %v1388_v15  ;;  %v1413_v48 = vld [vmem:[%s1898_s1 + $0x1b0] sm:$0xff]   ;;  %v30_v50 = vld [vmem:[%s1899_s0 + $0x60] sm:$0xff]  ;;  %v31_v53 = vld [vmem:[%s1899_s0 + $0x68] sm:$0xff] }
  0x11   :  { %1258 = vmatpush3.bf16.msra.mxu1 %v1389_v16  ;;  %1219 = vmatprep.subr.bf16.mxu0 %v1390_v17  ;;  %v1124_v51 = vcombine.high %v26_v49, %v30_v50  ;;  %v1123_v54 = vcombine.low %v26_v49, %v30_v50  ;;  %v1126_v55 = vcombine.high %v27_v52, %v31_v53  ;;  %v1414_v57 = vld [vmem:[%s1898_s1 + $0x168] sm:$0xff]   ;;  %v1418_v61 = vld [vmem:[%s1898_s1 + $0x160] sm:$0xff]   ;;  %v1422_v9 = vld [vmem:[%s1898_s1 + $0x158] sm:$0xff]  }
  0x12   :  { %1259 = vmatprep.subr.bf16.mxu1 %v1391_v18  ;;  %754 = vmatprep.mubr.bf16.mxu0 %v1116_v37  ;;  %v1125_v56 = vcombine.low %v27_v52, %v31_v53  ;;  %v1415_v58 = vld [vmem:[%s1898_s1 + $0x1e8] sm:$0xff]   ;;  %v1419_v62 = vld [vmem:[%s1898_s1 + $0x1e0] sm:$0xff]   ;;  %v1423_v10 = vld [vmem:[%s1898_s1 + $0x1d8] sm:$0xff]  }
  0x13   :  { %819 = vmatprep.mubr.bf16.mxu1 %v1118_v40  ;;  %v1416_v59 = vld [vmem:[%s1898_s1 + $0x128] sm:$0xff]   ;;  %v1420_v63 = vld [vmem:[%s1898_s1 + $0x120] sm:$0xff]   ;;  %v1424_v11 = vld [vmem:[%s1898_s1 + $0x118] sm:$0xff]  }
  0x14   :  { %1220 = vmatpush3.bf16.msra.mxu0 %v1392_v19  ;;  %v1417_v60 = vld [vmem:[%s1898_s1 + $0x1a8] sm:$0xff]   ;;  %v1421_v0 = vld [vmem:[%s1898_s1 + $0x1a0] sm:$0xff]   ;;  %v1425_v12 = vld [vmem:[%s1898_s1 + $0x198] sm:$0xff]  }
  0x15   :  { %1260 = vmatpush3.bf16.msra.mxu1 %v1393_v20  ;;  %1221 = vmatprep.subr.bf16.mxu0 %v1394_v21  ;;  %v34_v1 = vld [vmem:[%s1899_s0 + $0x80] sm:$0xff]  ;;  %v35_v3 = vld [vmem:[%s1899_s0 + $0x88] sm:$0xff]  ;;  %v1426_v13 = vld [vmem:[%s1898_s1 + $0x150] sm:$0xff]  }
  0x16   :  { %1261 = vmatprep.subr.bf16.mxu1 %v1395_v22  ;;  %v38_v2 = vld [vmem:[%s1899_s0 + $0xa0] sm:$0xff]  ;;  %v39_v4 = vld [vmem:[%s1899_s0 + $0xa8] sm:$0xff]  ;;  %v1427_v14 = vld [vmem:[%s1898_s1 + $0x1d0] sm:$0xff]  }
  0x17   :  { %v1132_v5 = vcombine.high %v34_v1, %v38_v2  ;;  %v1134_v6 = vcombine.high %v35_v3, %v39_v4  ;;  %v1131_v7 = vcombine.low %v34_v1, %v38_v2  ;;  %v1133_v8 = vcombine.low %v35_v3, %v39_v4  ;;  %v1428_v15 = vld [vmem:[%s1898_s1 + $0x110] sm:$0xff]   ;;  %v42_v17 = vld [vmem:[%s1899_s0 + $0xc0] sm:$0xff]  ;;  %v43_v19 = vld [vmem:[%s1899_s0 + $0xc8] sm:$0xff] }
  0x18   :  { %1222 = vmatpush3.bf16.msra.mxu0 %v1396_v23  ;;  %v1429_v16 = vld [vmem:[%s1898_s1 + $0x190] sm:$0xff]   ;;  %v46_v18 = vld [vmem:[%s1899_s0 + $0xe0] sm:$0xff]  ;;  %v47_v21 = vld [vmem:[%s1899_s0 + $0xe8] sm:$0xff] }
  0x19   :  { %1262 = vmatpush3.bf16.msra.mxu1 %v1397_v24  ;;  %1223 = vmatprep.subr.bf16.mxu0 %v1398_v25  ;;  %v1140_v20 = vcombine.high %v42_v17, %v46_v18  ;;  %v1139_v22 = vcombine.low %v42_v17, %v46_v18  ;;  %v1142_v23 = vcombine.high %v43_v19, %v47_v21  ;;  %v1430_v25 = vld [vmem:[%s1898_s1 + $0x148] sm:$0xff]   ;;  %v20_v33 = vld [vmem:[%s1899_s0 + $0x10] sm:$0xff]  ;;  %v21_v37 = vld [vmem:[%s1899_s0 + $0x18] sm:$0xff] }
  0x1a   :  { %1263 = vmatprep.subr.bf16.mxu1 %v1399_v26  ;;  %v1141_v24 = vcombine.low %v43_v19, %v47_v21  ;;  %v1431_v26 = vld [vmem:[%s1898_s1 + $0x1c8] sm:$0xff]   ;;  %v24_v34 = vld [vmem:[%s1899_s0 + $0x30] sm:$0xff]  ;;  %v25_v38 = vld [vmem:[%s1899_s0 + $0x38] sm:$0xff] }
  0x1b   :  { %v1119_v35 = vcombine.low %v20_v33, %v24_v34  ;;  %v1121_v40 = vcombine.low %v21_v37, %v25_v38  ;;  %v40_v49 = vld [vmem:[%s1899_s0 + $0xb0] sm:$0xff]  ;;  %v982_v50 = vld [vmem:[%s1900_s2] sm:$0xff]  ;;  %v41_v52 = vld [vmem:[%s1899_s0 + $0xb8] sm:$0xff] }
  0x1c   :  { %1224 = vmatpush3.bf16.msra.mxu0 %v1400_v27  ;;  %v1432_v27 = vld [vmem:[%s1898_s1 + $0x108] sm:$0xff]   ;;  %992 = vperm.xlu0 %1372, %v982_v50   ;;  %v985_v53 = vld [vmem:[%s1900_s2 + $0x18] sm:$0xff]  ;;  %v988_v3 = vld [vmem:[%s1900_s2 + $0x30] sm:$0xff] }
  0x1d   :  { %1264 = vmatpush3.bf16.msra.mxu1 %v1401_v28  ;;  %1225 = vmatprep.subr.bf16.mxu0 %v1402_v29  ;;  %v1433_v28 = vld [vmem:[%s1898_s1 + $0x188] sm:$0xff]   ;;  %v1434_v29 = vld [vmem:[%s1898_s1 + $0x140] sm:$0xff]   ;;  %v989_v1 = vld [vmem:[%s1900_s2 + $0x38] sm:$0xff] }
  0x1e   :  { %1265 = vmatprep.subr.bf16.mxu1 %v1403_v30  ;;  %v1435_v30 = vld [vmem:[%s1898_s1 + $0x1c0] sm:$0xff]  }
  0x20   :  { %1226 = vmatpush3.bf16.msra.mxu0 %v1404_v31  ;;  %v1436_v31 = vld [vmem:[%s1898_s1 + $0x100] sm:$0xff]  }
  0x21   :  { %1266 = vmatpush3.bf16.msra.mxu1 %v1405_v32  ;;  %1291 = vmatprep.subr.bf16.mxu0 %v1406_v41  ;;  %v1437_v32 = vld [vmem:[%s1898_s1 + $0x180] sm:$0xff]   ;;  %v1122_v41 = vcombine.high %v21_v37, %v25_v38 }
  0x22   :  { %1331 = vmatprep.subr.bf16.mxu1 %v1407_v42  ;;  %v32_v42 = vld [vmem:[%s1899_s0 + $0x70] sm:$0xff] }
  0x23   :  { %755 = vmatmul.mubr.bf16.vlgmr.msra.gmra.mxu0 %v1115_v36  ;;  %v1120_v36 = vcombine.high %v20_v33, %v24_v34 }
  0x24   :  { %820 = vmatmul.mubr.bf16.vlgmr.msra.gmra.mxu1 %v1117_v39  ;;  %1292 = vmatpush3.bf16.msra.mxu0 %v1408_v43  ;;  %v28_v39 = vld [vmem:[%s1899_s0 + $0x50] sm:$0xff]  ;;  %v29_v43 = vld [vmem:[%s1899_s0 + $0x58] sm:$0xff] }
  0x25   :  { %1332 = vmatpush3.bf16.msra.mxu1 %v1409_v44  ;;  %1293 = vmatprep.subr.bf16.mxu0 %v1410_v45  ;;  %v33_v44 = vld [vmem:[%s1899_s0 + $0x78] sm:$0xff]  ;;  %v1128_v45 = vcombine.high %v28_v39, %v32_v42 }
  0x26   :  { %1333 = vmatprep.subr.bf16.mxu1 %v1411_v46  ;;  %762 = vmatprep.mubr.bf16.mxu0 %v1124_v51  ;;  %v1130_v46 = vcombine.high %v29_v43, %v33_v44  ;;  %v37_v51 = vld [vmem:[%s1899_s0 + $0x98] sm:$0xff] }
  0x27   :  { %827 = vmatprep.mubr.bf16.mxu1 %v1126_v55  ;;  %v983_v55 = vld [vmem:[%s1900_s2 + $0x8] sm:$0xff]  ;;  %v1137_v4 = vcombine.low %v37_v51, %v41_v52 }
  0x28   :  { %1294 = vmatpush3.bf16.msra.mxu0 %v1412_v47  ;;  %v984_v47 = vld [vmem:[%s1900_s2 + $0x10] sm:$0xff]  ;;  %997 = vperm.xlu0 %1372, %v983_v55  }
  0x29   :  { %1334 = vmatpush3.bf16.msra.mxu1 %v1413_v48  ;;  %1295 = vmatprep.subr.bf16.mxu0 %v1414_v57  ;;  %v36_v48 = vld [vmem:[%s1899_s0 + $0x90] sm:$0xff] }
  0x2a   :  { %1335 = vmatprep.subr.bf16.mxu1 %v1415_v58  ;;  %1002 = vperm.xlu1 %1373, %v984_v47   ;;  %v1136_v57 = vcombine.high %v36_v48, %v40_v49  ;;  %v1138_v58 = vcombine.high %v37_v51, %v41_v52  ;;  %v1135_v2 = vcombine.low %v36_v48, %v40_v49 }
  0x2b   :  { %763 = vmatmul.mubr.bf16.gmra.mxu0 %v1123_v54  ;;  %v1127_v54 = vcombine.low %v28_v39, %v32_v42 }
  0x2c   :  { %828 = vmatmul.mubr.bf16.gmra.mxu1 %v1125_v56  ;;  %1296 = vmatpush3.bf16.msra.mxu0 %v1416_v59  ;;  %v1129_v56 = vcombine.low %v29_v43, %v33_v44  ;;  %v987_v59 = vld [vmem:[%s1900_s2 + $0x28] sm:$0xff] }
  0x2d   :  { %1336 = vmatpush3.bf16.msra.mxu1 %v1417_v60  ;;  %1297 = vmatprep.subr.bf16.mxu0 %v1418_v61  ;;  %v986_v60 = vld [vmem:[%s1900_s2 + $0x20] sm:$0xff]  ;;  %v44_v61 = vld [vmem:[%s1899_s0 + $0xd0] sm:$0xff] }
  0x2e   :  { %1337 = vmatprep.subr.bf16.mxu1 %v1419_v62  ;;  %770 = vmatprep.mubr.bf16.mxu0 %v1132_v5  ;;  %v48_v62 = vld [vmem:[%s1899_s0 + $0xf0] sm:$0xff] }
  0x2f   :  { %835 = vmatprep.mubr.bf16.mxu1 %v1134_v6  ;;  %1007 = vperm.xlu1 %1373, %v985_v53   ;;  %v1144_v5 = vcombine.high %v44_v61, %v48_v62 }
  0x30   :  { %1298 = vmatpush3.bf16.msra.mxu0 %v1420_v63  ;;  %v45_v63 = vld [vmem:[%s1899_s0 + $0xd8] sm:$0xff]  ;;  %1012 = vperm.xlu0 %1372, %v986_v60  }
  0x31   :  { %1338 = vmatpush3.bf16.msra.mxu1 %v1421_v0  ;;  %1299 = vmatprep.subr.bf16.mxu0 %v1422_v9  ;;  %v49_v0 = vld [vmem:[%s1899_s0 + $0xf8] sm:$0xff] }
  0x32   :  { %1339 = vmatprep.subr.bf16.mxu1 %v1423_v10  ;;  %v1146_v6 = vcombine.high %v45_v63, %v49_v0  ;;  %v1041_v9 = vld [vmem:[%s1901_s3 + $0x18] sm:$0xff]  ;;  %v1143_v10 = vcombine.low %v44_v61, %v48_v62 }
  0x33   :  { %771 = vmatmul.mubr.bf16.gmra.mxu0 %v1131_v7  ;;  %1017 = vperm.xlu1 %1373, %v987_v59   ;;  %v1039_v7 = vld [vmem:[%s1901_s3 + $0x8] sm:$0xff] }
  0x34   :  { %836 = vmatmul.mubr.bf16.gmra.mxu1 %v1133_v8  ;;  %1300 = vmatpush3.bf16.msra.mxu0 %v1424_v11  ;;  %v1038_v8 = vld [vmem:[%s1901_s3] sm:$0xff]  ;;  %v1040_v11 = vld [vmem:[%s1901_s3 + $0x10] sm:$0xff] }
  0x35   :  { %1340 = vmatpush3.bf16.msra.mxu1 %v1425_v12  ;;  %1301 = vmatprep.subr.bf16.mxu0 %v1426_v13  ;;  %v1145_v12 = vcombine.low %v45_v63, %v49_v0  ;;  %v1043_v13 = vld [vmem:[%s1901_s3 + $0x28] sm:$0xff] }
  0x36   :  { %1341 = vmatprep.subr.bf16.mxu1 %v1427_v14  ;;  %778 = vmatprep.mubr.bf16.mxu0 %v1140_v20  ;;  %v1042_v14 = vld [vmem:[%s1901_s3 + $0x20] sm:$0xff] }
  0x37   :  { %843 = vmatprep.mubr.bf16.mxu1 %v1142_v23  ;;  %1027 = vperm.xlu1 %1373, %v989_v1  }
  0x38   :  { %1302 = vmatpush3.bf16.msra.mxu0 %v1428_v15  ;;  %1022 = vperm.xlu0 %1372, %v988_v3   ;;  %v1045_v15 = vld [vmem:[%s1901_s3 + $0x38] sm:$0xff] }
  0x39   :  { %1342 = vmatpush3.bf16.msra.mxu1 %v1429_v16  ;;  %1303 = vmatprep.subr.bf16.mxu0 %v1430_v25  ;;  %v1044_v16 = vld [vmem:[%s1901_s3 + $0x30] sm:$0xff] }
  0x3a   :  { %1343 = vmatprep.subr.bf16.mxu1 %v1431_v26 }
  0x3b   :  { %779 = vmatmul.mubr.bf16.gmra.mxu0 %v1139_v22  ;;  %1053 = vperm.xlu1 %1373, %v1039_v7  }
  0x3c   :  { %844 = vmatmul.mubr.bf16.gmra.mxu1 %v1141_v24  ;;  %1304 = vmatpush3.bf16.msra.mxu0 %v1432_v27 }
  0x3d   :  { %1344 = vmatpush3.bf16.msra.mxu1 %v1433_v28  ;;  %1305 = vmatprep.subr.bf16.mxu0 %v1434_v29 }
  0x3e   :  { %1345 = vmatprep.subr.bf16.mxu1 %v1435_v30  ;;  %884 = vmatprep.mubr.bf16.mxu0 %v1120_v36 }
  0x3f   :  { %949 = vmatprep.mubr.bf16.mxu1 %v1122_v41  ;;  %1048 = vperm.xlu0 %1372, %v1038_v8  }
  0x40   :  { %1306 = vmatpush3.bf16.msra.mxu0 %v1436_v31  ;;  %1063 = vperm.xlu1 %1373, %v1041_v9  }
  0x41   :  { %1346 = vmatpush3.bf16.msra.mxu1 %v1437_v32 }
  0x43   :  { %885 = vmatmul.mubr.bf16.vlgmr.msra.gmra.mxu0 %v1119_v35  ;;  %1058 = vperm.xlu0 %1372, %v1040_v11  }
  0x44   :  { %950 = vmatmul.mubr.bf16.vlgmr.msra.gmra.mxu1 %v1121_v40  ;;  %892 = vmatprep.mubr.bf16.mxu0 %v1128_v45 }
  0x45   :  { %957 = vmatprep.mubr.bf16.mxu1 %v1130_v46  ;;  %1073 = vperm.xlu1 %1373, %v1043_v13  }
  0x47   :  { %1068 = vperm.xlu0 %1372, %v1042_v14  }
  0x49   :  { %1083 = vperm.xlu1 %1373, %v1045_v15  }
  0x4b   :  { %893 = vmatmul.mubr.bf16.gmra.mxu0 %v1127_v54  ;;  %1078 = vperm.xlu0 %1372, %v1044_v16  }
  0x4c   :  { %958 = vmatmul.mubr.bf16.gmra.mxu1 %v1129_v56  ;;  %900 = vmatprep.mubr.bf16.mxu0 %v1136_v57 }
  0x4d   :  { %965 = vmatprep.mubr.bf16.mxu1 %v1138_v58 }
  0x53   :  { %901 = vmatmul.mubr.bf16.gmra.mxu0 %v1135_v2 }
  0x54   :  { %966 = vmatmul.mubr.bf16.gmra.mxu1 %v1137_v4  ;;  %908 = vmatprep.mubr.bf16.mxu0 %v1144_v5 }
  0x55   :  { %973 = vmatprep.mubr.bf16.mxu1 %v1146_v6 }
  0x5b   :  { %909 = vmatmul.mubr.bf16.gmra.mxu0 %v1143_v10 }
  0x5c   :  { %974 = vmatmul.mubr.bf16.gmra.mxu1 %v1145_v12 }
  0x97   :  { %v993_v37 = vpop.permute.xlu0 %992 }
  0xa3   :  { %v998_v44 = vpop.permute.xlu0 %997 }
  0xa5   :  { %v1816_v42 = vpop.permute.xlu1 %1002 }
  0xaa   :  { %v1828_v49 = vpop.permute.xlu1 %1007 }
  0xab   :  { %v1834_v52 = vpop.permute.xlu0 %1012 }
  0xae   :  { %v1838_v58 = vpop.permute.xlu1 %1017 }
  0xb2   :  { %v1842_v13 = vpop.permute.xlu1 %1027 }
  0xb3   :  { %v1840_v1 = vpop.permute.xlu0 %1022 }
  0xe3   :  { %v1227_v17 = vpop.f32.mrf.mxu0 }
  0xe4   :  { %v1267_v18 = vpop.f32.mrf.mxu1 }
  0xe5   :  { %v1228_v19 = vpop.f32.mrf.mxu0 }
  0xe6   :  { %v1268_v20 = vpop.f32.mrf.mxu1  ;;  %v1229_v54 = vadd.f32 %v1228_v19, %v1227_v17 }
  0xe7   :  { %v1230_v21 = vpop.f32.mrf.mxu0  ;;  %v1269_v55 = vadd.f32 %v1268_v20, %v1267_v18 }
  0xe8   :  { %v1270_v22 = vpop.f32.mrf.mxu1 }
  0xe9   :  { %v1231_v23 = vpop.f32.mrf.mxu0  ;;  %v822_v60 = vadd.f32 %v1269_v55, %v1229_v54 }
  0xea   :  { %v1271_v24 = vpop.f32.mrf.mxu1  ;;  %v1232_v61 = vadd.f32 %v1231_v23, %v1230_v21  ;;  %v1049_v21 = vpop.permute.xlu0 %1048 }
  0xeb   :  { %v1233_v25 = vpop.f32.mrf.mxu0  ;;  %v1272_v62 = vadd.f32 %v1271_v24, %v1270_v22 }
  0xec   :  { %v1273_v26 = vpop.f32.mrf.mxu1 }
  0xed   :  { %v1234_v27 = vpop.f32.mrf.mxu0  ;;  %v825_v9 = vadd.f32 %v1272_v62, %v1232_v61 }
  0xee   :  { %v1274_v28 = vpop.f32.mrf.mxu1  ;;  %v1235_v6 = vadd.f32 %v1234_v27, %v1233_v25 }
  0xef   :  { %v1236_v29 = vpop.f32.mrf.mxu0  ;;  %v1275_v7 = vadd.f32 %v1274_v28, %v1273_v26 }
  0xf0   :  { %v1276_v30 = vpop.f32.mrf.mxu1 }
  0xf1   :  { %v1237_v31 = vpop.f32.mrf.mxu0  ;;  %v830_v19 = vadd.f32 %v1275_v7, %v1235_v6 }
  0xf2   :  { %v1277_v32 = vpop.f32.mrf.mxu1  ;;  %v1238_v20 = vadd.f32 %v1237_v31, %v1236_v29  ;;  %v1054_v31 = vpop.permute.xlu1 %1053 }
  0xf3   :  { %v1800_v33 = vpop.f32.mrf.mxu0  ;;  %v1278_v23 = vadd.f32 %v1277_v32, %v1276_v30 }
  0xf4   :  { %v1802_v34 = vpop.f32.mrf.mxu1 }
  0xf5   :  { %v1804_v35 = vpop.f32.mrf.mxu0  ;;  %v833_v30 = vadd.f32 %v1278_v23, %v1238_v20 }
  0xf6   :  { %v1806_v36 = vpop.f32.mrf.mxu1 }
  0xf7   :  { %v1808_v38 = vpop.f32.mrf.mxu0  ;;  %v1281_v29 = vadd.f32 %v1806_v36, %v1802_v34 }
  0xf8   :  { %v1810_v39 = vpop.f32.mrf.mxu1 }
  0xf9   :  { %v1812_v40 = vpop.f32.mrf.mxu0 }
  0xfa   :  { %v1814_v41 = vpop.f32.mrf.mxu1  ;;  %v1244_v36 = vadd.f32 %v1812_v40, %v1808_v38 }
  0xfb   :  { %v1818_v43 = vpop.f32.mrf.mxu0  ;;  %v1284_v6 = vadd.f32 %v1814_v41, %v1810_v39  ;;  %v1064_v41 = vpop.permute.xlu1 %1063 }
  0xfc   :  { %v1820_v45 = vpop.f32.mrf.mxu1 }
  0xfd   :  { %v1822_v46 = vpop.f32.mrf.mxu0 }
  0xfe   :  { %v1824_v47 = vpop.f32.mrf.mxu1 }
  0xff   :  { %v1826_v48 = vpop.f32.mrf.mxu0  ;;  %v1287_v39 = vadd.f32 %v1824_v47, %v1820_v45 }
 0x100   :  { %v1830_v50 = vpop.f32.mrf.mxu1 }
 0x101   :  { %v1832_v51 = vpop.f32.mrf.mxu0 }
 0x102   :  { %v1836_v53 = vpop.f32.mrf.mxu1  ;;  %v1250_v47 = vadd.f32 %v1832_v51, %v1826_v48 }
 0x103   :  { %v1307_v56 = vpop.f32.mrf.mxu0 }
 0x104   :  { %v1347_v57 = vpop.f32.mrf.mxu1 }
 0x105   :  { %v1308_v59 = vpop.f32.mrf.mxu0 }
 0x106   :  { %v1309_v63 = vadd.f32 %v1308_v59, %v1307_v56  ;;  %v1348_v0 = vpop.f32.mrf.mxu1 }
 0x107   :  { %v1310_v2 = vpop.f32.mrf.mxu0  ;;  %v1349_v4 = vadd.f32 %v1348_v0, %v1347_v57 }
 0x108   :  { %v887_v3 = vadd.f32 %v1309_v63, %v822_v60  ;;  %v1350_v5 = vpop.f32.mrf.mxu1 }
 0x109   :  { %v1311_v8 = vpop.f32.mrf.mxu0 }
 0x10a   :  { %v952_v10 = vadd.f32 %v1349_v4, %v887_v3  ;;  %v1312_v11 = vadd.f32 %v1311_v8, %v1310_v2  ;;  %v1351_v12 = vpop.f32.mrf.mxu1  ;;  %v1059_v4 = vpop.permute.xlu0 %1058 }
 0x10b   :  { %v1313_v14 = vpop.f32.mrf.mxu0  ;;  %v1352_v17 = vadd.f32 %v1351_v12, %v1350_v5 }
 0x10c   :  { %v1030_v15 = vmul.f32 %v993_v37, %v952_v10  ;;  %v890_v16 = vadd.f32 %v1312_v11, %v825_v9  ;;  %v1353_v18 = vpop.f32.mrf.mxu1  ;;  %v1241_v37 = vadd.f32 %v1804_v35, %v1800_v33 }
 0x10d   :  { %v1314_v22 = vpop.f32.mrf.mxu0 }
 0x10e   :  { %v1086_v24 = vadd.f32 %v1049_v21, %v1030_v15  ;;  %v955_v25 = vadd.f32 %v1352_v17, %v890_v16  ;;  %v1315_v26 = vadd.f32 %v1314_v22, %v1313_v14  ;;  %v1354_v27 = vpop.f32.mrf.mxu1  ;;  %v838_v34 = vadd.f32 %v1281_v29, %v1241_v37  ;;  %v1074_v29 = vpop.permute.xlu1 %1073 }
 0x10f   :  { %v1316_v28 = vpop.f32.mrf.mxu0  ;;  %v1355_v57 = vadd.f32 %v1354_v27, %v1353_v18  ;;  %v1247_v15 = vadd.f32 %v1822_v46, %v1818_v43  ;;  %v841_v17 = vadd.f32 %v1284_v6, %v1244_v36  ;;  %v1290_v27 = vadd.f32 %v1836_v53, %v1830_v50 }
 0x110   :  { %v1094_v54 = vmax.f32 %v1086_v24, 0.0  ;;  %v1031_v55 = vmul.f32 %v998_v44, %v955_v25  ;;  %v895_v56 = vadd.f32 %v1315_v26, %v830_v19  ;;  %v1356_v59 = vpop.f32.mrf.mxu1  ;;  %v1069_v25 = vpop.permute.xlu0 %1068 }
 0x111   :  { %v1317_v60 = vpop.f32.mrf.mxu0  ;;  %v846_v45 = vadd.f32 %v1287_v39, %v1247_v15 }
 0x112   :  { %1103 = vst.msk [vmem:[%s1902_s4] sm:$0xff] %vm1102_vm0, %v1094_v54  ;;  %v1087_v32 = vadd.f32 %v1054_v31, %v1031_v55  ;;  %v960_v61 = vadd.f32 %v1355_v57, %v895_v56  ;;  %v1318_v44 = vadd.f32 %v1317_v60, %v1316_v28  ;;  %v1357_v62 = vpop.f32.mrf.mxu1  ;;  %v849_v60 = vadd.f32 %v1290_v27, %v1250_v47 }
 0x113   :  { %v1319_v63 = vpop.f32.mrf.mxu0  ;;  %v1358_v35 = vadd.f32 %v1357_v62, %v1356_v59 }
 0x114   :  { %v1095_v0 = vmax.f32 %v1087_v32, 0.0  ;;  %v1032_v2 = vmul.f32 %v1816_v42, %v960_v61  ;;  %v898_v33 = vadd.f32 %v1318_v44, %v833_v30  ;;  %v1359_v3 = vpop.f32.mrf.mxu1 }
 0x115   :  { %v1320_v5 = vpop.f32.mrf.mxu0 }
 0x116   :  { %1104 = vst.msk [vmem:[%s1902_s4 + $0x8] sm:$0xff] %vm1102_vm0, %v1095_v0  ;;  %v1088_v7 = vadd.f32 %v1059_v4, %v1032_v2  ;;  %v963_v8 = vadd.f32 %v1358_v35, %v898_v33  ;;  %v1321_v42 = vadd.f32 %v1320_v5, %v1319_v63  ;;  %v1360_v9 = vpop.f32.mrf.mxu1  ;;  %v1079_v63 = vpop.permute.xlu0 %1078 }
 0x117   :  { %v1322_v10 = vpop.f32.mrf.mxu0  ;;  %v1361_v38 = vadd.f32 %v1360_v9, %v1359_v3  ;;  %v1084_v3 = vpop.permute.xlu1 %1083 }
 0x118   :  { %v1096_v11 = vmax.f32 %v1088_v7, 0.0  ;;  %v1033_v12 = vmul.f32 %v1828_v49, %v963_v8  ;;  %v903_v14 = vadd.f32 %v1321_v42, %v838_v34  ;;  %v1362_v40 = vpop.f32.mrf.mxu1 }
 0x119   :  { %v1323_v16 = vpop.f32.mrf.mxu0 }
 0x11a   :  { %1105 = vst.msk [vmem:[%s1902_s4 + $0x10] sm:$0xff] %vm1102_vm0, %v1096_v11  ;;  %v1089_v18 = vadd.f32 %v1064_v41, %v1033_v12  ;;  %v968_v19 = vadd.f32 %v1361_v38, %v903_v14  ;;  %v1324_v49 = vadd.f32 %v1323_v16, %v1322_v10  ;;  %v1363_v20 = vpop.f32.mrf.mxu1 }
 0x11b   :  { %v1325_v21 = vpop.f32.mrf.mxu0  ;;  %v1364_v46 = vadd.f32 %v1363_v20, %v1362_v40 }
 0x11c   :  { %v1097_v22 = vmax.f32 %v1089_v18, 0.0  ;;  %v1034_v23 = vmul.f32 %v1834_v52, %v968_v19  ;;  %v906_v43 = vadd.f32 %v1324_v49, %v841_v17  ;;  %v1365_v24 = vpop.f32.mrf.mxu1 }
 0x11d   :  { %v1326_v26 = vpop.f32.mrf.mxu0 }
 0x11e   :  { %1106 = vst.msk [vmem:[%s1902_s4 + $0x18] sm:$0xff] %vm1102_vm0, %v1097_v22  ;;  %v1090_v28 = vadd.f32 %v1069_v25, %v1034_v23  ;;  %v971_v54 = vadd.f32 %v1364_v46, %v906_v43  ;;  %v1327_v52 = vadd.f32 %v1326_v26, %v1325_v21  ;;  %v1366_v55 = vpop.f32.mrf.mxu1 }
 0x11f   :  { %v1328_v56 = vpop.f32.mrf.mxu0  ;;  %v1367_v48 = vadd.f32 %v1366_v55, %v1365_v24 }
 0x120   :  { %v1098_v57 = vmax.f32 %v1090_v28, 0.0  ;;  %v1035_v59 = vmul.f32 %v1838_v58, %v971_v54  ;;  %v911_v37 = vadd.f32 %v1327_v52, %v846_v45  ;;  %v1368_v51 = vpop.f32.mrf.mxu1 }
 0x121   :  { %v1329_v31 = vpop.f32.mrf.mxu0 }
 0x122   :  { %1107 = vst.msk [vmem:[%s1902_s4 + $0x20] sm:$0xff] %vm1102_vm0, %v1098_v57  ;;  %v1091_v50 = vadd.f32 %v1074_v29, %v1035_v59  ;;  %v976_v53 = vadd.f32 %v1367_v48, %v911_v37  ;;  %v1330_v30 = vadd.f32 %v1329_v31, %v1328_v56  ;;  %v1369_v32 = vpop.f32.mrf.mxu1 }
 0x123   :  { %v1370_v58 = vadd.f32 %v1369_v32, %v1368_v51 }
 0x124   :  { %v1099_v61 = vmax.f32 %v1091_v50, 0.0  ;;  %v1036_v44 = vmul.f32 %v1840_v1, %v976_v53  ;;  %v914_v62 = vadd.f32 %v1330_v30, %v849_v60 }
 0x126   :  { %1108 = vst.msk [vmem:[%s1902_s4 + $0x28] sm:$0xff] %vm1102_vm0, %v1099_v61  ;;  %v1092_v0 = vadd.f32 %v1079_v63, %v1036_v44  ;;  %v979_v2 = vadd.f32 %v1370_v58, %v914_v62 }
 0x128   :  { %v1100_v33 = vmax.f32 %v1092_v0, 0.0  ;;  %v1037_v35 = vmul.f32 %v1842_v13, %v979_v2 }
 0x12a   :  { %1109 = vst.msk [vmem:[%s1902_s4 + $0x30] sm:$0xff] %vm1102_vm0, %v1100_v33  ;;  %v1093_v1 = vadd.f32 %v1084_v3, %v1037_v35 }
 0x12c   :  { %v1101_v34 = vmax.f32 %v1093_v1, 0.0 }
 0x12e   :  { %1110 = vst.msk [vmem:[%s1902_s4 + $0x38] sm:$0xff] %vm1102_vm0, %v1101_v34 }

// kernel: forward.15
= control target key start
LH: loop header
LB: loop body
LE: loop exit
PB: predicated region body
PF: predicated region fallthrough
CT: control target
= control target key end

     0   :  { %v149_v1 = vmov 0   ;;  %vm76_vm0 = vcmask 523264   ;;  %v26_v10 = vlaneseq  ;;  %s206_s1 = inlined_call_operand.vmem [shape: bf16[64,256], index: 1, kind: input, shape index: {}]   ;;  %s207_s0 = inlined_call_operand.vmem [shape: bf16[8,64], index: 0, kind: input, shape index: {}]   ;;  %s208_s2 = inlined_call_operand.vmem [shape: f32[1,256], index: 2, kind: input, shape index: {}]   ;;  %s209_s3 = inlined_call_operand.vmem [shape: f32[8,256], index: 3, kind: output, shape index: {}]  }
   0x1   :  { %v137_v0 = vld [vmem:[%s206_s1 + $0x34] ss:$8 sps:$4 sm:$0xff]   ;;  %112 = vmatprep.mubr.bf16.mxu0 %v149_v1  ;;  %v139_v2 = vld [vmem:[%s206_s1 + $0x30] ss:$8 sps:$4 sm:$0xff]   ;;  %v140_v3 = vld [vmem:[%s206_s1 + $0x24] ss:$8 sps:$4 sm:$0xff]  }
   0x2   :  { %88 = vmatprep.subr.bf16.mxu0 %v137_v0  ;;  %v142_v4 = vld [vmem:[%s206_s1 + $0x20] ss:$8 sps:$4 sm:$0xff]   ;;  %v143_v5 = vld [vmem:[%s206_s1 + $0x14] ss:$8 sps:$4 sm:$0xff]   ;;  %v145_v6 = vld [vmem:[%s206_s1 + $0x10] ss:$8 sps:$4 sm:$0xff]  }
   0x3   :  { %89 = vmatpush1.bf16.msra.mxu0 %v139_v2  ;;  %v146_v7 = vld [vmem:[%s206_s1 + $0x4] ss:$8 sps:$4 sm:$0xff]   ;;  %v148_v8 = vld [vmem:[%s206_s1] ss:$8 sps:$4 sm:$0xff]   ;;  %v27_v11 = vshrl.u32 %v26_v10, 7 }
   0x4   :  { %90 = vmatprep.subr.bf16.mxu0 %v140_v3  ;;  %v15_v9 = vld [vmem:[%s207_s0] sm:$0xf] }
   0x5   :  { %v28_v12 = vsub.s32 0, %v27_v11  ;;  %v24_v13 = vld [vmem:[%s208_s2] sm:$0x3]  ;;  %v32_v14 = vsub.s32 1, %v27_v11 }
   0x7   :  { %91 = vmatpush1.bf16.msra.mxu0 %v142_v4  ;;  %v29_v15 = vrot.slane %v24_v13, %v28_v12  ;;  %v33_v16 = vrot.slane %v24_v13, %v32_v14 }
   0x8   :  { %92 = vmatprep.subr.bf16.mxu0 %v143_v5 }
   0xb   :  { %93 = vmatpush1.bf16.msra.mxu0 %v145_v6 }
   0xc   :  { %94 = vmatprep.subr.bf16.mxu0 %v146_v7 }
   0xf   :  { %95 = vmatpush1.bf16.msra.mxu0 %v148_v8 }
  0x12   :  { %135 = vmatmul.mubr.msk.bf16.vlgmr.msra.gmra.mxu0 %vm76_vm0, %v15_v9 }
  0xd2   :  { %v114_v17 = vpop.f32.mrf.mxu0 }
  0xd3   :  { %v115_v18 = vadd.f32 %v114_v17, %v29_v15 }
  0xd4   :  { %v116_v19 = vpop.f32.mrf.mxu0 }
  0xd5   :  { %121 = vst [vmem:[%s209_s3] sm:$0xff] %v115_v18  ;;  %v117_v20 = vadd.f32 %v116_v19, %v33_v16 }
  0xd6   :  { %v118_v21 = vpop.f32.mrf.mxu0 }
  0xd7   :  { %122 = vst [vmem:[%s209_s3 + $0x8] sm:$0xff] %v117_v20 }
  0xd8   :  { %v119_v22 = vpop.f32.mrf.mxu0 }

// kernel: forward.16
= control target key start
LH: loop header
LB: loop body
LE: loop exit
PB: predicated region body
PF: predicated region fallthrough
CT: control target
= control target key end

     0   :  { %s842_s9 = smov 0   ;;  %s993_s0 = inlined_call_operand.vmem [shape: f32[2,4,2,128], index: 0, kind: input, shape index: {}]   ;;  %s994_s1 = inlined_call_operand.vmem [shape: bf16[2,32,128], index: 1, kind: input, shape index: {}]   ;;  %s995_s2 = inlined_call_operand.vmem [shape: f32[2,4,2,32], index: 2, kind: output, shape index: {}]  }
   0x1 LB: > { %s848_s10 = sadd.s32 4294967295, %s820_s9   ;;  %p685_p0 = scmp.ge.s32.totalorder %s820_s9, 1  ;;  %s820_s9 = sphi %s842_s9, %s12_s9  }
   0x2   : > { %p122_p1 = scmp.lt.s32.totalorder %s820_s9, 3 }
   0x4   : > { %p123_p2 = pnand %p685_p0, %p122_p1 }
   0x5   : > { %p149_p3 = scmp.lt.s32.totalorder (!%p123_p2), %s848_s10, 1  ;;  %p165_p4 = scmp.eq.s32.totalorder (!%p123_p2), %s848_s10, 0 }
   0x6   : > { %126 = sbr.rel (%p123_p2) target bundleno = 2810 (0xafa), region = 28  ;;  %s824_s23 = smov (!%p123_p2), 64  }
   0x7   : > { %s825_s24 = smov (!%p123_p2), 32   ;;  %s826_s25 = smov (!%p123_p2), 96  }
   0xb   : > { %vm166_vm0 = vcmask 254976   ;;  %v822_v0 = vmov 0.0   ;;  %vm823_vm1 = vmmov 0   ;;  %s861_s11 = scalar_select %p149_p3, %s848_s10, 1  ;;  %vm191_vm2 = vcmask 261120  }
   0xc   : > { %729 = vmatprep.subr.bf16.mxu0 %v822_v0  ;;  %733 = vmatprep.mubr.msk.bf16.mxu0 %vm823_vm1, %v822_v0  ;;  %167 = vst.msk [vmem:[#allocation2] sm:$0x3] %vm166_vm0, %v822_v0  ;;  %168 = vst.msk [vmem:[#allocation3] sm:$0x3] %vm166_vm0, %v822_v0  ;;  %s882_s16 = scalar_select %p165_p4, 0, 3 }
   0xd   : > { %737 = vmatprep.subr.bf16.mxu1 %v822_v0  ;;  %741 = vmatprep.mubr.msk.bf16.mxu1 %vm823_vm1, %v822_v0  ;;  %s715_s12 = sshll.u32 %s861_s11, 4  ;;  %s714_s17 = sshll.u32 %s861_s11, 3 }
   0xe   : > { %s870_s15 = scalar_lea.vmem %s994_s1, %s715_s12  ;;  %s890_s20 = scalar_lea.vmem %s993_s0, %s714_s17 }
   0xf   : > { %v774_v1 = vld [vmem:[%s870_s15 + $0x8] sm:$0xff]   ;;  %v775_v2 = vld [vmem:[%s870_s15] sm:$0xff]   ;;  %s692_s21 = sshll.u32 %s882_s16, 1  ;;  %s913_s28 = scalar_lea.vmem %s995_s2, %s714_s17 }
  0x10   : > { %730 = vmatpush3.bf16.msra.mxu0 %v774_v1  ;;  %s171_s22 = scalar_lea.vmem %s890_s20, %s692_s21  ;;  %v776_v24 = vld [vmem:[%s870_s15 + $0x8] sm:$0xff]   ;;  %v777_v25 = vld [vmem:[%s870_s15] sm:$0xff]   ;;  %s275_s29 = scalar_lea.vmem %s913_s28, %s692_s21 }
  0x11   : > { %731 = vmatprep.subr.bf16.mxu0 %v822_v0  ;;  %v172_v5 = vld [vmem:[%s171_s22] sm:$0x3]  ;;  %738 = vmatpush3.bf16.msra.mxu1 %v776_v24  ;;  %s925_s30 = scalar_select %p165_p4, 1, 2  ;;  %v778_v51 = vld [vmem:[%s870_s15 + $0x8] sm:$0xff]  }
  0x12   : > { %739 = vmatprep.subr.bf16.mxu1 %v822_v0  ;;  %v779_v52 = vld [vmem:[%s870_s15] sm:$0xff]   ;;  %s949_s6 = scalar_select %p165_p4, 2, 1 }
  0x13   : > { %v173_v3 = vld [vmem:[#allocation2] sm:$0x3]  ;;  %v243_v12 = vld [vmem:[#allocation3] sm:$0x3]  ;;  %s697_s3 = sshll.u32 %s925_s30, 1 }
  0x14   : > { %v174_v4 = vpack.c.bf16 %v173_v3, %v173_v3  ;;  %732 = vmatpush3.bf16.msra.mxu0 %v775_v2  ;;  %s279_s4 = scalar_lea.vmem %s890_s20, %s697_s3  ;;  %s382_s5 = scalar_lea.vmem %s913_s28, %s697_s3 }
  0x15   : > { %745 = vmatprep.subr.bf16.mxu0 %v822_v0  ;;  %740 = vmatpush3.bf16.msra.mxu1 %v777_v25  ;;  %v280_v33 = vld [vmem:[%s279_s4] sm:$0x3]  ;;  %s702_s7 = sshll.u32 %s949_s6, 1 }
  0x16   : > { %753 = vmatprep.subr.bf16.mxu1 %v822_v0  ;;  %s386_s8 = scalar_lea.vmem %s890_s20, %s702_s7  ;;  %s489_s11 = scalar_lea.vmem %s913_s28, %s702_s7 }
  0x17   : > { %734 = vmatmul.mubr.msk.bf16.vlgmr.msra.gmra.mxu0 %vm191_vm2, %v174_v4  ;;  %v387_v60 = vld [vmem:[%s386_s8] sm:$0x3]  ;;  %s973_s12 = scalar_select %p165_p4, 3, 0 }
  0x18   : > { %749 = vmatprep.mubr.msk.bf16.mxu0 %vm823_vm1, %v822_v0  ;;  %746 = vmatpush3.bf16.msra.mxu0 %v778_v51 }
  0x19   : > { %747 = vmatprep.subr.bf16.mxu0 %v822_v0  ;;  %s707_s13 = sshll.u32 %s973_s12, 1 }
  0x1a   : > { %s493_s14 = scalar_lea.vmem %s890_s20, %s707_s13  ;;  %s596_s10 = scalar_lea.vmem %s913_s28, %s707_s13 }
  0x1c   : > { %748 = vmatpush3.bf16.msra.mxu0 %v779_v52 }
  0xd7   : > { %v229_v6 = vpop.f32.mrf.mxu0 }
  0xd8   : > { %v235_v7 = vadd.f32 %v229_v6, %v172_v5 }
  0xd9   : > { %v735_v8 = vpop.f32.mrf.mxu0 }
  0xda   : > { %782 = vtanh.f32 %v235_v7  ;;  %v696_v13 = vmul.f32 -1.442695, %v235_v7 }
  0xdb   : > { %v232_v9 = vpop.f32.mrf.mxu0 }
  0xdc   : > { %784 = vpow2.f32 %v696_v13 }
  0xdd   : > { %v736_v10 = vpop.f32.mrf.mxu0 }
  0xe7   : > { %v783_v11 = vpop.eup %782 }
  0xe8   : > { %250 = vrot.lane.b32.xlu0 %v783_v11, %s824_s23 }
  0xe9   : > { %v785_v14 = vpop.eup %784 }
  0xea   : > { %v239_v15 = vadd.f32 1.0, %v785_v14 }
  0xec   : > { %245 = vrot.lane.b32.xlu0 %v243_v12, %s825_s24  ;;  %786 = vrcp.f32 %v239_v15  ;;  %v780_v15 = vld [vmem:[%s870_s15 + $0x8] sm:$0xff]  }
  0xf9   : > { %v787_v16 = vpop.eup %786 }
 0x15a   : > { %v251_v17 = vpop.permute.xlu0 %250 }
 0x15b   : > { %v253_v18 = vmul.f32 %v787_v16, %v251_v17 }
 0x15d   : > { %255 = vrot.lane.b32.xlu1 %v253_v18, %s825_s24 }
 0x15e   : > { %v246_v19 = vpop.permute.xlu0 %245 }
 0x15f   : > { %v248_v20 = vmul.f32 %v787_v16, %v246_v19 }
 0x1cf   : > { %v256_v21 = vpop.permute.xlu1 %255 }
 0x1d0   : > { %v258_v22 = vadd.f32 %v256_v21, %v248_v20 }
 0x1d2   : > { %788 = vtanh.f32 %v258_v22 }
 0x1df   : > { %v789_v23 = vpop.eup %788 }
 0x1e0   : > { %261 = vrot.lane.b32.xlu1 %v789_v23, %s824_s23  ;;  %v494_v23 = vld [vmem:[%s493_s14] sm:$0x3] }
 0x1e4   : > { %266 = vrot.lane.b32.xlu1 %v258_v22, %s826_s25 }
 0x252   : > { %v262_v26 = vpop.permute.xlu1 %261 }
 0x253   : > { %v264_v27 = vmul.f32 %v787_v16, %v262_v26  ;;  %v781_v16 = vld [vmem:[%s870_s15] sm:$0xff]  }
 0x255   : > { %271 = vrot.lane.b32.xlu0 %v264_v27, %s825_s24 }
 0x256   : > { %v267_v28 = vpop.permute.xlu1 %266 }
 0x257   : > { %269 = vst.msk [vmem:[#allocation3] sm:$0x3] %vm166_vm0, %v267_v28 }
 0x25e   : > { %v350_v29 = vld [vmem:[#allocation3] sm:$0x3] }
 0x25f   : > { %352 = vrot.lane.b32.xlu1 %v350_v29, %s825_s24 }
 0x2c7   : > { %v272_v30 = vpop.permute.xlu0 %271 }
 0x2c8   : > { %274 = vst.msk [vmem:[#allocation2] sm:$0x3] %vm166_vm0, %v272_v30  ;;  %276 = vst.msk [vmem:[%s275_s29] sm:$0x3] %vm166_vm0, %v272_v30 }
 0x2cf   : > { %v281_v31 = vld [vmem:[#allocation2] sm:$0x3] }
 0x2d0   : > { %v282_v32 = vpack.c.bf16 %v281_v31, %v281_v31 }
 0x2d1   : > { %v353_v46 = vpop.permute.xlu1 %352 }
 0x2d2   : > { %742 = vmatmul.mubr.msk.bf16.vlgmr.msra.gmra.mxu1 %vm191_vm2, %v282_v32 }
 0x2d3   : > { %757 = vmatprep.mubr.msk.bf16.mxu1 %vm823_vm1, %v822_v0  ;;  %754 = vmatpush3.bf16.msra.mxu1 %v780_v15 }
 0x2d4   : > { %755 = vmatprep.subr.bf16.mxu1 %v822_v0 }
 0x2d7   : > { %756 = vmatpush3.bf16.msra.mxu1 %v781_v16 }
 0x392   : > { %v336_v34 = vpop.f32.mrf.mxu1 }
 0x393   : > { %v342_v35 = vadd.f32 %v336_v34, %v280_v33 }
 0x394   : > { %v743_v36 = vpop.f32.mrf.mxu1 }
 0x395   : > { %790 = vtanh.f32 %v342_v35  ;;  %v701_v40 = vmul.f32 -1.442695, %v342_v35 }
 0x396   : > { %v339_v37 = vpop.f32.mrf.mxu1 }
 0x397   : > { %792 = vpow2.f32 %v701_v40 }
 0x398   : > { %v744_v38 = vpop.f32.mrf.mxu1 }
 0x3a2   : > { %v791_v39 = vpop.eup %790 }
 0x3a3   : > { %357 = vrot.lane.b32.xlu0 %v791_v39, %s824_s23 }
 0x3a4   : > { %v793_v41 = vpop.eup %792 }
 0x3a5   : > { %v346_v42 = vadd.f32 1.0, %v793_v41 }
 0x3a7   : > { %794 = vrcp.f32 %v346_v42 }
 0x3b4   : > { %v795_v43 = vpop.eup %794 }
 0x3b5   : > { %v355_v47 = vmul.f32 %v795_v43, %v353_v46 }
 0x415   : > { %v358_v44 = vpop.permute.xlu0 %357 }
 0x416   : > { %v360_v45 = vmul.f32 %v795_v43, %v358_v44 }
 0x418   : > { %362 = vrot.lane.b32.xlu0 %v360_v45, %s825_s24 }
 0x48a   : > { %v363_v48 = vpop.permute.xlu0 %362 }
 0x48b   : > { %v365_v49 = vadd.f32 %v363_v48, %v355_v47 }
 0x48d   : > { %796 = vtanh.f32 %v365_v49 }
 0x49a   : > { %v797_v50 = vpop.eup %796 }
 0x49b   : > { %368 = vrot.lane.b32.xlu1 %v797_v50, %s824_s23 }
 0x49f   : > { %373 = vrot.lane.b32.xlu1 %v365_v49, %s826_s25 }
 0x50d   : > { %v369_v53 = vpop.permute.xlu1 %368 }
 0x50e   : > { %v371_v54 = vmul.f32 %v795_v43, %v369_v53 }
 0x510   : > { %378 = vrot.lane.b32.xlu0 %v371_v54, %s825_s24 }
 0x511   : > { %v374_v55 = vpop.permute.xlu1 %373 }
 0x512   : > { %376 = vst.msk [vmem:[#allocation3] sm:$0x3] %vm166_vm0, %v374_v55 }
 0x519   : > { %v457_v56 = vld [vmem:[#allocation3] sm:$0x3] }
 0x51a   : > { %459 = vrot.lane.b32.xlu1 %v457_v56, %s825_s24 }
 0x582   : > { %v379_v57 = vpop.permute.xlu0 %378 }
 0x583   : > { %381 = vst.msk [vmem:[#allocation2] sm:$0x3] %vm166_vm0, %v379_v57  ;;  %383 = vst.msk [vmem:[%s382_s5] sm:$0x3] %vm166_vm0, %v379_v57 }
 0x58a   : > { %v388_v58 = vld [vmem:[#allocation2] sm:$0x3] }
 0x58b   : > { %v389_v59 = vpack.c.bf16 %v388_v58, %v388_v58 }
 0x58c   : > { %v460_v10 = vpop.permute.xlu1 %459 }
 0x58d   : > { %750 = vmatmul.mubr.msk.bf16.vlgmr.msra.gmra.mxu0 %vm191_vm2, %v389_v59 }
 0x64d   : > { %v443_v61 = vpop.f32.mrf.mxu0 }
 0x64e   : > { %v449_v62 = vadd.f32 %v443_v61, %v387_v60 }
 0x64f   : > { %v751_v63 = vpop.f32.mrf.mxu0 }
 0x650   : > { %798 = vtanh.f32 %v449_v62  ;;  %v706_v4 = vmul.f32 -1.442695, %v449_v62 }
 0x651   : > { %v446_v1 = vpop.f32.mrf.mxu0 }
 0x652   : > { %800 = vpow2.f32 %v706_v4 }
 0x653   : > { %v752_v2 = vpop.f32.mrf.mxu0 }
 0x65d   : > { %v799_v3 = vpop.eup %798 }
 0x65e   : > { %464 = vrot.lane.b32.xlu0 %v799_v3, %s824_s23 }
 0x65f   : > { %v801_v5 = vpop.eup %800 }
 0x660   : > { %v453_v6 = vadd.f32 1.0, %v801_v5 }
 0x662   : > { %802 = vrcp.f32 %v453_v6 }
 0x66f   : > { %v803_v7 = vpop.eup %802 }
 0x670   : > { %v462_v11 = vmul.f32 %v803_v7, %v460_v10 }
 0x6d0   : > { %v465_v8 = vpop.permute.xlu0 %464 }
 0x6d1   : > { %v467_v9 = vmul.f32 %v803_v7, %v465_v8 }
 0x6d3   : > { %469 = vrot.lane.b32.xlu0 %v467_v9, %s825_s24 }
 0x745   : > { %v470_v12 = vpop.permute.xlu0 %469 }
 0x746   : > { %v472_v13 = vadd.f32 %v470_v12, %v462_v11 }
 0x748   : > { %804 = vtanh.f32 %v472_v13 }
 0x755   : > { %v805_v14 = vpop.eup %804 }
 0x756   : > { %475 = vrot.lane.b32.xlu1 %v805_v14, %s824_s23 }
 0x75a   : > { %480 = vrot.lane.b32.xlu1 %v472_v13, %s826_s25 }
 0x7c8   : > { %v476_v17 = vpop.permute.xlu1 %475 }
 0x7c9   : > { %v478_v18 = vmul.f32 %v803_v7, %v476_v17 }
 0x7cb   : > { %485 = vrot.lane.b32.xlu0 %v478_v18, %s825_s24 }
 0x7cc   : > { %v481_v19 = vpop.permute.xlu1 %480 }
 0x7cd   : > { %483 = vst.msk [vmem:[#allocation3] sm:$0x3] %vm166_vm0, %v481_v19 }
 0x7d4   : > { %v564_v20 = vld [vmem:[#allocation3] sm:$0x3] }
 0x7d5   : > { %566 = vrot.lane.b32.xlu1 %v564_v20, %s825_s24 }
 0x83d   : > { %v486_v21 = vpop.permute.xlu0 %485 }
 0x83e   : > { %488 = vst.msk [vmem:[#allocation2] sm:$0x3] %vm166_vm0, %v486_v21  ;;  %490 = vst.msk [vmem:[%s489_s11] sm:$0x3] %vm166_vm0, %v486_v21 }
 0x845   : > { %v495_v0 = vld [vmem:[#allocation2] sm:$0x3] }
 0x846   : > { %v496_v22 = vpack.c.bf16 %v495_v0, %v495_v0 }
 0x847   : > { %v567_v36 = vpop.permute.xlu1 %566 }
 0x848   : > { %758 = vmatmul.mubr.msk.bf16.vlgmr.msra.gmra.mxu1 %vm191_vm2, %v496_v22 }
 0x908   : > { %v550_v24 = vpop.f32.mrf.mxu1 }
 0x909   : > { %v556_v25 = vadd.f32 %v550_v24, %v494_v23 }
 0x90a   : > { %v759_v26 = vpop.f32.mrf.mxu1 }
 0x90b   : > { %806 = vtanh.f32 %v556_v25  ;;  %v711_v30 = vmul.f32 -1.442695, %v556_v25 }
 0x90c   : > { %v553_v27 = vpop.f32.mrf.mxu1 }
 0x90d   : > { %808 = vpow2.f32 %v711_v30 }
 0x90e   : > { %v760_v28 = vpop.f32.mrf.mxu1 }
 0x918   : > { %v807_v29 = vpop.eup %806 }
 0x919   : > { %571 = vrot.lane.b32.xlu0 %v807_v29, %s824_s23 }
 0x91a   : > { %v809_v31 = vpop.eup %808 }
 0x91b   : > { %v560_v32 = vadd.f32 1.0, %v809_v31 }
 0x91d   : > { %810 = vrcp.f32 %v560_v32 }
 0x92a   : > { %v811_v33 = vpop.eup %810 }
 0x92b   : > { %v569_v37 = vmul.f32 %v811_v33, %v567_v36 }
 0x98b   : > { %v572_v34 = vpop.permute.xlu0 %571 }
 0x98c   : > { %v574_v35 = vmul.f32 %v811_v33, %v572_v34 }
 0x98e   : > { %576 = vrot.lane.b32.xlu0 %v574_v35, %s825_s24 }
 0xa00   : > { %v577_v38 = vpop.permute.xlu0 %576 }
 0xa01   : > { %v579_v39 = vadd.f32 %v577_v38, %v569_v37 }
 0xa03   : > { %812 = vtanh.f32 %v579_v39  ;;  %587 = vrot.lane.b32.xlu0 %v579_v39, %s826_s25 }
 0xa10   : > { %v813_v40 = vpop.eup %812 }
 0xa11   : > { %582 = vrot.lane.b32.xlu1 %v813_v40, %s824_s23 }
 0xa75   : > { %v588_v41 = vpop.permute.xlu0 %587 }
 0xa76   : > { %590 = vst.msk [vmem:[#allocation3] sm:$0x3] %vm166_vm0, %v588_v41 }
 0xa83   : > { %v583_v42 = vpop.permute.xlu1 %582 }
 0xa84   : > { %v585_v43 = vmul.f32 %v811_v33, %v583_v42 }
 0xa86   : > { %592 = vrot.lane.b32.xlu1 %v585_v43, %s825_s24 }
 0xaf8   : > { %v593_v44 = vpop.permute.xlu1 %592 }
 0xaf9   : > { %595 = vst.msk [vmem:[#allocation2] sm:$0x3] %vm166_vm0, %v593_v44  ;;  %597 = vst.msk [vmem:[%s596_s10] sm:$0x3] %vm166_vm0, %v593_v44 }
 0xafa PF: > { %s12_s9 = sadd.s32 1, %s820_s9  }
 0xafb   : > { %p9_p5 = scmp.ge.s32.totalorder %s12_s9, 4  }
 0xafd   :  { %11 = sbr.rel (!%p9_p5) target bundleno = 1 (0x1), region = 69 }

// kernel: forward.19
= control target key start
LH: loop header
LB: loop body
LE: loop exit
PB: predicated region body
PF: predicated region fallthrough
CT: control target
= control target key end

     0   :  { %v260_v1 = vmov 0.0   ;;  %vm261_vm0 = vmmov 0   ;;  %s323_s0 = inlined_call_operand.vmem [shape: bf16[2,64], index: 0, kind: input, shape index: {}]   ;;  %s324_s1 = inlined_call_operand.vmem [shape: bf16[64,32], index: 1, kind: input, shape index: {}]   ;;  %s325_s2 = inlined_call_operand.vmem [shape: f32[1,32], index: 2, kind: input, shape index: {}]   ;;  %s326_s3 = inlined_call_operand.vmem [shape: bf16[32,4], index: 3, kind: input, shape index: {}]   ;;  %s327_s4 = inlined_call_operand.vmem [shape: f32[1,4], index: 4, kind: input, shape index: {}]   ;;  %s328_s5 = inlined_call_operand.hbm [shape: f32[2,4], index: 5, kind: output, shape index: {}]  }
   0x1   :  { %v232_v0 = vld [vmem:[%s324_s1 + $0x18] sm:$0xff]   ;;  %209 = vmatprep.subr.bf16.mxu0 %v260_v1  ;;  %221 = vmatprep.subr.bf16.mxu1 %v260_v1  ;;  %v233_v2 = vld [vmem:[%s324_s1 + $0x10] sm:$0xff]   ;;  %v234_v3 = vld [vmem:[%s324_s1 + $0x8] sm:$0xff]  }
   0x2   :  { %210 = vmatpush3.bf16.msra.mxu0 %v232_v0  ;;  %217 = vmatprep.mubr.msk.bf16.mxu0 %vm261_vm0, %v260_v1 }
   0x3   :  { %211 = vmatprep.subr.bf16.mxu0 %v260_v1  ;;  %225 = vmatprep.mubr.msk.bf16.mxu1 %vm261_vm0, %v260_v1 }
   0x6   :  { %212 = vmatpush3.bf16.msra.mxu0 %v233_v2 }
   0x7   :  { %10 = vsyncpa [#allocation3], 0  ;;  %213 = vmatprep.subr.bf16.mxu0 %v260_v1  ;;  %v235_v4 = vld [vmem:[%s324_s1] sm:$0xff]   ;;  %vm62_vm1 = vcmask 523264   ;;  %v236_v6 = vld [vmem:[%s326_s3 + $0x8] sm:$0xff]   ;;  %vm131_vm2 = vcmask 261120  }
   0x8   :  { %v22_v5 = vld [vmem:[%s323_s0] sm:$0x1]  ;;  %222 = vmatpush3.bf16.msra.mxu1 %v236_v6  ;;  %s262_s9 = smov [#allocation2]   ;;  %vm175_vm3 = vcmask 25600  }
   0x9   :  { %223 = vmatprep.subr.bf16.mxu1 %v260_v1  ;;  %v237_v7 = vld [vmem:[%s326_s3] sm:$0xff]   ;;  %s183_s3 = sshll.u32 %s262_s9, 4  ;;  %s184_s3 = int_to_ptr.vmem [resolvable:$true] %s183_s3 }
   0xa   :  { %214 = vmatpush3.bf16.msra.mxu0 %v234_v3  ;;  %v191_v8 = vld [vmem:[%s325_s2] ss:$0 sm:$0xff]  ;;  %s238_s2 = scalar_lea.vmem %s184_s3, 32  ;;  %p243_p1 = scmp.lt.s32.totalorder %s184_s3, %s184_s3 }
   0xb   :  { %215 = vmatprep.subr.bf16.mxu0 %v260_v1  ;;  %v197_v16 = vld [vmem:[%s327_s4] ss:$0 sm:$0xff]  ;;  %p239_p0 = scmp.ne.s32.totalorder %s184_s3, %s238_s2  ;;  %p244_p2 = scmp.lt.s32.totalorder %s238_s2, %s238_s2 }
   0xc   :  { %224 = vmatpush3.bf16.msra.mxu1 %v237_v7 }
   0xd   :  { %p245_p3 = por %p244_p2, %p243_p1 }
   0xe   :  { %216 = vmatpush3.bf16.msra.mxu0 %v235_v4 }
   0xf   :  { %p246_p4 = pnand %p245_p3, %p239_p0 }
  0x11   :  { %218 = vmatmul.mubr.msk.bf16.vlgmr.msra.gmra.mxu0 %vm62_vm1, %v22_v5 }
  0xd1   :  { %v100_v9 = vpop.f32.mrf.mxu0 }
  0xd2   :  { %v101_v10 = vadd.f32 %v191_v8, %v100_v9 }
  0xd3   :  { %v219_v11 = vpop.f32.mrf.mxu0 }
  0xd4   :  { %v106_v12 = vmax.f32 %v101_v10, 0.0 }
  0xd5   :  { %v103_v13 = vpop.f32.mrf.mxu0 }
  0xd6   :  { %v107_v14 = vpack.c.bf16 %v106_v12, %v106_v12 }
  0xd7   :  { %v220_v15 = vpop.f32.mrf.mxu0 }
  0xd8   :  { %226 = vmatmul.mubr.msk.bf16.vlgmr.msra.gmra.mxu1 %vm131_vm2, %v107_v14 }
 0x198   :  { %v169_v17 = vpop.f32.mrf.mxu1 }
 0x199   :  { %v170_v18 = vadd.f32 %v197_v16, %v169_v17 }
 0x19a   :  { %v227_v19 = vpop.f32.mrf.mxu1 }
 0x19b   :  { %176 = vst.msk [vmem:[#allocation2] sm:$0x3] %vm175_vm3, %v170_v18 }
 0x19c   :  { %v172_v20 = vpop.f32.mrf.mxu1 }
 0x19d   :  { %249 = shalt.err (!%p246_p4)
}
 0x19e   :  { %186 = dma.vmem_to_hbm [thread:$0]  %s184_s3, 32, %s328_s5, [#allocation3]   ;;  %v228_v21 = vpop.f32.mrf.mxu1 }
 0x19f   :  { %258 = dma.done.wait [#allocation3], 32  }
 0x1a0   :  { %259 = vsyncadd [#allocation3], 4294967264 }
 0x1a1   :  { %190 = vsyncpa [#allocation3], 1 }

</bundles_post_ra>
